<compile_context>
chip_gen: v7x
topology: tpu7x:2x2x1
jax: 0.10.0
libtpu: 0.0.40
codegen_flags: <defaults>
</compile_context>

<pallas_src>
import numpy as np
import jax
import jax.numpy as jnp
from jax.experimental import pallas as pl
from jax.experimental.pallas import tpu as pltpu


def _round_up(x, m):
    return ((x + m - 1) // m) * m


# ---------------------------------------------------------------------------
# Static configuration derived from the module hyper-parameters.
# ---------------------------------------------------------------------------
def make_config(input_shape, n_classes, conv0_kernel_hwidth, conv1_kernel_hwidth,
                conv0_output_channels, conv1_output_channels,
                linear0_size, linear1_size):
    H, W = input_shape
    k0 = 2 * conv0_kernel_hwidth + 1
    k1 = 2 * conv1_kernel_hwidth + 1
    C0, C1 = conv0_output_channels, conv1_output_channels
    H0, W0 = H - k0 + 1, W - k0 + 1            # conv0 output
    P0h, P0w = H0 // 2, W0 // 2                # after 2x2 max-pool
    H1, W1 = P0h - k1 + 1, P0w - k1 + 1        # conv1 output
    P1h, P1w = H1 // 2, W1 // 2                # after 2x2 max-pool
    cfg = dict(H=H, W=W, k0=k0, k1=k1, C0=C0, C1=C1, H0=H0, W0=W0,
               P0h=P0h, P0w=P0w, P1h=P1h, P1w=P1w, P0hh=P0h // 2,
               fc0_in=P1h * P1w * C1, L0=linear0_size, L1=linear1_size,
               NC=n_classes)
    # Constraints of this fused kernel (hold for the 28x28 module defaults).
    assert P1h >= 1 and P1w >= 1
    assert H0 % 4 == 0, "conv0 output height must be a multiple of 4 (row-phase split)"
    assert P0h % 2 == 0
    assert k1 // 2 + P1h <= cfg["P0hh"]
    return cfg


# ---------------------------------------------------------------------------
# Weight transforms (batch independent, run once per call in plain XLA).
# ---------------------------------------------------------------------------
def _build_kernel_operands(params, cfg, matmul_dtype):
    k0, k1 = cfg["k0"], cfg["k1"]
    W, C0, C1 = cfg["W"], cfg["C0"], cfg["C1"]
    P0w, P1w, P1h = cfg["P0w"], cfg["P1w"], cfg["P1h"]
    L0 = cfg["L0"]
    f32 = jnp.float32
    md = matmul_dtype

    w0 = params["w_c0"].astype(f32)             # (k0, k0, 1, C0)   HWIO
    w1 = params["w_c1"].astype(f32)             # (k1, k1, C0, C1)  HWIO

    # T0[dx, kh*W + j, px*C0+co] = w0[kh, j-(2*px+dx), 0, co]  (when 0 <= kw < k0)
    # kh is folded into the contraction dimension (K = k0*W).
    oh0 = (jnp.arange(W)[None, :, None, None] ==
           (2 * jnp.arange(P0w)[None, None, None, :]
            + jnp.arange(2)[None, None, :, None]
            + jnp.arange(k0)[:, None, None, None])).astype(f32)      # (k0, W, 2, P0w)
    T0 = jnp.einsum("hkc,kjdp->dhjpc", w0[:, :, 0, :], oh0)
    T0 = T0.reshape(2, k0 * W, P0w * C0).astype(md)

    # T1[dx, kh, px*C0+ci, rx*C1+co] = w1[kh, px-(2*rx+dx), ci, co]  (0 <= kw < k1)
    oh1 = (jnp.arange(P0w)[None, :, None, None] ==
           (2 * jnp.arange(P1w)[None, None, None, :]
            + jnp.arange(2)[None, None, :, None]
            + jnp.arange(k1)[:, None, None, None])).astype(f32)      # (k1, P0w, 2, P1w)
    T1 = jnp.einsum("hkic,kpdr->dhpirc", w1, oh1)
    T1 = T1.reshape(2, k1, P0w * C0, P1w * C1).astype(md)

    # Conv biases tiled to the (x, channel) lane layout (kept f32: elementwise path).
    b0t = jnp.tile(params["b_c0"].astype(f32), P0w).reshape(1, P0w * C0)
    b1t = jnp.tile(params["b_c1"].astype(f32), P1w).reshape(1, P1w * C1)

    # Fold PyTorch's NCHW .view flatten into fc0: rows reordered (c,ry,rx)->(ry,rx,c).
    wf0 = params["w_f0"].astype(f32)             # rows = c*P1h*P1w + ry*P1w + rx
    wf0r = (wf0.reshape(C1, P1h, P1w, L0).transpose(1, 2, 0, 3)
            .reshape(P1h, P1w * C1, L0).astype(md))

    return (T0, b0t, T1, b1t, wf0r,
            params["b_f0"].astype(f32).reshape(1, -1),
            params["w_f1"].astype(md),
            params["b_f1"].astype(f32).reshape(1, -1),
            params["w_f2"].astype(md),
            params["b_f2"].astype(f32).reshape(1, -1))


# ---------------------------------------------------------------------------
# The fused Pallas kernel (one grid step = one block of B images, all on-chip).
# ---------------------------------------------------------------------------
def _make_fused_kernel(cfg, B, matmul_dtype):
    k0, k1 = cfg["k0"], cfg["k1"]
    P0hh, P1h = cfg["P0hh"], cfg["P1h"]
    P0wC0 = cfg["P0w"] * cfg["C0"]
    P1wC1 = cfg["P1w"] * cfg["C1"]
    kW = k0 * cfg["W"]
    f32 = jnp.float32
    md = matmul_dtype

    def kernel(xw_ref, t0_ref, b0_ref, t1_ref, b1_ref,
               wf0_ref, bf0_ref, wf1_ref, bf1_ref, wf2_ref, bf2_ref,
               out_ref, y0_ref):
        # ---- Stage 0: conv0 -> (+bias, ReLU) -> 2x2 max-pool --------------------
        # xw_ref[p, r, b, kh*W+j] = x[b, 4*r + p + kh, j]; kh is folded into K, so
        # each (q, dy, dx) is ONE MXU dot with K = k0*W.  Pooled rows are produced
        # split by parity q and written to VMEM scratch (rows-outer, batch-inner).
        for q in (0, 1):                       # parity of the pooled output row
            pooled = None
            for dy in (0, 1):                  # pool-window y offset -> LHS phase
                lhs = xw_ref[2 * q + dy].reshape(P0hh * B, kW)   # free leading merge
                for dx in (0, 1):              # pool-window x offset -> RHS matrix
                    a = jnp.dot(lhs, t0_ref[dx], preferred_element_type=f32)
                    pooled = a if pooled is None else jnp.maximum(pooled, a)
            # Bias + ReLU once, after the 4-way max (exactly commutes); keep f32.
            y0 = jnp.maximum(pooled + b0_ref[...], 0.0)
            y0_ref[q] = y0.reshape(P0hh, B, P0wC0)

        # ---- Stage 1: conv1 -> (+bias, ReLU) -> 2x2 max-pool --------------------
        pooled1 = None
        for dy in (0, 1):
            acc = [None, None]
            for kh in range(k1):
                u = dy + kh
                lhs = y0_ref[u % 2, u // 2: u // 2 + P1h].reshape(P1h * B, P0wC0)
                lhs = lhs.astype(md)           # cast only at the dot input
                for dx in (0, 1):
                    t = jnp.dot(lhs, t1_ref[dx, kh], preferred_element_type=f32)
                    acc[dx] = t if acc[dx] is None else acc[dx] + t
            for dx in (0, 1):
                pooled1 = acc[dx] if pooled1 is None else jnp.maximum(pooled1, acc[dx])
        y1 = jnp.maximum(pooled1 + b1_ref[...], 0.0).reshape(P1h, B, P1wC1)

        # ---- MLP: fc0 -> ReLU -> fc1 -> ReLU -> fc2 -----------------------------
        # NCHW flatten is folded into wf0_ref's layout; accumulate over rows ry so
        # no in-kernel flatten/transpose is needed; all GEMMs have M = B.
        h = None
        for ry in range(P1h):
            t = jnp.dot(y1[ry].astype(md), wf0_ref[ry], preferred_element_type=f32)
            h = t if h is None else h + t
        h = jnp.maximum(h + bf0_ref[...], 0.0)
        h = jnp.maximum(jnp.dot(h.astype(md), wf1_ref[...],
                                preferred_element_type=f32) + bf1_ref[...], 0.0)
        out_ref[...] = (jnp.dot(h.astype(md), wf2_ref[...],
                                preferred_element_type=f32) + bf2_ref[...])

    return kernel


# ---------------------------------------------------------------------------
# Forward pass (single pallas_call) and pure-JAX reference.
# ---------------------------------------------------------------------------
def experimental_cnn_forward(x_nchw, params, *, block_batch=128,
                             matmul_dtype=jnp.float32):
    N, Cin, H, W = x_nchw.shape
    assert Cin == 1, "ExperimentalCNN takes single-channel input"
    cfg = make_config(
        input_shape=(H, W),
        n_classes=params["w_f2"].shape[1],
        conv0_kernel_hwidth=(params["w_c0"].shape[0] - 1) // 2,
        conv1_kernel_hwidth=(params["w_c1"].shape[0] - 1) // 2,
        conv0_output_channels=params["w_c0"].shape[-1],
        conv1_output_channels=params["w_c1"].shape[-1],
        linear0_size=params["w_f0"].shape[1],
        linear1_size=params["w_f1"].shape[1])
    k0, H0, P0hh, NC = cfg["k0"], cfg["H0"], cfg["P0hh"], cfg["NC"]
    kW = k0 * W

    # Per-step image block: multiple of 16 (free in-kernel leading-dim merges for
    # both f32 and bf16) and capped so small batches still give >=2 grid steps
    # (keeps both v7x TensorCores busy with dimension_semantics=("parallel",)).
    B = max(16, min(_round_up(block_batch, 16), _round_up(pl.cdiv(N, 2), 16)))
    Npad = _round_up(N, B)

    x = x_nchw.astype(jnp.float32).reshape(N, H, W)
    if Npad != N:
        x = jnp.pad(x, ((0, Npad - N), (0, 0), (0, 0)))
    x = x.astype(matmul_dtype)

    # Host-side row-window expansion (slices + concat, no gathers):
    #   xw[n, s, kh*W + j] = x[n, s + kh, j],  s in [0, H0)
    xw = jnp.concatenate([x[:, kh:kh + H0, :] for kh in range(k0)], axis=-1)
    # Reorder to (4, P0hh, Npad, kW) with s = 4*jrow + p  (rows-outer, batch-inner).
    xw = (jnp.transpose(xw, (1, 0, 2))
          .reshape(P0hh, 4, Npad, kW)
          .transpose(1, 0, 2, 3))

    T0, b0t, T1, b1t, wf0r, bf0, wf1, bf1, wf2, bf2 = \
        _build_kernel_operands(params, cfg, matmul_dtype)

    def full_spec(arr):
        n = arr.ndim
        return pl.BlockSpec(arr.shape, lambda i: (0,) * n)

    grid_spec = pltpu.PrefetchScalarGridSpec(
        num_scalar_prefetch=0,
        grid=(Npad // B,),
        in_specs=[
            pl.BlockSpec((4, P0hh, B, kW), lambda i: (0, 0, i, 0)),  # B images/step
            full_spec(T0), full_spec(b0t),
            full_spec(T1), full_spec(b1t),
            full_spec(wf0r), full_spec(bf0),
            full_spec(wf1), full_spec(bf1),
            full_spec(wf2), full_spec(bf2),
        ],
        out_specs=pl.BlockSpec((B, NC), lambda i: (i, 0)),
        scratch_shapes=[pltpu.VMEM((2, P0hh, B, cfg["P0w"] * cfg["C0"]),
                                   jnp.float32)],
    )

    out = pl.pallas_call(
        _make_fused_kernel(cfg, B, matmul_dtype),
        out_shape=jax.ShapeDtypeStruct((Npad, NC), jnp.float32),
        grid_spec=grid_spec,
        compiler_params=pltpu.CompilerParams(
            dimension_semantics=("parallel",),     # shard blocks across v7x's 2 TCs
            vmem_limit_bytes=32 * 1024 * 1024),    # raise v5e's 16MiB default
    )(xw, T0, b0t, T1, b1t, wf0r, bf0, wf1, bf1, wf2, bf2)
    return out[:N]


def reference_forward(x_nchw, params):
    p = params
    x = jnp.transpose(x_nchw.astype(jnp.float32), (0, 2, 3, 1))

    def conv(xx, w):
        dn = jax.lax.conv_dimension_numbers(xx.shape, w.shape, ("NHWC", "HWIO", "NHWC"))
        return jax.lax.conv_general_dilated(xx, w, (1, 1), "VALID", dimension_numbers=dn)

    def pool(xx):
        return jax.lax.reduce_window(xx, -jnp.inf, jax.lax.max,
                                     (1, 2, 2, 1), (1, 2, 2, 1), "VALID")

    y = pool(jnp.maximum(conv(x, p["w_c0"]) + p["b_c0"], 0.0))
    y = pool(jnp.maximum(conv(y, p["w_c1"]) + p["b_c1"], 0.0))
    y = jnp.transpose(y, (0, 3, 1, 2)).reshape(y.shape[0], -1)       # NCHW flatten
    y = jnp.maximum(y @ p["w_f0"] + p["b_f0"], 0.0)
    y = jnp.maximum(y @ p["w_f1"] + p["b_f1"], 0.0)
    return y @ p["w_f2"] + p["b_f2"]


# ---------------------------------------------------------------------------
# Parameters (deterministic, PyTorch-default-style uniform init)
# ---------------------------------------------------------------------------
def init_params(key, input_shape=(28, 28), n_classes=10,
                conv0_kernel_hwidth=4, conv1_kernel_hwidth=2,
                conv0_output_channels=16, conv1_output_channels=16,
                linear0_size=256, linear1_size=128):
    k0 = conv0_kernel_hwidth * 2 + 1            # 9
    k1 = conv1_kernel_hwidth * 2 + 1            # 5
    h, w = input_shape
    h0, w0 = (h - 2 * conv0_kernel_hwidth) // 2, (w - 2 * conv0_kernel_hwidth) // 2
    h1, w1 = (h0 - 2 * conv1_kernel_hwidth) // 2, (w0 - 2 * conv1_kernel_hwidth) // 2
    fc0_in = h1 * w1 * conv1_output_channels    # 3*3*16 = 144 for 28x28

    ks = jax.random.split(key, 10)

    def u(k_, shape, fan_in):
        bound = 1.0 / np.sqrt(fan_in)
        return jax.random.uniform(k_, shape, jnp.float32, -bound, bound)

    return dict(
        w_c0=u(ks[0], (k0, k0, 1, conv0_output_channels), k0 * k0 * 1),
        b_c0=u(ks[1], (conv0_output_channels,), k0 * k0 * 1),
        w_c1=u(ks[2], (k1, k1, conv0_output_channels, conv1_output_channels),
               k1 * k1 * conv0_output_channels),
        b_c1=u(ks[3], (conv1_output_channels,), k1 * k1 * conv0_output_channels),
        w_f0=u(ks[4], (fc0_in, linear0_size), fc0_in),
        b_f0=u(ks[5], (linear0_size,), fc0_in),
        w_f1=u(ks[6], (linear0_size, linear1_size), linear0_size),
        b_f1=u(ks[7], (linear1_size,), linear0_size),
        w_f2=u(ks[8], (linear1_size, n_classes), linear1_size),
        b_f2=u(ks[9], (n_classes,), linear1_size),
    )


if __name__ == "__main__":
    key = jax.random.PRNGKey(0)
    pkey, xkey = jax.random.split(key)

    params = init_params(pkey, input_shape=(28, 28), n_classes=10)
    x = jax.random.normal(xkey, (32, 1, 28, 28), jnp.float32)   # NCHW, like PyTorch

    ref = jax.block_until_ready(reference_forward(x, params))

    # f32 path: exact formulation, tight tolerance (small block -> 2 grid steps).
    fwd = jax.jit(lambda xx, pp: experimental_cnn_forward(xx, pp, block_batch=16))
    out = jax.block_until_ready(fwd(x, params))
    assert out.shape == (32, 10), out.shape
    np.testing.assert_allclose(np.asarray(out), np.asarray(ref), rtol=1e-4, atol=1e-4)

    # bf16 matmul-operand path (v6e/v7x fast path; elementwise stays f32) — loose
    # sanity tolerance only, it is not bit-comparable to the f32 reference.
    fwd_bf16 = jax.jit(lambda xx, pp: experimental_cnn_forward(
        xx, pp, block_batch=16, matmul_dtype=jnp.bfloat16))
    out_bf16 = jax.block_until_ready(fwd_bf16(x, params))
    np.testing.assert_allclose(np.asarray(out_bf16), np.asarray(ref),
                               rtol=0.1, atol=0.15)

    print("KERNEL_OK")
</pallas_src>

<mosaic_0001>
module attributes {stable_mosaic.version = 11 : i64} {
  func.func @kernel(%arg0: i32, %arg1: memref<4x5x16x252xf32, #tpu.memory_space<vmem>>, %arg2: memref<2x252x160xf32, #tpu.memory_space<vmem>>, %arg3: memref<1x160xf32, #tpu.memory_space<vmem>>, %arg4: memref<2x5x160x48xf32, #tpu.memory_space<vmem>>, %arg5: memref<1x48xf32, #tpu.memory_space<vmem>>, %arg6: memref<3x48x256xf32, #tpu.memory_space<vmem>>, %arg7: memref<1x256xf32, #tpu.memory_space<vmem>>, %arg8: memref<256x128xf32, #tpu.memory_space<vmem>>, %arg9: memref<1x128xf32, #tpu.memory_space<vmem>>, %arg10: memref<128x10xf32, #tpu.memory_space<vmem>>, %arg11: memref<1x10xf32, #tpu.memory_space<vmem>>, %arg12: memref<16x10xf32, #tpu.memory_space<vmem>>, %arg13: memref<2x5x16x160xf32, #tpu.memory_space<vmem>>) attributes {dimension_semantics = [#tpu.dimension_semantics<parallel>], iteration_bounds = array<i64: 2>, scalar_prefetch = 0 : i64, scratch_operands = 1 : i64, tpu.core_type = #tpu.core_type<tc>, window_params = [{transform_indices = @transform_0, window_bounds = array<i64: 4, 5, 16, 252>}, {pipeline_mode = #tpu.pipeline_mode<synchronous>, transform_indices = @transform_1, window_bounds = array<i64: 2, 252, 160>}, {pipeline_mode = #tpu.pipeline_mode<synchronous>, transform_indices = @transform_2, window_bounds = array<i64: 1, 160>}, {pipeline_mode = #tpu.pipeline_mode<synchronous>, transform_indices = @transform_3, window_bounds = array<i64: 2, 5, 160, 48>}, {pipeline_mode = #tpu.pipeline_mode<synchronous>, transform_indices = @transform_4, window_bounds = array<i64: 1, 48>}, {pipeline_mode = #tpu.pipeline_mode<synchronous>, transform_indices = @transform_5, window_bounds = array<i64: 3, 48, 256>}, {pipeline_mode = #tpu.pipeline_mode<synchronous>, transform_indices = @transform_6, window_bounds = array<i64: 1, 256>}, {pipeline_mode = #tpu.pipeline_mode<synchronous>, transform_indices = @transform_7, window_bounds = array<i64: 256, 128>}, {pipeline_mode = #tpu.pipeline_mode<synchronous>, transform_indices = @transform_8, window_bounds = array<i64: 1, 128>}, {pipeline_mode = #tpu.pipeline_mode<synchronous>, transform_indices = @transform_9, window_bounds = array<i64: 128, 10>}, {pipeline_mode = #tpu.pipeline_mode<synchronous>, transform_indices = @transform_10, window_bounds = array<i64: 1, 10>}, {transform_indices = @transform_11, window_bounds = array<i64: 16, 10>}]} {
    %c0 = arith.constant 0 : index
    %c0_0 = arith.constant 0 : index
    %c0_1 = arith.constant 0 : index
    %c0_2 = arith.constant 0 : index
    %0 = vector.load %arg1[%c0, %c0_0, %c0_1, %c0_2] : memref<4x5x16x252xf32, #tpu.memory_space<vmem>>, vector<1x5x16x252xf32>
    %1 = vector.shape_cast %0 : vector<1x5x16x252xf32> to vector<5x16x252xf32>
    %2 = vector.shape_cast %1 : vector<5x16x252xf32> to vector<80x252xf32>
    %c0_3 = arith.constant 0 : index
    %c0_4 = arith.constant 0 : index
    %c0_5 = arith.constant 0 : index
    %3 = vector.load %arg2[%c0_3, %c0_4, %c0_5] : memref<2x252x160xf32, #tpu.memory_space<vmem>>, vector<1x252x160xf32>
    %4 = vector.shape_cast %3 : vector<1x252x160xf32> to vector<252x160xf32>
    %cst = arith.constant dense<0.000000e+00> : vector<80x160xf32>
    %5 = tpu.matmul %2, %4, %cst {dimension_numbers = #tpu.dot_dimension_numbers<[1], [0], [0], [1], [0, 0, 1, 1], [], []>} : vector<80x252xf32>, vector<252x160xf32>, vector<80x160xf32> -> vector<80x160xf32>
    %c1 = arith.constant 1 : index
    %c0_6 = arith.constant 0 : index
    %c0_7 = arith.constant 0 : index
    %6 = vector.load %arg2[%c1, %c0_6, %c0_7] : memref<2x252x160xf32, #tpu.memory_space<vmem>>, vector<1x252x160xf32>
    %7 = vector.shape_cast %6 : vector<1x252x160xf32> to vector<252x160xf32>
    %cst_8 = arith.constant dense<0.000000e+00> : vector<80x160xf32>
    %8 = tpu.matmul %2, %7, %cst_8 {dimension_numbers = #tpu.dot_dimension_numbers<[1], [0], [0], [1], [0, 0, 1, 1], [], []>} : vector<80x252xf32>, vector<252x160xf32>, vector<80x160xf32> -> vector<80x160xf32>
    %9 = arith.maximumf %5, %8 : vector<80x160xf32>
    %c1_9 = arith.constant 1 : index
    %c0_10 = arith.constant 0 : index
    %c0_11 = arith.constant 0 : index
    %c0_12 = arith.constant 0 : index
    %10 = vector.load %arg1[%c1_9, %c0_10, %c0_11, %c0_12] : memref<4x5x16x252xf32, #tpu.memory_space<vmem>>, vector<1x5x16x252xf32>
    %11 = vector.shape_cast %10 : vector<1x5x16x252xf32> to vector<5x16x252xf32>
    %12 = vector.shape_cast %11 : vector<5x16x252xf32> to vector<80x252xf32>
    %c0_13 = arith.constant 0 : index
    %c0_14 = arith.constant 0 : index
    %c0_15 = arith.constant 0 : index
    %13 = vector.load %arg2[%c0_13, %c0_14, %c0_15] : memref<2x252x160xf32, #tpu.memory_space<vmem>>, vector<1x252x160xf32>
    %14 = vector.shape_cast %13 : vector<1x252x160xf32> to vector<252x160xf32>
    %cst_16 = arith.constant dense<0.000000e+00> : vector<80x160xf32>
    %15 = tpu.matmul %12, %14, %cst_16 {dimension_numbers = #tpu.dot_dimension_numbers<[1], [0], [0], [1], [0, 0, 1, 1], [], []>} : vector<80x252xf32>, vector<252x160xf32>, vector<80x160xf32> -> vector<80x160xf32>
    %16 = arith.maximumf %9, %15 : vector<80x160xf32>
    %c1_17 = arith.constant 1 : index
    %c0_18 = arith.constant 0 : index
    %c0_19 = arith.constant 0 : index
    %17 = vector.load %arg2[%c1_17, %c0_18, %c0_19] : memref<2x252x160xf32, #tpu.memory_space<vmem>>, vector<1x252x160xf32>
    %18 = vector.shape_cast %17 : vector<1x252x160xf32> to vector<252x160xf32>
    %cst_20 = arith.constant dense<0.000000e+00> : vector<80x160xf32>
    %19 = tpu.matmul %12, %18, %cst_20 {dimension_numbers = #tpu.dot_dimension_numbers<[1], [0], [0], [1], [0, 0, 1, 1], [], []>} : vector<80x252xf32>, vector<252x160xf32>, vector<80x160xf32> -> vector<80x160xf32>
    %20 = arith.maximumf %16, %19 : vector<80x160xf32>
    %c0_21 = arith.constant 0 : index
    %c0_22 = arith.constant 0 : index
    %21 = vector.load %arg3[%c0_21, %c0_22] : memref<1x160xf32, #tpu.memory_space<vmem>>, vector<1x160xf32>
    %22 = vector.broadcast %21 : vector<1x160xf32> to vector<80x160xf32>
    %23 = arith.addf %20, %22 : vector<80x160xf32>
    %cst_23 = arith.constant 0.000000e+00 : f32
    %24 = vector.broadcast %cst_23 : f32 to vector<80x160xf32>
    %25 = arith.maximumf %23, %24 : vector<80x160xf32>
    %26 = vector.shape_cast %25 : vector<80x160xf32> to vector<5x16x160xf32>
    %c0_24 = arith.constant 0 : index
    %c0_25 = arith.constant 0 : index
    %c0_26 = arith.constant 0 : index
    %c0_27 = arith.constant 0 : index
    %27 = vector.load %arg13[%c0_24, %c0_25, %c0_26, %c0_27] : memref<2x5x16x160xf32, #tpu.memory_space<vmem>>, vector<1x5x16x160xf32>
    %28 = vector.shape_cast %27 : vector<1x5x16x160xf32> to vector<5x16x160xf32>
    %29 = vector.shape_cast %26 : vector<5x16x160xf32> to vector<1x5x16x160xf32>
    tpu.vector_store %arg13[%c0_24, %c0_25, %c0_26, %c0_27], %29 {strides = array<i32>} : memref<2x5x16x160xf32, #tpu.memory_space<vmem>>, vector<1x5x16x160xf32>,
    %c2 = arith.constant 2 : index
    %c0_28 = arith.constant 0 : index
    %c0_29 = arith.constant 0 : index
    %c0_30 = arith.constant 0 : index
    %30 = vector.load %arg1[%c2, %c0_28, %c0_29, %c0_30] : memref<4x5x16x252xf32, #tpu.memory_space<vmem>>, vector<1x5x16x252xf32>
    %31 = vector.shape_cast %30 : vector<1x5x16x252xf32> to vector<5x16x252xf32>
    %32 = vector.shape_cast %31 : vector<5x16x252xf32> to vector<80x252xf32>
    %c0_31 = arith.constant 0 : index
    %c0_32 = arith.constant 0 : index
    %c0_33 = arith.constant 0 : index
    %33 = vector.load %arg2[%c0_31, %c0_32, %c0_33] : memref<2x252x160xf32, #tpu.memory_space<vmem>>, vector<1x252x160xf32>
    %34 = vector.shape_cast %33 : vector<1x252x160xf32> to vector<252x160xf32>
    %cst_34 = arith.constant dense<0.000000e+00> : vector<80x160xf32>
    %35 = tpu.matmul %32, %34, %cst_34 {dimension_numbers = #tpu.dot_dimension_numbers<[1], [0], [0], [1], [0, 0, 1, 1], [], []>} : vector<80x252xf32>, vector<252x160xf32>, vector<80x160xf32> -> vector<80x160xf32>
    %c1_35 = arith.constant 1 : index
    %c0_36 = arith.constant 0 : index
    %c0_37 = arith.constant 0 : index
    %36 = vector.load %arg2[%c1_35, %c0_36, %c0_37] : memref<2x252x160xf32, #tpu.memory_space<vmem>>, vector<1x252x160xf32>
    %37 = vector.shape_cast %36 : vector<1x252x160xf32> to vector<252x160xf32>
    %cst_38 = arith.constant dense<0.000000e+00> : vector<80x160xf32>
    %38 = tpu.matmul %32, %37, %cst_38 {dimension_numbers = #tpu.dot_dimension_numbers<[1], [0], [0], [1], [0, 0, 1, 1], [], []>} : vector<80x252xf32>, vector<252x160xf32>, vector<80x160xf32> -> vector<80x160xf32>
    %39 = arith.maximumf %35, %38 : vector<80x160xf32>
    %c3 = arith.constant 3 : index
    %c0_39 = arith.constant 0 : index
    %c0_40 = arith.constant 0 : index
    %c0_41 = arith.constant 0 : index
    %40 = vector.load %arg1[%c3, %c0_39, %c0_40, %c0_41] : memref<4x5x16x252xf32, #tpu.memory_space<vmem>>, vector<1x5x16x252xf32>
    %41 = vector.shape_cast %40 : vector<1x5x16x252xf32> to vector<5x16x252xf32>
    %42 = vector.shape_cast %41 : vector<5x16x252xf32> to vector<80x252xf32>
    %c0_42 = arith.constant 0 : index
    %c0_43 = arith.constant 0 : index
    %c0_44 = arith.constant 0 : index
    %43 = vector.load %arg2[%c0_42, %c0_43, %c0_44] : memref<2x252x160xf32, #tpu.memory_space<vmem>>, vector<1x252x160xf32>
    %44 = vector.shape_cast %43 : vector<1x252x160xf32> to vector<252x160xf32>
    %cst_45 = arith.constant dense<0.000000e+00> : vector<80x160xf32>
    %45 = tpu.matmul %42, %44, %cst_45 {dimension_numbers = #tpu.dot_dimension_numbers<[1], [0], [0], [1], [0, 0, 1, 1], [], []>} : vector<80x252xf32>, vector<252x160xf32>, vector<80x160xf32> -> vector<80x160xf32>
    %46 = arith.maximumf %39, %45 : vector<80x160xf32>
    %c1_46 = arith.constant 1 : index
    %c0_47 = arith.constant 0 : index
    %c0_48 = arith.constant 0 : index
    %47 = vector.load %arg2[%c1_46, %c0_47, %c0_48] : memref<2x252x160xf32, #tpu.memory_space<vmem>>, vector<1x252x160xf32>
    %48 = vector.shape_cast %47 : vector<1x252x160xf32> to vector<252x160xf32>
    %cst_49 = arith.constant dense<0.000000e+00> : vector<80x160xf32>
    %49 = tpu.matmul %42, %48, %cst_49 {dimension_numbers = #tpu.dot_dimension_numbers<[1], [0], [0], [1], [0, 0, 1, 1], [], []>} : vector<80x252xf32>, vector<252x160xf32>, vector<80x160xf32> -> vector<80x160xf32>
    %50 = arith.maximumf %46, %49 : vector<80x160xf32>
    %c0_50 = arith.constant 0 : index
    %c0_51 = arith.constant 0 : index
    %51 = vector.load %arg3[%c0_50, %c0_51] : memref<1x160xf32, #tpu.memory_space<vmem>>, vector<1x160xf32>
    %52 = vector.broadcast %51 : vector<1x160xf32> to vector<80x160xf32>
    %53 = arith.addf %50, %52 : vector<80x160xf32>
    %cst_52 = arith.constant 0.000000e+00 : f32
    %54 = vector.broadcast %cst_52 : f32 to vector<80x160xf32>
    %55 = arith.maximumf %53, %54 : vector<80x160xf32>
    %56 = vector.shape_cast %55 : vector<80x160xf32> to vector<5x16x160xf32>
    %c1_53 = arith.constant 1 : index
    %c0_54 = arith.constant 0 : index
    %c0_55 = arith.constant 0 : index
    %c0_56 = arith.constant 0 : index
    %57 = vector.load %arg13[%c1_53, %c0_54, %c0_55, %c0_56] : memref<2x5x16x160xf32, #tpu.memory_space<vmem>>, vector<1x5x16x160xf32>
    %58 = vector.shape_cast %57 : vector<1x5x16x160xf32> to vector<5x16x160xf32>
    %59 = vector.shape_cast %56 : vector<5x16x160xf32> to vector<1x5x16x160xf32>
    tpu.vector_store %arg13[%c1_53, %c0_54, %c0_55, %c0_56], %59 {strides = array<i32>} : memref<2x5x16x160xf32, #tpu.memory_space<vmem>>, vector<1x5x16x160xf32>,
    %c0_57 = arith.constant 0 : index
    %c0_58 = arith.constant 0 : index
    %c0_59 = arith.constant 0 : index
    %c0_60 = arith.constant 0 : index
    %60 = vector.load %arg13[%c0_57, %c0_58, %c0_59, %c0_60] : memref<2x5x16x160xf32, #tpu.memory_space<vmem>>, vector<1x3x16x160xf32>
    %61 = vector.shape_cast %60 : vector<1x3x16x160xf32> to vector<3x16x160xf32>
    %62 = vector.shape_cast %61 : vector<3x16x160xf32> to vector<48x160xf32>
    %c0_61 = arith.constant 0 : index
    %c0_62 = arith.constant 0 : index
    %c0_63 = arith.constant 0 : index
    %c0_64 = arith.constant 0 : index
    %63 = vector.load %arg4[%c0_61, %c0_62, %c0_63, %c0_64] : memref<2x5x160x48xf32, #tpu.memory_space<vmem>>, vector<1x1x160x48xf32>
    %64 = vector.shape_cast %63 : vector<1x1x160x48xf32> to vector<160x48xf32>
    %cst_65 = arith.constant dense<0.000000e+00> : vector<48x48xf32>
    %65 = tpu.matmul %62, %64, %cst_65 {dimension_numbers = #tpu.dot_dimension_numbers<[1], [0], [0], [1], [0, 0, 1, 1], [], []>} : vector<48x160xf32>, vector<160x48xf32>, vector<48x48xf32> -> vector<48x48xf32>
    %c1_66 = arith.constant 1 : index
    %c0_67 = arith.constant 0 : index
    %c0_68 = arith.constant 0 : index
    %c0_69 = arith.constant 0 : index
    %66 = vector.load %arg4[%c1_66, %c0_67, %c0_68, %c0_69] : memref<2x5x160x48xf32, #tpu.memory_space<vmem>>, vector<1x1x160x48xf32>
    %67 = vector.shape_cast %66 : vector<1x1x160x48xf32> to vector<160x48xf32>
    %cst_70 = arith.constant dense<0.000000e+00> : vector<48x48xf32>
    %68 = tpu.matmul %62, %67, %cst_70 {dimension_numbers = #tpu.dot_dimension_numbers<[1], [0], [0], [1], [0, 0, 1, 1], [], []>} : vector<48x160xf32>, vector<160x48xf32>, vector<48x48xf32> -> vector<48x48xf32>
    %c1_71 = arith.constant 1 : index
    %c0_72 = arith.constant 0 : index
    %c0_73 = arith.constant 0 : index
    %c0_74 = arith.constant 0 : index
    %69 = vector.load %arg13[%c1_71, %c0_72, %c0_73, %c0_74] : memref<2x5x16x160xf32, #tpu.memory_space<vmem>>, vector<1x3x16x160xf32>
    %70 = vector.shape_cast %69 : vector<1x3x16x160xf32> to vector<3x16x160xf32>
    %71 = vector.shape_cast %70 : vector<3x16x160xf32> to vector<48x160xf32>
    %c0_75 = arith.constant 0 : index
    %c1_76 = arith.constant 1 : index
    %c0_77 = arith.constant 0 : index
    %c0_78 = arith.constant 0 : index
    %72 = vector.load %arg4[%c0_75, %c1_76, %c0_77, %c0_78] : memref<2x5x160x48xf32, #tpu.memory_space<vmem>>, vector<1x1x160x48xf32>
    %73 = vector.shape_cast %72 : vector<1x1x160x48xf32> to vector<160x48xf32>
    %cst_79 = arith.constant dense<0.000000e+00> : vector<48x48xf32>
    %74 = tpu.matmul %71, %73, %cst_79 {dimension_numbers = #tpu.dot_dimension_numbers<[1], [0], [0], [1], [0, 0, 1, 1], [], []>} : vector<48x160xf32>, vector<160x48xf32>, vector<48x48xf32> -> vector<48x48xf32>
    %75 = arith.addf %65, %74 : vector<48x48xf32>
    %c1_80 = arith.constant 1 : index
    %c1_81 = arith.constant 1 : index
    %c0_82 = arith.constant 0 : index
    %c0_83 = arith.constant 0 : index
    %76 = vector.load %arg4[%c1_80, %c1_81, %c0_82, %c0_83] : memref<2x5x160x48xf32, #tpu.memory_space<vmem>>, vector<1x1x160x48xf32>
    %77 = vector.shape_cast %76 : vector<1x1x160x48xf32> to vector<160x48xf32>
    %cst_84 = arith.constant dense<0.000000e+00> : vector<48x48xf32>
    %78 = tpu.matmul %71, %77, %cst_84 {dimension_numbers = #tpu.dot_dimension_numbers<[1], [0], [0], [1], [0, 0, 1, 1], [], []>} : vector<48x160xf32>, vector<160x48xf32>, vector<48x48xf32> -> vector<48x48xf32>
    %79 = arith.addf %68, %78 : vector<48x48xf32>
    %c0_85 = arith.constant 0 : index
    %c1_86 = arith.constant 1 : index
    %c0_87 = arith.constant 0 : index
    %c0_88 = arith.constant 0 : index
    %80 = vector.load %arg13[%c0_85, %c1_86, %c0_87, %c0_88] : memref<2x5x16x160xf32, #tpu.memory_space<vmem>>, vector<1x3x16x160xf32>
    %81 = vector.shape_cast %80 : vector<1x3x16x160xf32> to vector<3x16x160xf32>
    %82 = vector.shape_cast %81 : vector<3x16x160xf32> to vector<48x160xf32>
    %c0_89 = arith.constant 0 : index
    %c2_90 = arith.constant 2 : index
    %c0_91 = arith.constant 0 : index
    %c0_92 = arith.constant 0 : index
    %83 = vector.load %arg4[%c0_89, %c2_90, %c0_91, %c0_92] : memref<2x5x160x48xf32, #tpu.memory_space<vmem>>, vector<1x1x160x48xf32>
    %84 = vector.shape_cast %83 : vector<1x1x160x48xf32> to vector<160x48xf32>
    %cst_93 = arith.constant dense<0.000000e+00> : vector<48x48xf32>
    %85 = tpu.matmul %82, %84, %cst_93 {dimension_numbers = #tpu.dot_dimension_numbers<[1], [0], [0], [1], [0, 0, 1, 1], [], []>} : vector<48x160xf32>, vector<160x48xf32>, vector<48x48xf32> -> vector<48x48xf32>
    %86 = arith.addf %75, %85 : vector<48x48xf32>
    %c1_94 = arith.constant 1 : index
    %c2_95 = arith.constant 2 : index
    %c0_96 = arith.constant 0 : index
    %c0_97 = arith.constant 0 : index
    %87 = vector.load %arg4[%c1_94, %c2_95, %c0_96, %c0_97] : memref<2x5x160x48xf32, #tpu.memory_space<vmem>>, vector<1x1x160x48xf32>
    %88 = vector.shape_cast %87 : vector<1x1x160x48xf32> to vector<160x48xf32>
    %cst_98 = arith.constant dense<0.000000e+00> : vector<48x48xf32>
    %89 = tpu.matmul %82, %88, %cst_98 {dimension_numbers = #tpu.dot_dimension_numbers<[1], [0], [0], [1], [0, 0, 1, 1], [], []>} : vector<48x160xf32>, vector<160x48xf32>, vector<48x48xf32> -> vector<48x48xf32>
    %90 = arith.addf %79, %89 : vector<48x48xf32>
    %c1_99 = arith.constant 1 : index
    %c1_100 = arith.constant 1 : index
    %c0_101 = arith.constant 0 : index
    %c0_102 = arith.constant 0 : index
    %91 = vector.load %arg13[%c1_99, %c1_100, %c0_101, %c0_102] : memref<2x5x16x160xf32, #tpu.memory_space<vmem>>, vector<1x3x16x160xf32>
    %92 = vector.shape_cast %91 : vector<1x3x16x160xf32> to vector<3x16x160xf32>
    %93 = vector.shape_cast %92 : vector<3x16x160xf32> to vector<48x160xf32>
    %c0_103 = arith.constant 0 : index
    %c3_104 = arith.constant 3 : index
    %c0_105 = arith.constant 0 : index
    %c0_106 = arith.constant 0 : index
    %94 = vector.load %arg4[%c0_103, %c3_104, %c0_105, %c0_106] : memref<2x5x160x48xf32, #tpu.memory_space<vmem>>, vector<1x1x160x48xf32>
    %95 = vector.shape_cast %94 : vector<1x1x160x48xf32> to vector<160x48xf32>
    %cst_107 = arith.constant dense<0.000000e+00> : vector<48x48xf32>
    %96 = tpu.matmul %93, %95, %cst_107 {dimension_numbers = #tpu.dot_dimension_numbers<[1], [0], [0], [1], [0, 0, 1, 1], [], []>} : vector<48x160xf32>, vector<160x48xf32>, vector<48x48xf32> -> vector<48x48xf32>
    %97 = arith.addf %86, %96 : vector<48x48xf32>
    %c1_108 = arith.constant 1 : index
    %c3_109 = arith.constant 3 : index
    %c0_110 = arith.constant 0 : index
    %c0_111 = arith.constant 0 : index
    %98 = vector.load %arg4[%c1_108, %c3_109, %c0_110, %c0_111] : memref<2x5x160x48xf32, #tpu.memory_space<vmem>>, vector<1x1x160x48xf32>
    %99 = vector.shape_cast %98 : vector<1x1x160x48xf32> to vector<160x48xf32>
    %cst_112 = arith.constant dense<0.000000e+00> : vector<48x48xf32>
    %100 = tpu.matmul %93, %99, %cst_112 {dimension_numbers = #tpu.dot_dimension_numbers<[1], [0], [0], [1], [0, 0, 1, 1], [], []>} : vector<48x160xf32>, vector<160x48xf32>, vector<48x48xf32> -> vector<48x48xf32>
    %101 = arith.addf %90, %100 : vector<48x48xf32>
    %c0_113 = arith.constant 0 : index
    %c2_114 = arith.constant 2 : index
    %c0_115 = arith.constant 0 : index
    %c0_116 = arith.constant 0 : index
    %102 = vector.load %arg13[%c0_113, %c2_114, %c0_115, %c0_116] : memref<2x5x16x160xf32, #tpu.memory_space<vmem>>, vector<1x3x16x160xf32>
    %103 = vector.shape_cast %102 : vector<1x3x16x160xf32> to vector<3x16x160xf32>
    %104 = vector.shape_cast %103 : vector<3x16x160xf32> to vector<48x160xf32>
    %c0_117 = arith.constant 0 : index
    %c4 = arith.constant 4 : index
    %c0_118 = arith.constant 0 : index
    %c0_119 = arith.constant 0 : index
    %105 = vector.load %arg4[%c0_117, %c4, %c0_118, %c0_119] : memref<2x5x160x48xf32, #tpu.memory_space<vmem>>, vector<1x1x160x48xf32>
    %106 = vector.shape_cast %105 : vector<1x1x160x48xf32> to vector<160x48xf32>
    %cst_120 = arith.constant dense<0.000000e+00> : vector<48x48xf32>
    %107 = tpu.matmul %104, %106, %cst_120 {dimension_numbers = #tpu.dot_dimension_numbers<[1], [0], [0], [1], [0, 0, 1, 1], [], []>} : vector<48x160xf32>, vector<160x48xf32>, vector<48x48xf32> -> vector<48x48xf32>
    %108 = arith.addf %97, %107 : vector<48x48xf32>
    %c1_121 = arith.constant 1 : index
    %c4_122 = arith.constant 4 : index
    %c0_123 = arith.constant 0 : index
    %c0_124 = arith.constant 0 : index
    %109 = vector.load %arg4[%c1_121, %c4_122, %c0_123, %c0_124] : memref<2x5x160x48xf32, #tpu.memory_space<vmem>>, vector<1x1x160x48xf32>
    %110 = vector.shape_cast %109 : vector<1x1x160x48xf32> to vector<160x48xf32>
    %cst_125 = arith.constant dense<0.000000e+00> : vector<48x48xf32>
    %111 = tpu.matmul %104, %110, %cst_125 {dimension_numbers = #tpu.dot_dimension_numbers<[1], [0], [0], [1], [0, 0, 1, 1], [], []>} : vector<48x160xf32>, vector<160x48xf32>, vector<48x48xf32> -> vector<48x48xf32>
    %112 = arith.addf %101, %111 : vector<48x48xf32>
    %113 = arith.maximumf %108, %112 : vector<48x48xf32>
    %c1_126 = arith.constant 1 : index
    %c0_127 = arith.constant 0 : index
    %c0_128 = arith.constant 0 : index
    %c0_129 = arith.constant 0 : index
    %114 = vector.load %arg13[%c1_126, %c0_127, %c0_128, %c0_129] : memref<2x5x16x160xf32, #tpu.memory_space<vmem>>, vector<1x3x16x160xf32>
    %115 = vector.shape_cast %114 : vector<1x3x16x160xf32> to vector<3x16x160xf32>
    %116 = vector.shape_cast %115 : vector<3x16x160xf32> to vector<48x160xf32>
    %c0_130 = arith.constant 0 : index
    %c0_131 = arith.constant 0 : index
    %c0_132 = arith.constant 0 : index
    %c0_133 = arith.constant 0 : index
    %117 = vector.load %arg4[%c0_130, %c0_131, %c0_132, %c0_133] : memref<2x5x160x48xf32, #tpu.memory_space<vmem>>, vector<1x1x160x48xf32>
    %118 = vector.shape_cast %117 : vector<1x1x160x48xf32> to vector<160x48xf32>
    %cst_134 = arith.constant dense<0.000000e+00> : vector<48x48xf32>
    %119 = tpu.matmul %116, %118, %cst_134 {dimension_numbers = #tpu.dot_dimension_numbers<[1], [0], [0], [1], [0, 0, 1, 1], [], []>} : vector<48x160xf32>, vector<160x48xf32>, vector<48x48xf32> -> vector<48x48xf32>
    %c1_135 = arith.constant 1 : index
    %c0_136 = arith.constant 0 : index
    %c0_137 = arith.constant 0 : index
    %c0_138 = arith.constant 0 : index
    %120 = vector.load %arg4[%c1_135, %c0_136, %c0_137, %c0_138] : memref<2x5x160x48xf32, #tpu.memory_space<vmem>>, vector<1x1x160x48xf32>
    %121 = vector.shape_cast %120 : vector<1x1x160x48xf32> to vector<160x48xf32>
    %cst_139 = arith.constant dense<0.000000e+00> : vector<48x48xf32>
    %122 = tpu.matmul %116, %121, %cst_139 {dimension_numbers = #tpu.dot_dimension_numbers<[1], [0], [0], [1], [0, 0, 1, 1], [], []>} : vector<48x160xf32>, vector<160x48xf32>, vector<48x48xf32> -> vector<48x48xf32>
    %c0_140 = arith.constant 0 : index
    %c1_141 = arith.constant 1 : index
    %c0_142 = arith.constant 0 : index
    %c0_143 = arith.constant 0 : index
    %123 = vector.load %arg13[%c0_140, %c1_141, %c0_142, %c0_143] : memref<2x5x16x160xf32, #tpu.memory_space<vmem>>, vector<1x3x16x160xf32>
    %124 = vector.shape_cast %123 : vector<1x3x16x160xf32> to vector<3x16x160xf32>
    %125 = vector.shape_cast %124 : vector<3x16x160xf32> to vector<48x160xf32>
    %c0_144 = arith.constant 0 : index
    %c1_145 = arith.constant 1 : index
    %c0_146 = arith.constant 0 : index
    %c0_147 = arith.constant 0 : index
    %126 = vector.load %arg4[%c0_144, %c1_145, %c0_146, %c0_147] : memref<2x5x160x48xf32, #tpu.memory_space<vmem>>, vector<1x1x160x48xf32>
    %127 = vector.shape_cast %126 : vector<1x1x160x48xf32> to vector<160x48xf32>
    %cst_148 = arith.constant dense<0.000000e+00> : vector<48x48xf32>
    %128 = tpu.matmul %125, %127, %cst_148 {dimension_numbers = #tpu.dot_dimension_numbers<[1], [0], [0], [1], [0, 0, 1, 1], [], []>} : vector<48x160xf32>, vector<160x48xf32>, vector<48x48xf32> -> vector<48x48xf32>
    %129 = arith.addf %119, %128 : vector<48x48xf32>
    %c1_149 = arith.constant 1 : index
    %c1_150 = arith.constant 1 : index
    %c0_151 = arith.constant 0 : index
    %c0_152 = arith.constant 0 : index
    %130 = vector.load %arg4[%c1_149, %c1_150, %c0_151, %c0_152] : memref<2x5x160x48xf32, #tpu.memory_space<vmem>>, vector<1x1x160x48xf32>
    %131 = vector.shape_cast %130 : vector<1x1x160x48xf32> to vector<160x48xf32>
    %cst_153 = arith.constant dense<0.000000e+00> : vector<48x48xf32>
    %132 = tpu.matmul %125, %131, %cst_153 {dimension_numbers = #tpu.dot_dimension_numbers<[1], [0], [0], [1], [0, 0, 1, 1], [], []>} : vector<48x160xf32>, vector<160x48xf32>, vector<48x48xf32> -> vector<48x48xf32>
    %133 = arith.addf %122, %132 : vector<48x48xf32>
    %c1_154 = arith.constant 1 : index
    %c1_155 = arith.constant 1 : index
    %c0_156 = arith.constant 0 : index
    %c0_157 = arith.constant 0 : index
    %134 = vector.load %arg13[%c1_154, %c1_155, %c0_156, %c0_157] : memref<2x5x16x160xf32, #tpu.memory_space<vmem>>, vector<1x3x16x160xf32>
    %135 = vector.shape_cast %134 : vector<1x3x16x160xf32> to vector<3x16x160xf32>
    %136 = vector.shape_cast %135 : vector<3x16x160xf32> to vector<48x160xf32>
    %c0_158 = arith.constant 0 : index
    %c2_159 = arith.constant 2 : index
    %c0_160 = arith.constant 0 : index
    %c0_161 = arith.constant 0 : index
    %137 = vector.load %arg4[%c0_158, %c2_159, %c0_160, %c0_161] : memref<2x5x160x48xf32, #tpu.memory_space<vmem>>, vector<1x1x160x48xf32>
    %138 = vector.shape_cast %137 : vector<1x1x160x48xf32> to vector<160x48xf32>
    %cst_162 = arith.constant dense<0.000000e+00> : vector<48x48xf32>
    %139 = tpu.matmul %136, %138, %cst_162 {dimension_numbers = #tpu.dot_dimension_numbers<[1], [0], [0], [1], [0, 0, 1, 1], [], []>} : vector<48x160xf32>, vector<160x48xf32>, vector<48x48xf32> -> vector<48x48xf32>
    %140 = arith.addf %129, %139 : vector<48x48xf32>
    %c1_163 = arith.constant 1 : index
    %c2_164 = arith.constant 2 : index
    %c0_165 = arith.constant 0 : index
    %c0_166 = arith.constant 0 : index
    %141 = vector.load %arg4[%c1_163, %c2_164, %c0_165, %c0_166] : memref<2x5x160x48xf32, #tpu.memory_space<vmem>>, vector<1x1x160x48xf32>
    %142 = vector.shape_cast %141 : vector<1x1x160x48xf32> to vector<160x48xf32>
    %cst_167 = arith.constant dense<0.000000e+00> : vector<48x48xf32>
    %143 = tpu.matmul %136, %142, %cst_167 {dimension_numbers = #tpu.dot_dimension_numbers<[1], [0], [0], [1], [0, 0, 1, 1], [], []>} : vector<48x160xf32>, vector<160x48xf32>, vector<48x48xf32> -> vector<48x48xf32>
    %144 = arith.addf %133, %143 : vector<48x48xf32>
    %c0_168 = arith.constant 0 : index
    %c2_169 = arith.constant 2 : index
    %c0_170 = arith.constant 0 : index
    %c0_171 = arith.constant 0 : index
    %145 = vector.load %arg13[%c0_168, %c2_169, %c0_170, %c0_171] : memref<2x5x16x160xf32, #tpu.memory_space<vmem>>, vector<1x3x16x160xf32>
    %146 = vector.shape_cast %145 : vector<1x3x16x160xf32> to vector<3x16x160xf32>
    %147 = vector.shape_cast %146 : vector<3x16x160xf32> to vector<48x160xf32>
    %c0_172 = arith.constant 0 : index
    %c3_173 = arith.constant 3 : index
    %c0_174 = arith.constant 0 : index
    %c0_175 = arith.constant 0 : index
    %148 = vector.load %arg4[%c0_172, %c3_173, %c0_174, %c0_175] : memref<2x5x160x48xf32, #tpu.memory_space<vmem>>, vector<1x1x160x48xf32>
    %149 = vector.shape_cast %148 : vector<1x1x160x48xf32> to vector<160x48xf32>
    %cst_176 = arith.constant dense<0.000000e+00> : vector<48x48xf32>
    %150 = tpu.matmul %147, %149, %cst_176 {dimension_numbers = #tpu.dot_dimension_numbers<[1], [0], [0], [1], [0, 0, 1, 1], [], []>} : vector<48x160xf32>, vector<160x48xf32>, vector<48x48xf32> -> vector<48x48xf32>
    %151 = arith.addf %140, %150 : vector<48x48xf32>
    %c1_177 = arith.constant 1 : index
    %c3_178 = arith.constant 3 : index
    %c0_179 = arith.constant 0 : index
    %c0_180 = arith.constant 0 : index
    %152 = vector.load %arg4[%c1_177, %c3_178, %c0_179, %c0_180] : memref<2x5x160x48xf32, #tpu.memory_space<vmem>>, vector<1x1x160x48xf32>
    %153 = vector.shape_cast %152 : vector<1x1x160x48xf32> to vector<160x48xf32>
    %cst_181 = arith.constant dense<0.000000e+00> : vector<48x48xf32>
    %154 = tpu.matmul %147, %153, %cst_181 {dimension_numbers = #tpu.dot_dimension_numbers<[1], [0], [0], [1], [0, 0, 1, 1], [], []>} : vector<48x160xf32>, vector<160x48xf32>, vector<48x48xf32> -> vector<48x48xf32>
    %155 = arith.addf %144, %154 : vector<48x48xf32>
    %c1_182 = arith.constant 1 : index
    %c2_183 = arith.constant 2 : index
    %c0_184 = arith.constant 0 : index
    %c0_185 = arith.constant 0 : index
    %156 = vector.load %arg13[%c1_182, %c2_183, %c0_184, %c0_185] : memref<2x5x16x160xf32, #tpu.memory_space<vmem>>, vector<1x3x16x160xf32>
    %157 = vector.shape_cast %156 : vector<1x3x16x160xf32> to vector<3x16x160xf32>
    %158 = vector.shape_cast %157 : vector<3x16x160xf32> to vector<48x160xf32>
    %c0_186 = arith.constant 0 : index
    %c4_187 = arith.constant 4 : index
    %c0_188 = arith.constant 0 : index
    %c0_189 = arith.constant 0 : index
    %159 = vector.load %arg4[%c0_186, %c4_187, %c0_188, %c0_189] : memref<2x5x160x48xf32, #tpu.memory_space<vmem>>, vector<1x1x160x48xf32>
    %160 = vector.shape_cast %159 : vector<1x1x160x48xf32> to vector<160x48xf32>
    %cst_190 = arith.constant dense<0.000000e+00> : vector<48x48xf32>
    %161 = tpu.matmul %158, %160, %cst_190 {dimension_numbers = #tpu.dot_dimension_numbers<[1], [0], [0], [1], [0, 0, 1, 1], [], []>} : vector<48x160xf32>, vector<160x48xf32>, vector<48x48xf32> -> vector<48x48xf32>
    %162 = arith.addf %151, %161 : vector<48x48xf32>
    %c1_191 = arith.constant 1 : index
    %c4_192 = arith.constant 4 : index
    %c0_193 = arith.constant 0 : index
    %c0_194 = arith.constant 0 : index
    %163 = vector.load %arg4[%c1_191, %c4_192, %c0_193, %c0_194] : memref<2x5x160x48xf32, #tpu.memory_space<vmem>>, vector<1x1x160x48xf32>
    %164 = vector.shape_cast %163 : vector<1x1x160x48xf32> to vector<160x48xf32>
    %cst_195 = arith.constant dense<0.000000e+00> : vector<48x48xf32>
    %165 = tpu.matmul %158, %164, %cst_195 {dimension_numbers = #tpu.dot_dimension_numbers<[1], [0], [0], [1], [0, 0, 1, 1], [], []>} : vector<48x160xf32>, vector<160x48xf32>, vector<48x48xf32> -> vector<48x48xf32>
    %166 = arith.addf %155, %165 : vector<48x48xf32>
    %167 = arith.maximumf %113, %162 : vector<48x48xf32>
    %168 = arith.maximumf %167, %166 : vector<48x48xf32>
    %c0_196 = arith.constant 0 : index
    %c0_197 = arith.constant 0 : index
    %169 = vector.load %arg5[%c0_196, %c0_197] : memref<1x48xf32, #tpu.memory_space<vmem>>, vector<1x48xf32>
    %170 = vector.broadcast %169 : vector<1x48xf32> to vector<48x48xf32>
    %171 = arith.addf %168, %170 : vector<48x48xf32>
    %cst_198 = arith.constant 0.000000e+00 : f32
    %172 = vector.broadcast %cst_198 : f32 to vector<48x48xf32>
    %173 = arith.maximumf %171, %172 : vector<48x48xf32>
    %174 = vector.shape_cast %173 : vector<48x48xf32> to vector<3x16x48xf32>
    %175 = vector.extract_strided_slice %174 {offsets = [0, 0, 0], sizes = [1, 16, 48], strides = [1, 1, 1]} : vector<3x16x48xf32> to vector<1x16x48xf32>
    %176 = vector.shape_cast %175 : vector<1x16x48xf32> to vector<16x48xf32>
    %c0_199 = arith.constant 0 : index
    %c0_200 = arith.constant 0 : index
    %c0_201 = arith.constant 0 : index
    %177 = vector.load %arg6[%c0_199, %c0_200, %c0_201] : memref<3x48x256xf32, #tpu.memory_space<vmem>>, vector<1x48x256xf32>
    %178 = vector.shape_cast %177 : vector<1x48x256xf32> to vector<48x256xf32>
    %cst_202 = arith.constant dense<0.000000e+00> : vector<16x256xf32>
    %179 = tpu.matmul %176, %178, %cst_202 {dimension_numbers = #tpu.dot_dimension_numbers<[1], [0], [0], [1], [0, 0, 1, 1], [], []>} : vector<16x48xf32>, vector<48x256xf32>, vector<16x256xf32> -> vector<16x256xf32>
    %180 = vector.extract_strided_slice %174 {offsets = [1, 0, 0], sizes = [1, 16, 48], strides = [1, 1, 1]} : vector<3x16x48xf32> to vector<1x16x48xf32>
    %181 = vector.shape_cast %180 : vector<1x16x48xf32> to vector<16x48xf32>
    %c1_203 = arith.constant 1 : index
    %c0_204 = arith.constant 0 : index
    %c0_205 = arith.constant 0 : index
    %182 = vector.load %arg6[%c1_203, %c0_204, %c0_205] : memref<3x48x256xf32, #tpu.memory_space<vmem>>, vector<1x48x256xf32>
    %183 = vector.shape_cast %182 : vector<1x48x256xf32> to vector<48x256xf32>
    %cst_206 = arith.constant dense<0.000000e+00> : vector<16x256xf32>
    %184 = tpu.matmul %181, %183, %cst_206 {dimension_numbers = #tpu.dot_dimension_numbers<[1], [0], [0], [1], [0, 0, 1, 1], [], []>} : vector<16x48xf32>, vector<48x256xf32>, vector<16x256xf32> -> vector<16x256xf32>
    %185 = arith.addf %179, %184 : vector<16x256xf32>
    %186 = vector.extract_strided_slice %174 {offsets = [2, 0, 0], sizes = [1, 16, 48], strides = [1, 1, 1]} : vector<3x16x48xf32> to vector<1x16x48xf32>
    %187 = vector.shape_cast %186 : vector<1x16x48xf32> to vector<16x48xf32>
    %c2_207 = arith.constant 2 : index
    %c0_208 = arith.constant 0 : index
    %c0_209 = arith.constant 0 : index
    %188 = vector.load %arg6[%c2_207, %c0_208, %c0_209] : memref<3x48x256xf32, #tpu.memory_space<vmem>>, vector<1x48x256xf32>
    %189 = vector.shape_cast %188 : vector<1x48x256xf32> to vector<48x256xf32>
    %cst_210 = arith.constant dense<0.000000e+00> : vector<16x256xf32>
    %190 = tpu.matmul %187, %189, %cst_210 {dimension_numbers = #tpu.dot_dimension_numbers<[1], [0], [0], [1], [0, 0, 1, 1], [], []>} : vector<16x48xf32>, vector<48x256xf32>, vector<16x256xf32> -> vector<16x256xf32>
    %191 = arith.addf %185, %190 : vector<16x256xf32>
    %c0_211 = arith.constant 0 : index
    %c0_212 = arith.constant 0 : index
    %192 = vector.load %arg7[%c0_211, %c0_212] : memref<1x256xf32, #tpu.memory_space<vmem>>, vector<1x256xf32>
    %193 = vector.broadcast %192 : vector<1x256xf32> to vector<16x256xf32>
    %194 = arith.addf %191, %193 : vector<16x256xf32>
    %cst_213 = arith.constant 0.000000e+00 : f32
    %195 = vector.broadcast %cst_213 : f32 to vector<16x256xf32>
    %196 = arith.maximumf %194, %195 : vector<16x256xf32>
    %c0_214 = arith.constant 0 : index
    %c0_215 = arith.constant 0 : index
    %197 = vector.load %arg8[%c0_214, %c0_215] : memref<256x128xf32, #tpu.memory_space<vmem>>, vector<256x128xf32>
    %cst_216 = arith.constant dense<0.000000e+00> : vector<16x128xf32>
    %198 = tpu.matmul %196, %197, %cst_216 {dimension_numbers = #tpu.dot_dimension_numbers<[1], [0], [0], [1], [0, 0, 1, 1], [], []>} : vector<16x256xf32>, vector<256x128xf32>, vector<16x128xf32> -> vector<16x128xf32>
    %c0_217 = arith.constant 0 : index
    %c0_218 = arith.constant 0 : index
    %199 = vector.load %arg9[%c0_217, %c0_218] : memref<1x128xf32, #tpu.memory_space<vmem>>, vector<1x128xf32>
    %200 = vector.broadcast %199 : vector<1x128xf32> to vector<16x128xf32>
    %201 = arith.addf %198, %200 : vector<16x128xf32>
    %cst_219 = arith.constant 0.000000e+00 : f32
    %202 = vector.broadcast %cst_219 : f32 to vector<16x128xf32>
    %203 = arith.maximumf %201, %202 : vector<16x128xf32>
    %c0_220 = arith.constant 0 : index
    %c0_221 = arith.constant 0 : index
    %204 = vector.load %arg10[%c0_220, %c0_221] : memref<128x10xf32, #tpu.memory_space<vmem>>, vector<128x10xf32>
    %cst_222 = arith.constant dense<0.000000e+00> : vector<16x10xf32>
    %205 = tpu.matmul %203, %204, %cst_222 {dimension_numbers = #tpu.dot_dimension_numbers<[1], [0], [0], [1], [0, 0, 1, 1], [], []>} : vector<16x128xf32>, vector<128x10xf32>, vector<16x10xf32> -> vector<16x10xf32>
    %c0_223 = arith.constant 0 : index
    %c0_224 = arith.constant 0 : index
    %206 = vector.load %arg11[%c0_223, %c0_224] : memref<1x10xf32, #tpu.memory_space<vmem>>, vector<1x10xf32>
    %207 = vector.broadcast %206 : vector<1x10xf32> to vector<16x10xf32>
    %208 = arith.addf %205, %207 : vector<16x10xf32>
    %c0_225 = arith.constant 0 : index
    %c0_226 = arith.constant 0 : index
    %209 = vector.load %arg12[%c0_225, %c0_226] : memref<16x10xf32, #tpu.memory_space<vmem>>, vector<16x10xf32>
    tpu.vector_store %arg12[%c0_225, %c0_226], %208 {strides = array<i32>} : memref<16x10xf32, #tpu.memory_space<vmem>>, vector<16x10xf32>,
    return
  }
  func.func @transform_0(%arg0: i32) -> (i32, i32, i32, i32) {
    %c0_i32 = arith.constant 0 : i32
    %c0_i32_0 = arith.constant 0 : i32
    %c0_i32_1 = arith.constant 0 : i32
    %c0_i32_2 = arith.constant 0 : i32
    return %c0_i32, %c0_i32_0, %arg0, %c0_i32_1 : i32, i32, i32, i32
  }
  func.func @transform_1(%arg0: i32) -> (i32, i32, i32) {
    %c0_i32 = arith.constant 0 : i32
    %c0_i32_0 = arith.constant 0 : i32
    %c0_i32_1 = arith.constant 0 : i32
    %c0_i32_2 = arith.constant 0 : i32
    return %c0_i32, %c0_i32_0, %c0_i32_1 : i32, i32, i32
  }
  func.func @transform_2(%arg0: i32) -> (i32, i32) {
    %c0_i32 = arith.constant 0 : i32
    %c0_i32_0 = arith.constant 0 : i32
    %c0_i32_1 = arith.constant 0 : i32
    return %c0_i32, %c0_i32_0 : i32, i32
  }
  func.func @transform_3(%arg0: i32) -> (i32, i32, i32, i32) {
    %c0_i32 = arith.constant 0 : i32
    %c0_i32_0 = arith.constant 0 : i32
    %c0_i32_1 = arith.constant 0 : i32
    %c0_i32_2 = arith.constant 0 : i32
    %c0_i32_3 = arith.constant 0 : i32
    return %c0_i32, %c0_i32_0, %c0_i32_1, %c0_i32_2 : i32, i32, i32, i32
  }
  func.func @transform_4(%arg0: i32) -> (i32, i32) {
    %c0_i32 = arith.constant 0 : i32
    %c0_i32_0 = arith.constant 0 : i32
    %c0_i32_1 = arith.constant 0 : i32
    return %c0_i32, %c0_i32_0 : i32, i32
  }
  func.func @transform_5(%arg0: i32) -> (i32, i32, i32) {
    %c0_i32 = arith.constant 0 : i32
    %c0_i32_0 = arith.constant 0 : i32
    %c0_i32_1 = arith.constant 0 : i32
    %c0_i32_2 = arith.constant 0 : i32
    return %c0_i32, %c0_i32_0, %c0_i32_1 : i32, i32, i32
  }
  func.func @transform_6(%arg0: i32) -> (i32, i32) {
    %c0_i32 = arith.constant 0 : i32
    %c0_i32_0 = arith.constant 0 : i32
    %c0_i32_1 = arith.constant 0 : i32
    return %c0_i32, %c0_i32_0 : i32, i32
  }
  func.func @transform_7(%arg0: i32) -> (i32, i32) {
    %c0_i32 = arith.constant 0 : i32
    %c0_i32_0 = arith.constant 0 : i32
    %c0_i32_1 = arith.constant 0 : i32
    return %c0_i32, %c0_i32_0 : i32, i32
  }
  func.func @transform_8(%arg0: i32) -> (i32, i32) {
    %c0_i32 = arith.constant 0 : i32
    %c0_i32_0 = arith.constant 0 : i32
    %c0_i32_1 = arith.constant 0 : i32
    return %c0_i32, %c0_i32_0 : i32, i32
  }
  func.func @transform_9(%arg0: i32) -> (i32, i32) {
    %c0_i32 = arith.constant 0 : i32
    %c0_i32_0 = arith.constant 0 : i32
    %c0_i32_1 = arith.constant 0 : i32
    return %c0_i32, %c0_i32_0 : i32, i32
  }
  func.func @transform_10(%arg0: i32) -> (i32, i32) {
    %c0_i32 = arith.constant 0 : i32
    %c0_i32_0 = arith.constant 0 : i32
    %c0_i32_1 = arith.constant 0 : i32
    return %c0_i32, %c0_i32_0 : i32, i32
  }
  func.func @transform_11(%arg0: i32) -> (i32, i32) {
    %c0_i32 = arith.constant 0 : i32
    %c0_i32_0 = arith.constant 0 : i32
    return %arg0, %c0_i32 : i32, i32
  }
}

</mosaic_0001>

<bundles_post_ra>
// kernel: tile.13
= control target key start
LH: loop header
LB: loop body
LE: loop exit
PB: predicated region body
PF: predicated region fallthrough
CT: control target
= control target key end

     0   :  { %s28_s0 = inlined_call_operand.vmem [shape: f32[16], index: 0, kind: input, shape index: {}]   ;;  %s29_s1 = inlined_call_operand.vmem [shape: f32[10,16], index: 1, kind: output, shape index: {}]  }
   0x1   :  { %v4_v0 = vld [vmem:[%s28_s0] ss:$0 sm:$0xff] }
   0x2   :  { %5 = vst [vmem:[%s29_s1] sm:$0xff] %v4_v0  ;;  %8 = vst [vmem:[%s29_s1 + $0x8] sm:$0xff] %v4_v0 }

// kernel: tile.14
= control target key start
LH: loop header
LB: loop body
LE: loop exit
PB: predicated region body
PF: predicated region fallthrough
CT: control target
= control target key end

     0   :  { %s75_s10 = smov 112   ;;  %s76_s11 = smov 80   ;;  %vm4_vm0 = vcmask 130048   ;;  %vm10_vm1 = vcmask 1048448   ;;  %vm16_vm2 = vcmask 917248   ;;  %vm22_vm3 = vcmask 786048   ;;  %s122_s0 = inlined_call_operand.vmem [shape: f32[10,16], index: 0, kind: input, shape index: {}]   ;;  %s123_s1 = inlined_call_operand.vmem [shape: f32[1,160], index: 1, kind: output, shape index: {}]  }
   0x1   :  { %v60_v0 = vld [vmem:[%s122_s0 + $0x7] sm:$0x1]   ;;  %v62_v1 = vld [vmem:[%s122_s0 + $0x5] sm:$0x1]   ;;  %v61_v2 = vld [vmem:[%s122_s0 + $0x6] sm:$0x1]  }
   0x2   :  { %8 = vrot.lane.b32.xlu0 %v60_v0, %s75_s10  ;;  %20 = vrot.lane.b32.xlu1 %v62_v1, %s76_s11  ;;  %v63_v3 = vld [vmem:[%s122_s0 + $0x4] sm:$0x1]   ;;  %s2_s16 = smov 3  ;;  %s77_s17 = smov 96   ;;  %v64_v5 = vld [vmem:[%s122_s0 + $0x3] sm:$0x1]  }
   0x3   :  { %s78_s18 = smov 64   ;;  %v3_v4 = vld [vmem:[%s122_s0] ss:$8 sm:%s2_s16]   ;;  %v65_v6 = vld [vmem:[%s122_s0 + $0x2] sm:$0x1]   ;;  %s43_s25 = smov 3 }
   0x4   :  { %5 = vst.msk [vmem:[#allocation0] ss:$8 sm:$0x3] %vm4_vm0, %v3_v4   ;;  %s79_s26 = smov 48   ;;  %s80_s27 = smov 32   ;;  %vm28_vm4 = vcmask 654848  }
   0x5   :  { %v66_v7 = vld [vmem:[%s122_s0 + $0x1] ss:$8 sm:%s43_s25]   ;;  %s81_s0 = smov 16   ;;  %vm34_vm5 = vcmask 523648   ;;  %vm40_vm6 = vcmask 392448   ;;  %vm47_vm7 = vcmask 261248  }
   0x6   :  { %14 = vrot.lane.b32.xlu0 %v61_v2, %s77_s17  ;;  %26 = vrot.lane.b32.xlu1 %v63_v3, %s78_s18 }
   0xa   :  { %32 = vrot.lane.b32.xlu0 %v64_v5, %s79_s26  ;;  %38 = vrot.lane.b32.xlu1 %v65_v6, %s80_s27 }
   0xe   :  { %45 = vrot.lane.b32.xlu0 %v66_v7, %s81_s0 }
  0x74   :  { %v9_v8 = vpop.permute.xlu0 %8   ;;  %v21_v9 = vpop.permute.xlu1 %20  }
  0x75   :  { %11 = vst.msk [vmem:[#allocation0] sm:$0x1] %vm10_vm1, %v9_v8  }
  0x78   :  { %v15_v10 = vpop.permute.xlu0 %14   ;;  %v27_v11 = vpop.permute.xlu1 %26  }
  0x79   :  { %17 = vst.msk [vmem:[#allocation0] sm:$0x1] %vm16_vm2, %v15_v10  }
  0x7a   :  { %23 = vst.msk [vmem:[#allocation0] sm:$0x1] %vm22_vm3, %v21_v9  }
  0x7b   :  { %29 = vst.msk [vmem:[#allocation0] sm:$0x1] %vm28_vm4, %v27_v11  }
  0x7c   :  { %v33_v12 = vpop.permute.xlu0 %32   ;;  %v39_v13 = vpop.permute.xlu1 %38  }
  0x7d   :  { %35 = vst.msk [vmem:[#allocation0] sm:$0x1] %vm34_vm5, %v33_v12  }
  0x7e   :  { %41 = vst.msk [vmem:[#allocation0] sm:$0x1] %vm40_vm6, %v39_v13  }
  0x80   :  { %v46_v14 = vpop.permute.xlu0 %45  }
  0x81   :  { %48 = vst.msk [vmem:[#allocation0] ss:$8 sm:$0x3] %vm47_vm7, %v46_v14  }
  0x88   :  { %v52_v15 = vld [vmem:[#allocation0] sm:$0x1]  ;;  %v56_v16 = vld [vmem:[#allocation0 + $0x8] sm:$0x1] }
  0x89   :  { %54 = vst [vmem:[%s123_s1] sm:$0x1] %v52_v15  ;;  %67 = vst [vmem:[%s123_s1 + $0x1] sm:$0x1] %v56_v16 }

// kernel: tile.18
= control target key start
LH: loop header
LB: loop body
LE: loop exit
PB: predicated region body
PF: predicated region fallthrough
CT: control target
= control target key end

     0   :  { %s22_s0 = inlined_call_operand.vmem [shape: f32[16], index: 0, kind: input, shape index: {}]   ;;  %s23_s1 = inlined_call_operand.vmem [shape: f32[3,16], index: 1, kind: output, shape index: {}]  }
   0x1   :  { %v4_v0 = vld [vmem:[%s22_s0] ss:$0 sm:$0xff] }
   0x2   :  { %5 = vst [vmem:[%s23_s1] sm:$0xf] %v4_v0 }

// kernel: tile.19
= control target key start
LH: loop header
LB: loop body
LE: loop exit
PB: predicated region body
PF: predicated region fallthrough
CT: control target
= control target key end

     0   :  { %vm7_vm0 = vcmask 130048   ;;  %s30_s8 = smov 16   ;;  %vm13_vm1 = vcmask 392448   ;;  %vm19_vm2 = vcmask 261248   ;;  %s47_s0 = inlined_call_operand.vmem [shape: f32[3,16], index: 0, kind: input, shape index: {}]   ;;  %s48_s1 = inlined_call_operand.vmem [shape: f32[1,48], index: 1, kind: output, shape index: {}]  }
   0x1   :  { %v4_v0 = vld [vmem:[%s47_s0] sm:$0xf]  ;;  %s29_s0 = smov 32  }
   0x2   :  { %5 = vst [vmem:[#allocation1] sm:$0xf] %v4_v0 }
   0x9   :  { %v10_v1 = vld [vmem:[#allocation1 + $0x2] sm:$0x1]   ;;  %v6_v2 = vld [vmem:[#allocation1] sm:$0x1]   ;;  %v16_v3 = vld [vmem:[#allocation1 + $0x1] sm:$0x1]  }
   0xa   :  { %11 = vrot.lane.b32.xlu0 %v10_v1, %s29_s0  ;;  %8 = vst.msk [vmem:[#allocation0] sm:$0x1] %vm7_vm0, %v6_v2  }
   0xe   :  { %17 = vrot.lane.b32.xlu0 %v16_v3, %s30_s8 }
  0x7c   :  { %v12_v4 = vpop.permute.xlu0 %11  }
  0x7d   :  { %14 = vst.msk [vmem:[#allocation0] sm:$0x1] %vm13_vm1, %v12_v4  }
  0x80   :  { %v18_v5 = vpop.permute.xlu0 %17  }
  0x81   :  { %20 = vst.msk [vmem:[#allocation0] sm:$0x1] %vm19_vm2, %v18_v5  }
  0x88   :  { %v24_v6 = vld [vmem:[#allocation0] sm:$0x1] }
  0x89   :  { %26 = vst [vmem:[%s48_s1] sm:$0x1] %v24_v6 }

// kernel: _lambda_.1
= control target key start
LH: loop header
LB: loop body
LE: loop exit
PB: predicated region body
PF: predicated region fallthrough
CT: control target
= control target key end

     0   :  { %s7597_s17 = smov 0   ;;  %s7599_s18 = smov 0   ;;  %s11159_s0 = inlined_call_operand.vmem [shape: f32[4,5,32,252], index: 0, kind: input, shape index: {}]   ;;  %s11160_s1 = inlined_call_operand.vmem [shape: f32[2,252,160], index: 1, kind: input, shape index: {}]   ;;  %s11161_s2 = inlined_call_operand.vmem [shape: f32[1,160], index: 2, kind: input, shape index: {}]   ;;  %s11162_s3 = inlined_call_operand.vmem [shape: f32[2,5,160,48], index: 3, kind: input, shape index: {}]   ;;  %s11163_s4 = inlined_call_operand.vmem [shape: f32[1,48], index: 4, kind: input, shape index: {}]   ;;  %s11164_s5 = inlined_call_operand.vmem [shape: f32[3,48,256], index: 5, kind: input, shape index: {}]   ;;  %s11165_s6 = inlined_call_operand.vmem [shape: f32[1,256], index: 6, kind: input, shape index: {}]   ;;  %s11166_s7 = inlined_call_operand.vmem [shape: f32[256,128], index: 7, kind: input, shape index: {}]   ;;  %s11167_s8 = inlined_call_operand.vmem [shape: f32[1,128], index: 8, kind: input, shape index: {}]   ;;  %s11168_s9 = inlined_call_operand.vmem [shape: f32[128,10], index: 9, kind: input, shape index: {}]   ;;  %s11169_s10 = inlined_call_operand.vmem [shape: f32[1,10], index: 10, kind: input, shape index: {}]   ;;  %s11170_s11 = inlined_call_operand.vmem [shape: f32[32,10], index: 11, kind: output, shape index: {}]  }
   0x1   :  { %s7601_s19 = smov 0  }
   0x2 LB: > { %s5313_s20 = sadd.s32 4294967295, %s7532_s19   ;;  %s7614_s21 = sadd.s32 1, %s7532_s19   ;;  %s7532_s19 = sphi %s7601_s19, %s11459_s19   ;;  %s7528_s18 = sphi %s7599_s18, %s11458_s18   ;;  %s7524_s17 = sphi %s7597_s17, %s11457_s17  }
   0x3   : > { %s25_s22 = ssub.s32 %s7532_s19, %s7614_s21  ;;  %s28_s23 = sadd.s32 1, %s7528_s18 }
   0x4   : > { %p26_p0 = scmp.eq.s32.totalorder %s25_s22, 0  ;;  %p35_p1 = scmp.ne.s32.totalorder %s7528_s18, %s7524_s17 }
   0x5   : > { %p36_p2 = scmp.eq.s32.totalorder %s7532_s19, 0  ;;  %p5316_p4 = scmp.ge.s32.totalorder %s7532_s19, 2 }
   0x6   : > { %s7623_s24 = scalar_select %p26_p0, %s7528_s18, %s28_s23  }
   0x7   : > { %p37_p3 = por %p36_p2, %p35_p1  ;;  %327 = sbr.rel (%p5316_p4) target bundleno = 59 (0x3b), region = 56 }
   0xe   : > { %330 = sbr.rel (!%p37_p3) target bundleno = 59 (0x3b), region = 60  ;;  %s332_s25 = sand.u32 (%p37_p3), 1, %s7528_s18  }
   0xf   : > { %s5943_s26 = sshll.u32 (%p37_p3), %s7532_s19, 5  ;;  %s7463_s27 = smul.u32 (%p37_p3), 640, %s332_s25 }
  0x10   : > { %s7631_s30 = scalar_lea.vmem (%p37_p3), %s11159_s0, %s5943_s26 }
  0x11   : > { %v351_v0 = vld [vmem:[%s7631_s30] sm:$0xff] (%p37_p3)  ;;  %v353_v1 = vld [vmem:[%s7631_s30 + $0x8] sm:$0xff] (%p37_p3)  ;;  %v355_v2 = vld [vmem:[%s7631_s30 + $0x10] sm:$0xff] (%p37_p3)  ;;  %s7639_s12 = scalar_lea.vmem (%p37_p3), [#allocation3], %s7463_s27 }
  0x12   : > { %v357_v3 = vld [vmem:[%s7631_s30 + $0x18] sm:$0xff] (%p37_p3)  ;;  %v359_v4 = vld [vmem:[%s7631_s30 + $0x40] sm:$0xff] (%p37_p3)  ;;  %v361_v5 = vld [vmem:[%s7631_s30 + $0x48] sm:$0xff] (%p37_p3)  ;;  %352 = vst [vmem:[%s7639_s12] sm:$0xff] (%p37_p3), %v351_v0 }
  0x13   : > { %354 = vst [vmem:[%s7639_s12 + $0x8] sm:$0xff] (%p37_p3), %v353_v1  ;;  %356 = vst [vmem:[%s7639_s12 + $0x10] sm:$0xff] (%p37_p3), %v355_v2  ;;  %v363_v6 = vld [vmem:[%s7631_s30 + $0x50] sm:$0xff] (%p37_p3)  ;;  %v365_v7 = vld [vmem:[%s7631_s30 + $0x58] sm:$0xff] (%p37_p3) }
  0x14   : > { %358 = vst [vmem:[%s7639_s12 + $0x18] sm:$0xff] (%p37_p3), %v357_v3  ;;  %360 = vst [vmem:[%s7639_s12 + $0x20] sm:$0xff] (%p37_p3), %v359_v4  ;;  %v367_v8 = vld [vmem:[%s7631_s30 + $0x80] sm:$0xff] (%p37_p3)  ;;  %v369_v9 = vld [vmem:[%s7631_s30 + $0x88] sm:$0xff] (%p37_p3) }
  0x15   : > { %362 = vst [vmem:[%s7639_s12 + $0x28] sm:$0xff] %v361_v5  ;;  %364 = vst [vmem:[%s7639_s12 + $0x30] sm:$0xff] %v363_v6  ;;  %v371_v10 = vld [vmem:[%s7631_s30 + $0x90] sm:$0xff]  ;;  %v373_v11 = vld [vmem:[%s7631_s30 + $0x98] sm:$0xff] }
  0x16   : > { %366 = vst [vmem:[%s7639_s12 + $0x38] sm:$0xff] %v365_v7  ;;  %368 = vst [vmem:[%s7639_s12 + $0x40] sm:$0xff] %v367_v8  ;;  %v375_v12 = vld [vmem:[%s7631_s30 + $0xc0] sm:$0xff]  ;;  %v377_v13 = vld [vmem:[%s7631_s30 + $0xc8] sm:$0xff] }
  0x17   : > { %370 = vst [vmem:[%s7639_s12 + $0x48] sm:$0xff] %v369_v9  ;;  %372 = vst [vmem:[%s7639_s12 + $0x50] sm:$0xff] %v371_v10  ;;  %v379_v14 = vld [vmem:[%s7631_s30 + $0xd0] sm:$0xff]  ;;  %v381_v15 = vld [vmem:[%s7631_s30 + $0xd8] sm:$0xff] }
  0x18   : > { %374 = vst [vmem:[%s7639_s12 + $0x58] sm:$0xff] %v373_v11  ;;  %376 = vst [vmem:[%s7639_s12 + $0x60] sm:$0xff] %v375_v12  ;;  %v383_v16 = vld [vmem:[%s7631_s30 + $0x100] sm:$0xff]  ;;  %v385_v17 = vld [vmem:[%s7631_s30 + $0x108] sm:$0xff] }
  0x19   : > { %378 = vst [vmem:[%s7639_s12 + $0x68] sm:$0xff] %v377_v13  ;;  %380 = vst [vmem:[%s7639_s12 + $0x70] sm:$0xff] %v379_v14  ;;  %v387_v18 = vld [vmem:[%s7631_s30 + $0x110] sm:$0xff]  ;;  %v389_v19 = vld [vmem:[%s7631_s30 + $0x118] sm:$0xff] }
  0x1a   : > { %382 = vst [vmem:[%s7639_s12 + $0x78] sm:$0xff] %v381_v15  ;;  %384 = vst [vmem:[%s7639_s12 + $0x80] sm:$0xff] %v383_v16  ;;  %v391_v20 = vld [vmem:[%s7631_s30 + $0x140] sm:$0xff]  ;;  %v393_v21 = vld [vmem:[%s7631_s30 + $0x148] sm:$0xff] }
  0x1b   : > { %386 = vst [vmem:[%s7639_s12 + $0x88] sm:$0xff] %v385_v17  ;;  %388 = vst [vmem:[%s7639_s12 + $0x90] sm:$0xff] %v387_v18  ;;  %v395_v22 = vld [vmem:[%s7631_s30 + $0x150] sm:$0xff]  ;;  %v397_v23 = vld [vmem:[%s7631_s30 + $0x158] sm:$0xff] }
  0x1c   : > { %390 = vst [vmem:[%s7639_s12 + $0x98] sm:$0xff] %v389_v19  ;;  %392 = vst [vmem:[%s7639_s12 + $0xa0] sm:$0xff] %v391_v20  ;;  %v399_v24 = vld [vmem:[%s7631_s30 + $0x180] sm:$0xff]  ;;  %v401_v25 = vld [vmem:[%s7631_s30 + $0x188] sm:$0xff] }
  0x1d   : > { %394 = vst [vmem:[%s7639_s12 + $0xa8] sm:$0xff] %v393_v21  ;;  %396 = vst [vmem:[%s7639_s12 + $0xb0] sm:$0xff] %v395_v22  ;;  %v403_v26 = vld [vmem:[%s7631_s30 + $0x190] sm:$0xff]  ;;  %v405_v27 = vld [vmem:[%s7631_s30 + $0x198] sm:$0xff] }
  0x1e   : > { %398 = vst [vmem:[%s7639_s12 + $0xb8] sm:$0xff] %v397_v23  ;;  %400 = vst [vmem:[%s7639_s12 + $0xc0] sm:$0xff] %v399_v24  ;;  %v407_v28 = vld [vmem:[%s7631_s30 + $0x1c0] sm:$0xff]  ;;  %v409_v29 = vld [vmem:[%s7631_s30 + $0x1c8] sm:$0xff] }
  0x1f   : > { %402 = vst [vmem:[%s7639_s12 + $0xc8] sm:$0xff] %v401_v25  ;;  %404 = vst [vmem:[%s7639_s12 + $0xd0] sm:$0xff] %v403_v26  ;;  %v411_v30 = vld [vmem:[%s7631_s30 + $0x1d0] sm:$0xff]  ;;  %v413_v31 = vld [vmem:[%s7631_s30 + $0x1d8] sm:$0xff] }
  0x20   : > { %406 = vst [vmem:[%s7639_s12 + $0xd8] sm:$0xff] %v405_v27  ;;  %408 = vst [vmem:[%s7639_s12 + $0xe0] sm:$0xff] %v407_v28  ;;  %v415_v32 = vld [vmem:[%s7631_s30 + $0x200] sm:$0xff]  ;;  %v417_v33 = vld [vmem:[%s7631_s30 + $0x208] sm:$0xff] }
  0x21   : > { %410 = vst [vmem:[%s7639_s12 + $0xe8] sm:$0xff] %v409_v29  ;;  %412 = vst [vmem:[%s7639_s12 + $0xf0] sm:$0xff] %v411_v30  ;;  %v419_v34 = vld [vmem:[%s7631_s30 + $0x210] sm:$0xff]  ;;  %v421_v35 = vld [vmem:[%s7631_s30 + $0x218] sm:$0xff] }
  0x22   : > { %414 = vst [vmem:[%s7639_s12 + $0xf8] sm:$0xff] %v413_v31  ;;  %416 = vst [vmem:[%s7639_s12 + $0x100] sm:$0xff] %v415_v32  ;;  %v423_v36 = vld [vmem:[%s7631_s30 + $0x240] sm:$0xff]  ;;  %v425_v37 = vld [vmem:[%s7631_s30 + $0x248] sm:$0xff] }
  0x23   : > { %418 = vst [vmem:[%s7639_s12 + $0x108] sm:$0xff] %v417_v33  ;;  %420 = vst [vmem:[%s7639_s12 + $0x110] sm:$0xff] %v419_v34  ;;  %v427_v38 = vld [vmem:[%s7631_s30 + $0x250] sm:$0xff]  ;;  %v429_v39 = vld [vmem:[%s7631_s30 + $0x258] sm:$0xff] }
  0x24   : > { %422 = vst [vmem:[%s7639_s12 + $0x118] sm:$0xff] %v421_v35  ;;  %424 = vst [vmem:[%s7639_s12 + $0x120] sm:$0xff] %v423_v36  ;;  %v431_v40 = vld [vmem:[%s7631_s30 + $0x280] sm:$0xff]  ;;  %v433_v41 = vld [vmem:[%s7631_s30 + $0x288] sm:$0xff] }
  0x25   : > { %426 = vst [vmem:[%s7639_s12 + $0x128] sm:$0xff] %v425_v37  ;;  %428 = vst [vmem:[%s7639_s12 + $0x130] sm:$0xff] %v427_v38  ;;  %v435_v42 = vld [vmem:[%s7631_s30 + $0x290] sm:$0xff]  ;;  %v437_v43 = vld [vmem:[%s7631_s30 + $0x298] sm:$0xff] }
  0x26   : > { %430 = vst [vmem:[%s7639_s12 + $0x138] sm:$0xff] %v429_v39  ;;  %432 = vst [vmem:[%s7639_s12 + $0x140] sm:$0xff] %v431_v40  ;;  %v439_v44 = vld [vmem:[%s7631_s30 + $0x2c0] sm:$0xff]  ;;  %v441_v45 = vld [vmem:[%s7631_s30 + $0x2c8] sm:$0xff] }
  0x27   : > { %434 = vst [vmem:[%s7639_s12 + $0x148] sm:$0xff] %v433_v41  ;;  %436 = vst [vmem:[%s7639_s12 + $0x150] sm:$0xff] %v435_v42  ;;  %v443_v46 = vld [vmem:[%s7631_s30 + $0x2d0] sm:$0xff]  ;;  %v445_v47 = vld [vmem:[%s7631_s30 + $0x2d8] sm:$0xff] }
  0x28   : > { %438 = vst [vmem:[%s7639_s12 + $0x158] sm:$0xff] %v437_v43  ;;  %440 = vst [vmem:[%s7639_s12 + $0x160] sm:$0xff] %v439_v44  ;;  %v447_v48 = vld [vmem:[%s7631_s30 + $0x300] sm:$0xff]  ;;  %v449_v49 = vld [vmem:[%s7631_s30 + $0x308] sm:$0xff] }
  0x29   : > { %442 = vst [vmem:[%s7639_s12 + $0x168] sm:$0xff] %v441_v45  ;;  %444 = vst [vmem:[%s7639_s12 + $0x170] sm:$0xff] %v443_v46  ;;  %v451_v50 = vld [vmem:[%s7631_s30 + $0x310] sm:$0xff]  ;;  %v453_v51 = vld [vmem:[%s7631_s30 + $0x318] sm:$0xff] }
  0x2a   : > { %446 = vst [vmem:[%s7639_s12 + $0x178] sm:$0xff] %v445_v47  ;;  %448 = vst [vmem:[%s7639_s12 + $0x180] sm:$0xff] %v447_v48  ;;  %v455_v52 = vld [vmem:[%s7631_s30 + $0x340] sm:$0xff]  ;;  %v457_v53 = vld [vmem:[%s7631_s30 + $0x348] sm:$0xff] }
  0x2b   : > { %450 = vst [vmem:[%s7639_s12 + $0x188] sm:$0xff] %v449_v49  ;;  %452 = vst [vmem:[%s7639_s12 + $0x190] sm:$0xff] %v451_v50  ;;  %v459_v54 = vld [vmem:[%s7631_s30 + $0x350] sm:$0xff]  ;;  %v461_v55 = vld [vmem:[%s7631_s30 + $0x358] sm:$0xff] }
  0x2c   : > { %454 = vst [vmem:[%s7639_s12 + $0x198] sm:$0xff] %v453_v51  ;;  %456 = vst [vmem:[%s7639_s12 + $0x1a0] sm:$0xff] %v455_v52  ;;  %v463_v56 = vld [vmem:[%s7631_s30 + $0x380] sm:$0xff]  ;;  %v465_v57 = vld [vmem:[%s7631_s30 + $0x388] sm:$0xff] }
  0x2d   : > { %458 = vst [vmem:[%s7639_s12 + $0x1a8] sm:$0xff] %v457_v53  ;;  %460 = vst [vmem:[%s7639_s12 + $0x1b0] sm:$0xff] %v459_v54  ;;  %v467_v58 = vld [vmem:[%s7631_s30 + $0x390] sm:$0xff]  ;;  %v469_v59 = vld [vmem:[%s7631_s30 + $0x398] sm:$0xff] }
  0x2e   : > { %462 = vst [vmem:[%s7639_s12 + $0x1b8] sm:$0xff] %v461_v55  ;;  %464 = vst [vmem:[%s7639_s12 + $0x1c0] sm:$0xff] %v463_v56  ;;  %v471_v60 = vld [vmem:[%s7631_s30 + $0x3c0] sm:$0xff]  ;;  %v473_v61 = vld [vmem:[%s7631_s30 + $0x3c8] sm:$0xff] }
  0x2f   : > { %466 = vst [vmem:[%s7639_s12 + $0x1c8] sm:$0xff] %v465_v57  ;;  %468 = vst [vmem:[%s7639_s12 + $0x1d0] sm:$0xff] %v467_v58  ;;  %v475_v62 = vld [vmem:[%s7631_s30 + $0x3d0] sm:$0xff]  ;;  %v477_v63 = vld [vmem:[%s7631_s30 + $0x3d8] sm:$0xff] }
  0x30   : > { %470 = vst [vmem:[%s7639_s12 + $0x1d8] sm:$0xff] %v469_v59  ;;  %472 = vst [vmem:[%s7639_s12 + $0x1e0] sm:$0xff] %v471_v60  ;;  %v479_v0 = vld [vmem:[%s7631_s30 + $0x400] sm:$0xff]  ;;  %v481_v1 = vld [vmem:[%s7631_s30 + $0x408] sm:$0xff] }
  0x31   : > { %474 = vst [vmem:[%s7639_s12 + $0x1e8] sm:$0xff] %v473_v61  ;;  %476 = vst [vmem:[%s7639_s12 + $0x1f0] sm:$0xff] %v475_v62  ;;  %v483_v2 = vld [vmem:[%s7631_s30 + $0x410] sm:$0xff]  ;;  %v485_v3 = vld [vmem:[%s7631_s30 + $0x418] sm:$0xff] }
  0x32   : > { %478 = vst [vmem:[%s7639_s12 + $0x1f8] sm:$0xff] %v477_v63  ;;  %480 = vst [vmem:[%s7639_s12 + $0x200] sm:$0xff] %v479_v0  ;;  %v487_v4 = vld [vmem:[%s7631_s30 + $0x440] sm:$0xff]  ;;  %v489_v5 = vld [vmem:[%s7631_s30 + $0x448] sm:$0xff] }
  0x33   : > { %482 = vst [vmem:[%s7639_s12 + $0x208] sm:$0xff] %v481_v1  ;;  %484 = vst [vmem:[%s7639_s12 + $0x210] sm:$0xff] %v483_v2  ;;  %v491_v6 = vld [vmem:[%s7631_s30 + $0x450] sm:$0xff]  ;;  %v493_v7 = vld [vmem:[%s7631_s30 + $0x458] sm:$0xff] }
  0x34   : > { %486 = vst [vmem:[%s7639_s12 + $0x218] sm:$0xff] %v485_v3  ;;  %488 = vst [vmem:[%s7639_s12 + $0x220] sm:$0xff] %v487_v4  ;;  %v495_v8 = vld [vmem:[%s7631_s30 + $0x480] sm:$0xff]  ;;  %v497_v9 = vld [vmem:[%s7631_s30 + $0x488] sm:$0xff] }
  0x35   : > { %490 = vst [vmem:[%s7639_s12 + $0x228] sm:$0xff] %v489_v5  ;;  %492 = vst [vmem:[%s7639_s12 + $0x230] sm:$0xff] %v491_v6  ;;  %v499_v10 = vld [vmem:[%s7631_s30 + $0x490] sm:$0xff]  ;;  %v501_v11 = vld [vmem:[%s7631_s30 + $0x498] sm:$0xff] }
  0x36   : > { %494 = vst [vmem:[%s7639_s12 + $0x238] sm:$0xff] %v493_v7  ;;  %496 = vst [vmem:[%s7639_s12 + $0x240] sm:$0xff] %v495_v8  ;;  %v503_v12 = vld [vmem:[%s7631_s30 + $0x4c0] sm:$0xff]  ;;  %v505_v13 = vld [vmem:[%s7631_s30 + $0x4c8] sm:$0xff] }
  0x37   : > { %498 = vst [vmem:[%s7639_s12 + $0x248] sm:$0xff] %v497_v9  ;;  %500 = vst [vmem:[%s7639_s12 + $0x250] sm:$0xff] %v499_v10  ;;  %v507_v14 = vld [vmem:[%s7631_s30 + $0x4d0] sm:$0xff]  ;;  %v509_v15 = vld [vmem:[%s7631_s30 + $0x4d8] sm:$0xff] }
  0x38   : > { %502 = vst [vmem:[%s7639_s12 + $0x258] sm:$0xff] %v501_v11  ;;  %504 = vst [vmem:[%s7639_s12 + $0x260] sm:$0xff] %v503_v12 }
  0x39   : > { %506 = vst [vmem:[%s7639_s12 + $0x268] sm:$0xff] %v505_v13  ;;  %508 = vst [vmem:[%s7639_s12 + $0x270] sm:$0xff] %v507_v14 }
  0x3a   : > { %510 = vst [vmem:[%s7639_s12 + $0x278] sm:$0xff] %v509_v15 }
  0x3b PF: > { %p5320_p5 = scmp.ge.s32.totalorder %s7532_s19, 1  ;;  %p515_p6 = scmp.lt.s32.totalorder %s7532_s19, 3 }
  0x3d   : > { %p516_p7 = pnand %p5320_p5, %p515_p6 }
  0x3f   : > { %519 = sbr.rel (%p516_p7) target bundleno = 1835 (0x72b), region = 83 }
  0x46   : > { %v589_v16 = vld [vmem:[%s11160_s1 + $0x8] sm:$0xff]  ;;  %v591_v17 = vld [vmem:[%s11160_s1 + $0x18] sm:$0xff]  ;;  %v588_v21 = vld [vmem:[%s11160_s1] sm:$0xff]  ;;  %s522_s15 = sand.u32 1, %s7524_s17   ;;  %vm652_vm0 = vcmask 1014784   ;;  %vm683_vm1 = vcmask 1043456  }
  0x47   : > { %v5336_v18 = vld [vmem:[%s11160_s1 + $0x208] sm:$0xff]  ;;  %v7806_v19 = vpack.c.bf16 %v591_v17, %v589_v16  ;;  %v5338_v20 = vld [vmem:[%s11160_s1 + $0x218] sm:$0xff]  ;;  %v590_v22 = vld [vmem:[%s11160_s1 + $0x10] sm:$0xff]  ;;  %s8163_s12 = smul.u32 640, %s522_s15  ;;  %vm7534_vm2 = vmmov 1   ;;  %vm1425_vm4 = vcmask 261120  }
  0x48   : > { %v7817_v23 = vpack.c.bf16 %v5338_v20, %v5336_v18  ;;  %v7819_v24 = vpack.c.bf16 %v590_v22, %v588_v21  ;;  %v5335_v25 = vld [vmem:[%s11160_s1 + $0x200] sm:$0xff]  ;;  %v5337_v26 = vld [vmem:[%s11160_s1 + $0x210] sm:$0xff]  ;;  %v593_v27 = vld [vmem:[%s11160_s1 + $0x28] sm:$0xff]  ;;  %vm4747_vm5 = vcmask 392192   ;;  %vm5248_vm6 = vcmask 80896  }
  0x49   : > { %6036 = vmatprep.subr.bf16.mxu0 %v7806_v19  ;;  %v7831_v28 = vpack.c.bf16 %v5337_v26, %v5335_v25  ;;  %v595_v29 = vld [vmem:[%s11160_s1 + $0x38] sm:$0xff]  ;;  %v5340_v30 = vld [vmem:[%s11160_s1 + $0x228] sm:$0xff]  ;;  %v592_v34 = vld [vmem:[%s11160_s1 + $0x20] sm:$0xff]  ;;  %s8235_s15 = scalar_lea.vmem [#allocation3], %s8163_s12  ;;  %s5321_s12 = sshll.u32 %s5313_s20, 1 }
  0x4a   : > { %v5342_v31 = vld [vmem:[%s11160_s1 + $0x238] sm:$0xff]  ;;  %6102 = vmatprep.subr.bf16.mxu1 %v7817_v23  ;;  %6038 = vmatpush1.bf16.msra.mxu0 %v7819_v24  ;;  %v7844_v32 = vpack.c.bf16 %v595_v29, %v593_v27  ;;  %v594_v35 = vld [vmem:[%s11160_s1 + $0x30] sm:$0xff]  ;;  %v5339_v36 = vld [vmem:[%s11160_s1 + $0x220] sm:$0xff]  ;;  %p563_p8 = scmp.lt.s32.totalorder %s5321_s12, 3 }
  0x4b   : > { %v7846_v33 = vpack.c.bf16 %v5342_v31, %v5340_v30  ;;  %6104 = vmatpush1.bf16.msra.mxu1 %v7831_v28  ;;  %v7858_v37 = vpack.c.bf16 %v594_v35, %v592_v34  ;;  %v5341_v38 = vld [vmem:[%s11160_s1 + $0x230] sm:$0xff]  ;;  %v597_v39 = vld [vmem:[%s11160_s1 + $0x48] sm:$0xff]  ;;  %v599_v40 = vld [vmem:[%s11160_s1 + $0x58] sm:$0xff] }
  0x4c   : > { %6040 = vmatprep.subr.bf16.mxu0 %v7844_v32  ;;  %v7871_v41 = vpack.c.bf16 %v5341_v38, %v5339_v36  ;;  %v7873_v42 = vpack.c.bf16 %v599_v40, %v597_v39  ;;  %v5344_v43 = vld [vmem:[%s11160_s1 + $0x248] sm:$0xff]  ;;  %v5346_v44 = vld [vmem:[%s11160_s1 + $0x258] sm:$0xff]  ;;  %v596_v45 = vld [vmem:[%s11160_s1 + $0x40] sm:$0xff]  ;;  %s11461_s12 = smov (!%p563_p8, %s5321_s12), 3 }
  0x4d   : > { %6106 = vmatprep.subr.bf16.mxu1 %v7846_v33  ;;  %v7884_v46 = vpack.c.bf16 %v5346_v44, %v5344_v43  ;;  %v598_v47 = vld [vmem:[%s11160_s1 + $0x50] sm:$0xff]  ;;  %v5343_v48 = vld [vmem:[%s11160_s1 + $0x240] sm:$0xff]  ;;  %v601_v51 = vld [vmem:[%s11160_s1 + $0x68] sm:$0xff]  ;;  %s5322_s28 = sshll.u32 %s11461_s12, 3 }
  0x4e   : > { %v5345_v49 = vld [vmem:[%s11160_s1 + $0x250] sm:$0xff]  ;;  %6042 = vmatpush1.bf16.msra.mxu0 %v7858_v37  ;;  %v7896_v50 = vpack.c.bf16 %v598_v47, %v596_v45  ;;  %v603_v52 = vld [vmem:[%s11160_s1 + $0x78] sm:$0xff]  ;;  %v5348_v53 = vld [vmem:[%s11160_s1 + $0x268] sm:$0xff]  ;;  %s566_s14 = scalar_lea.vmem %s11170_s11, %s5322_s28 }
  0x4f   : > { %6108 = vmatpush1.bf16.msra.mxu1 %v7871_v41  ;;  %6044 = vmatprep.subr.bf16.mxu0 %v7873_v42  ;;  %v7909_v54 = vpack.c.bf16 %v5345_v49, %v5343_v48  ;;  %v7911_v55 = vpack.c.bf16 %v603_v52, %v601_v51  ;;  %v5350_v56 = vld [vmem:[%s11160_s1 + $0x278] sm:$0xff]  ;;  %v600_v57 = vld [vmem:[%s11160_s1 + $0x60] sm:$0xff]  ;;  %v602_v58 = vld [vmem:[%s11160_s1 + $0x70] sm:$0xff] }
  0x50   : > { %6110 = vmatprep.subr.bf16.mxu1 %v7884_v46  ;;  %v7923_v59 = vpack.c.bf16 %v5350_v56, %v5348_v53  ;;  %v5347_v60 = vld [vmem:[%s11160_s1 + $0x260] sm:$0xff]  ;;  %v5349_v61 = vld [vmem:[%s11160_s1 + $0x270] sm:$0xff]  ;;  %v605_v62 = vld [vmem:[%s11160_s1 + $0x88] sm:$0xff]  ;;  %v7944_v2 = vpack.c.bf16 %v602_v58, %v600_v57 }
  0x51   : > { %v607_v63 = vld [vmem:[%s11160_s1 + $0x98] sm:$0xff]  ;;  %v5352_v0 = vld [vmem:[%s11160_s1 + $0x288] sm:$0xff]  ;;  %v7948_v3 = vpack.c.bf16 %v5349_v61, %v5347_v60  ;;  %v604_v5 = vld [vmem:[%s11160_s1 + $0x80] sm:$0xff] }
  0x52   : > { %v5354_v1 = vld [vmem:[%s11160_s1 + $0x298] sm:$0xff]  ;;  %6046 = vmatpush1.bf16.msra.mxu0 %v7896_v50  ;;  %v7950_v4 = vpack.c.bf16 %v607_v63, %v605_v62  ;;  %v606_v6 = vld [vmem:[%s11160_s1 + $0x90] sm:$0xff]  ;;  %v5351_v7 = vld [vmem:[%s11160_s1 + $0x280] sm:$0xff] }
  0x53   : > { %6112 = vmatpush1.bf16.msra.mxu1 %v7909_v54  ;;  %6048 = vmatprep.subr.bf16.mxu0 %v7911_v55  ;;  %v7962_v8 = vpack.c.bf16 %v5354_v1, %v5352_v0  ;;  %v5353_v9 = vld [vmem:[%s11160_s1 + $0x290] sm:$0xff]  ;;  %v609_v10 = vld [vmem:[%s11160_s1 + $0xa8] sm:$0xff]  ;;  %v611_v11 = vld [vmem:[%s11160_s1 + $0xb8] sm:$0xff]  ;;  %v7980_v14 = vpack.c.bf16 %v606_v6, %v604_v5 }
  0x54   : > { %6114 = vmatprep.subr.bf16.mxu1 %v7923_v59  ;;  %v5356_v12 = vld [vmem:[%s11160_s1 + $0x2a8] sm:$0xff]  ;;  %v5358_v13 = vld [vmem:[%s11160_s1 + $0x2b8] sm:$0xff]  ;;  %v7984_v15 = vpack.c.bf16 %v5353_v9, %v5351_v7  ;;  %v7986_v16 = vpack.c.bf16 %v611_v11, %v609_v10  ;;  %v608_v17 = vld [vmem:[%s11160_s1 + $0xa0] sm:$0xff] }
  0x55   : > { %v610_v18 = vld [vmem:[%s11160_s1 + $0xb0] sm:$0xff]  ;;  %v5355_v20 = vld [vmem:[%s11160_s1 + $0x2a0] sm:$0xff]  ;;  %v7998_v21 = vpack.c.bf16 %v5358_v13, %v5356_v12  ;;  %v613_v25 = vld [vmem:[%s11160_s1 + $0xc8] sm:$0xff] }
  0x56   : > { %6050 = vmatpush1.bf16.msra.mxu0 %v7944_v2  ;;  %v5357_v22 = vld [vmem:[%s11160_s1 + $0x2b0] sm:$0xff]  ;;  %v615_v26 = vld [vmem:[%s11160_s1 + $0xd8] sm:$0xff]  ;;  %v5360_v27 = vld [vmem:[%s11160_s1 + $0x2c8] sm:$0xff]  ;;  %v8016_v30 = vpack.c.bf16 %v610_v18, %v608_v17 }
  0x57   : > { %6116 = vmatpush1.bf16.msra.mxu1 %v7948_v3  ;;  %6052 = vmatprep.subr.bf16.mxu0 %v7950_v4  ;;  %v5362_v29 = vld [vmem:[%s11160_s1 + $0x2d8] sm:$0xff]  ;;  %v8020_v31 = vpack.c.bf16 %v5357_v22, %v5355_v20  ;;  %v8022_v34 = vpack.c.bf16 %v615_v26, %v613_v25  ;;  %v612_v35 = vld [vmem:[%s11160_s1 + $0xc0] sm:$0xff]  ;;  %v614_v36 = vld [vmem:[%s11160_s1 + $0xd0] sm:$0xff] }
  0x58   : > { %6118 = vmatprep.subr.bf16.mxu1 %v7962_v8  ;;  %v5359_v38 = vld [vmem:[%s11160_s1 + $0x2c0] sm:$0xff]  ;;  %v8034_v39 = vpack.c.bf16 %v5362_v29, %v5360_v27  ;;  %v5361_v40 = vld [vmem:[%s11160_s1 + $0x2d0] sm:$0xff]  ;;  %v617_v43 = vld [vmem:[%s11160_s1 + $0xe8] sm:$0xff]  ;;  %v8052_v48 = vpack.c.bf16 %v614_v36, %v612_v35 }
  0x59   : > { %v619_v44 = vld [vmem:[%s11160_s1 + $0xf8] sm:$0xff]  ;;  %v5364_v45 = vld [vmem:[%s11160_s1 + $0x2e8] sm:$0xff]  ;;  %v8056_v49 = vpack.c.bf16 %v5361_v40, %v5359_v38  ;;  %v616_v52 = vld [vmem:[%s11160_s1 + $0xe0] sm:$0xff] }
  0x5a   : > { %6054 = vmatpush1.bf16.msra.mxu0 %v7980_v14  ;;  %v5366_v47 = vld [vmem:[%s11160_s1 + $0x2f8] sm:$0xff]  ;;  %v8058_v51 = vpack.c.bf16 %v619_v44, %v617_v43  ;;  %v618_v53 = vld [vmem:[%s11160_s1 + $0xf0] sm:$0xff]  ;;  %v5363_v56 = vld [vmem:[%s11160_s1 + $0x2e0] sm:$0xff] }
  0x5b   : > { %6120 = vmatpush1.bf16.msra.mxu1 %v7984_v15  ;;  %6056 = vmatprep.subr.bf16.mxu0 %v7986_v16  ;;  %v8070_v57 = vpack.c.bf16 %v5366_v47, %v5364_v45  ;;  %v5365_v58 = vld [vmem:[%s11160_s1 + $0x2f0] sm:$0xff]  ;;  %v621_v60 = vld [vmem:[%s11160_s1 + $0x108] sm:$0xff]  ;;  %v623_v61 = vld [vmem:[%s11160_s1 + $0x118] sm:$0xff]  ;;  %v8088_v0 = vpack.c.bf16 %v618_v53, %v616_v52 }
  0x5c   : > { %6122 = vmatprep.subr.bf16.mxu1 %v7998_v21  ;;  %v5368_v62 = vld [vmem:[%s11160_s1 + $0x308] sm:$0xff]  ;;  %v5370_v63 = vld [vmem:[%s11160_s1 + $0x318] sm:$0xff]  ;;  %v8092_v1 = vpack.c.bf16 %v5365_v58, %v5363_v56  ;;  %v8094_v5 = vpack.c.bf16 %v623_v61, %v621_v60  ;;  %v620_v6 = vld [vmem:[%s11160_s1 + $0x100] sm:$0xff] }
  0x5d   : > { %v622_v7 = vld [vmem:[%s11160_s1 + $0x110] sm:$0xff]  ;;  %v5367_v9 = vld [vmem:[%s11160_s1 + $0x300] sm:$0xff]  ;;  %v8106_v10 = vpack.c.bf16 %v5370_v63, %v5368_v62  ;;  %v625_v12 = vld [vmem:[%s11160_s1 + $0x128] sm:$0xff] }
  0x5e   : > { %6058 = vmatpush1.bf16.msra.mxu0 %v8016_v30  ;;  %v5369_v11 = vld [vmem:[%s11160_s1 + $0x310] sm:$0xff]  ;;  %v627_v13 = vld [vmem:[%s11160_s1 + $0x138] sm:$0xff]  ;;  %v5372_v17 = vld [vmem:[%s11160_s1 + $0x328] sm:$0xff]  ;;  %v8124_v20 = vpack.c.bf16 %v622_v7, %v620_v6 }
  0x5f   : > { %6124 = vmatpush1.bf16.msra.mxu1 %v8020_v31  ;;  %6060 = vmatprep.subr.bf16.mxu0 %v8022_v34  ;;  %v5374_v18 = vld [vmem:[%s11160_s1 + $0x338] sm:$0xff]  ;;  %v8128_v22 = vpack.c.bf16 %v5369_v11, %v5367_v9  ;;  %v8130_v25 = vpack.c.bf16 %v627_v13, %v625_v12  ;;  %v624_v26 = vld [vmem:[%s11160_s1 + $0x120] sm:$0xff]  ;;  %v626_v27 = vld [vmem:[%s11160_s1 + $0x130] sm:$0xff] }
  0x60   : > { %6126 = vmatprep.subr.bf16.mxu1 %v8034_v39  ;;  %v5371_v29 = vld [vmem:[%s11160_s1 + $0x320] sm:$0xff]  ;;  %v8143_v35 = vpack.c.bf16 %v5374_v18, %v5372_v17  ;;  %v5373_v36 = vld [vmem:[%s11160_s1 + $0x330] sm:$0xff]  ;;  %v629_v38 = vld [vmem:[%s11160_s1 + $0x148] sm:$0xff]  ;;  %v8161_v45 = vpack.c.bf16 %v626_v27, %v624_v26 }
  0x61   : > { %v631_v40 = vld [vmem:[%s11160_s1 + $0x158] sm:$0xff]  ;;  %v5376_v43 = vld [vmem:[%s11160_s1 + $0x348] sm:$0xff]  ;;  %v8167_v47 = vpack.c.bf16 %v5373_v36, %v5371_v29  ;;  %v628_v53 = vld [vmem:[%s11160_s1 + $0x140] sm:$0xff] }
  0x62   : > { %6062 = vmatpush1.bf16.msra.mxu0 %v8052_v48  ;;  %v5378_v44 = vld [vmem:[%s11160_s1 + $0x358] sm:$0xff]  ;;  %v8169_v52 = vpack.c.bf16 %v631_v40, %v629_v38  ;;  %v630_v56 = vld [vmem:[%s11160_s1 + $0x150] sm:$0xff]  ;;  %v5375_v58 = vld [vmem:[%s11160_s1 + $0x340] sm:$0xff] }
  0x63   : > { %6128 = vmatpush1.bf16.msra.mxu1 %v8056_v49  ;;  %6064 = vmatprep.subr.bf16.mxu0 %v8058_v51  ;;  %v8181_v60 = vpack.c.bf16 %v5378_v44, %v5376_v43  ;;  %v5377_v61 = vld [vmem:[%s11160_s1 + $0x350] sm:$0xff]  ;;  %v633_v62 = vld [vmem:[%s11160_s1 + $0x168] sm:$0xff]  ;;  %v635_v63 = vld [vmem:[%s11160_s1 + $0x178] sm:$0xff]  ;;  %v8199_v9 = vpack.c.bf16 %v630_v56, %v628_v53 }
  0x64   : > { %6130 = vmatprep.subr.bf16.mxu1 %v8070_v57  ;;  %v5380_v6 = vld [vmem:[%s11160_s1 + $0x368] sm:$0xff]  ;;  %v5382_v7 = vld [vmem:[%s11160_s1 + $0x378] sm:$0xff]  ;;  %v8203_v11 = vpack.c.bf16 %v5377_v61, %v5375_v58  ;;  %v8205_v12 = vpack.c.bf16 %v635_v63, %v633_v62  ;;  %v632_v13 = vld [vmem:[%s11160_s1 + $0x160] sm:$0xff] }
  0x65   : > { %v634_v17 = vld [vmem:[%s11160_s1 + $0x170] sm:$0xff]  ;;  %v5379_v18 = vld [vmem:[%s11160_s1 + $0x360] sm:$0xff]  ;;  %v8217_v26 = vpack.c.bf16 %v5382_v7, %v5380_v6  ;;  %v637_v29 = vld [vmem:[%s11160_s1 + $0x188] sm:$0xff] }
  0x66   : > { %6066 = vmatpush1.bf16.msra.mxu0 %v8088_v0  ;;  %11261 = vst [vmem:[#allocation4_spill] sm:$0xff] %v8203_v11  ;;  %v5381_v27 = vld [vmem:[%s11160_s1 + $0x370] sm:$0xff]  ;;  %v639_v36 = vld [vmem:[%s11160_s1 + $0x198] sm:$0xff]  ;;  %v5384_v38 = vld [vmem:[%s11160_s1 + $0x388] sm:$0xff]  ;;  %v8239_v44 = vpack.c.bf16 %v634_v17, %v632_v13 }
  0x67   : > { %6132 = vmatpush1.bf16.msra.mxu1 %v8092_v1  ;;  %6068 = vmatprep.subr.bf16.mxu0 %v8094_v5  ;;  %v5386_v40 = vld [vmem:[%s11160_s1 + $0x398] sm:$0xff]  ;;  %v569_v43 = vld [vmem:[%s8235_s15 + $0x8] sm:$0xff]  ;;  %v8244_v53 = vpack.c.bf16 %v5381_v27, %v5379_v18  ;;  %v8246_v56 = vpack.c.bf16 %v639_v36, %v637_v29  ;;  %v636_v58 = vld [vmem:[%s11160_s1 + $0x180] sm:$0xff] }
  0x68   : > { %6134 = vmatprep.subr.bf16.mxu1 %v8106_v10  ;;  %5325 = vmatprep.mubr.msk.f32.mxu0 %vm652_vm0, %v569_v43  ;;  %v638_v61 = vld [vmem:[%s11160_s1 + $0x190] sm:$0xff]  ;;  %v5383_v62 = vld [vmem:[%s11160_s1 + $0x380] sm:$0xff]  ;;  %v8258_v63 = vpack.c.bf16 %v5386_v40, %v5384_v38  ;;  %v641_v7 = vld [vmem:[%s11160_s1 + $0x1a8] sm:$0xff] }
  0x69   : > { %11262 = vst [vmem:[#allocation5_spill] sm:$0xff] %v8244_v53  ;;  %11263 = vst [vmem:[#allocation6_spill] sm:$0xff] %v8246_v56  ;;  %v5385_v6 = vld [vmem:[%s11160_s1 + $0x390] sm:$0xff]  ;;  %v643_v13 = vld [vmem:[%s11160_s1 + $0x1b8] sm:$0xff]  ;;  %5401 = vmatprep.mubr.msk.f32.mxu1 %vm652_vm0, %v569_v43  ;;  %v8277_v27 = vpack.c.bf16 %v638_v61, %v636_v58 }
  0x6a   : > { %6070 = vmatpush1.bf16.msra.mxu0 %v8124_v20  ;;  %11264 = vst [vmem:[#allocation7_spill] sm:$0xff] %v8258_v63  ;;  %v5388_v17 = vld [vmem:[%s11160_s1 + $0x3a8] sm:$0xff]  ;;  %v5390_v18 = vld [vmem:[%s11160_s1 + $0x3b8] sm:$0xff]  ;;  %v8281_v29 = vpack.c.bf16 %v5385_v6, %v5383_v62  ;;  %v8283_v36 = vpack.c.bf16 %v643_v13, %v641_v7  ;;  %v640_v38 = vld [vmem:[%s11160_s1 + $0x1a0] sm:$0xff] }
  0x6b   : > { %6136 = vmatpush1.bf16.msra.mxu1 %v8128_v22  ;;  %6072 = vmatprep.subr.bf16.mxu0 %v8130_v25  ;;  %11265 = vst [vmem:[#allocation8_spill] sm:$0xff] %v8277_v27  ;;  %v642_v40 = vld [vmem:[%s11160_s1 + $0x1b0] sm:$0xff]  ;;  %v5387_v43 = vld [vmem:[%s11160_s1 + $0x3a0] sm:$0xff]  ;;  %v8295_v58 = vpack.c.bf16 %v5390_v18, %v5388_v17  ;;  %v645_v62 = vld [vmem:[%s11160_s1 + $0x1c8] sm:$0xff] }
  0x6c   : > { %6138 = vmatprep.subr.bf16.mxu1 %v8143_v35  ;;  %11266 = vst [vmem:[#allocation9_spill] sm:$0xff] %v8281_v29  ;;  %11267 = vst [vmem:[#allocation10_spill] sm:$0xff] %v8283_v36  ;;  %v5389_v61 = vld [vmem:[%s11160_s1 + $0x3b0] sm:$0xff]  ;;  %v647_v6 = vld [vmem:[%s11160_s1 + $0x1d8] sm:$0xff]  ;;  %v8313_v17 = vpack.c.bf16 %v642_v40, %v640_v38 }
  0x6d   : > { %11268 = vst [vmem:[#allocation11_spill] sm:$0xff] %v8295_v58  ;;  %v5392_v7 = vld [vmem:[%s11160_s1 + $0x3c8] sm:$0xff]  ;;  %v5394_v13 = vld [vmem:[%s11160_s1 + $0x3d8] sm:$0xff]  ;;  %v8317_v18 = vpack.c.bf16 %v5389_v61, %v5387_v43  ;;  %v5391_v38 = vld [vmem:[%s11160_s1 + $0x3c0] sm:$0xff] }
  0x6e   : > { %6074 = vmatpush1.bf16.msra.mxu0 %v8161_v45  ;;  %11269 = vst [vmem:[#allocation12_spill] sm:$0xff] %v8313_v17  ;;  %v8331_v40 = vpack.c.bf16 %v5394_v13, %v5392_v7  ;;  %v5393_v43 = vld [vmem:[%s11160_s1 + $0x3d0] sm:$0xff]  ;;  %v8339_v61 = vld [vmem:[%s11160_s1 + $0x1e8] sm:$0xff]  ;;  %v5398_v7 = vld [vmem:[%s11160_s1 + $0x3f8] sm:$0xf] }
  0x6f   : > { %6140 = vmatpush1.bf16.msra.mxu1 %v8167_v47  ;;  %6076 = vmatprep.subr.bf16.mxu0 %v8169_v52  ;;  %11272 = vst [vmem:[#allocation15_spill] sm:$0xff] %v8339_v61  ;;  %vm8371_vm3 = vmpackc.low %vm683_vm1, %vm7534_vm2 }
  0x70   : > { %6142 = vmatprep.subr.bf16.mxu1 %v8181_v60  ;;  %11271 = vst [vmem:[#allocation14_spill] sm:$0xff] %v8331_v40 }
  0x72   : > { %6078 = vmatpush1.bf16.msra.mxu0 %v8199_v9 }
  0x73   : > { %6144 = vmatpush1.bf16.msra.mxu1 %v8203_v11  ;;  %6080 = vmatprep.subr.bf16.mxu0 %v8205_v12 }
  0x74   : > { %6146 = vmatprep.subr.bf16.mxu1 %v8217_v26 }
  0x76   : > { %6082 = vmatpush1.bf16.msra.mxu0 %v8239_v44 }
  0x77   : > { %6148 = vmatpush1.bf16.msra.mxu1 %v8244_v53  ;;  %6084 = vmatprep.subr.bf16.mxu0 %v8246_v56  ;;  %v644_v56 = vld [vmem:[%s11160_s1 + $0x1c0] sm:$0xff]  ;;  %v646_v53 = vld [vmem:[%s11160_s1 + $0x1d0] sm:$0xff] }
  0x78   : > { %6150 = vmatprep.subr.bf16.mxu1 %v8258_v63  ;;  %v8319_v63 = vpack.c.bf16 %v647_v6, %v645_v62  ;;  %v651_v62 = vld [vmem:[%s11160_s1 + $0x1f8] sm:$0xf]  ;;  %v8347_v6 = vld [vmem:[%s11160_s1 + $0x3e8] sm:$0xff]  ;;  %v8353_v13 = vpack.c.bf16 %v646_v53, %v644_v56  ;;  %v650_v53 = vld [vmem:[%s11160_s1 + $0x1f0] sm:$0xf] }
  0x79   : > { %11273 = vst [vmem:[#allocation16_spill] sm:$0xff] %v8347_v6 }
  0x7a   : > { %6086 = vmatpush1.bf16.msra.mxu0 %v8277_v27  ;;  %11270 = vst [vmem:[#allocation13_spill] sm:$0xff] %v8319_v63 }
  0x7b   : > { %6152 = vmatpush1.bf16.msra.mxu1 %v8281_v29  ;;  %6088 = vmatprep.subr.bf16.mxu0 %v8283_v36  ;;  %v8360_v36 = vpack.c.bf16 %v651_v62, %v8339_v61  ;;  %v8365_v29 = vld [vmem:[%s11160_s1 + $0x1e0] sm:$0xff]  ;;  %v5397_v62 = vld [vmem:[%s11160_s1 + $0x3f0] sm:$0xf] }
  0x7c   : > { %6154 = vmatprep.subr.bf16.mxu1 %v8295_v58  ;;  %v8357_v58 = vpack.c.bf16 %v5393_v43, %v5391_v38  ;;  %11274 = vst [vmem:[#allocation17_spill] sm:$0xff] %v8365_v29  ;;  %v8376_v38 = vpack.c.bf16 %v5398_v7, %v8347_v6  ;;  %v8381_v43 = vld [vmem:[%s11160_s1 + $0x3e0] sm:$0xff]  ;;  %v8388_v61 = vpack.c.bf16 %v650_v53, %v8365_v29  ;;  %v573_v29 = vld [vmem:[%s8235_s15 + $0x28] sm:$0xff]  ;;  %v574_v6 = vld [vmem:[%s8235_s15 + $0x30] sm:$0xff] }
  0x7d   : > { %11277 = vst [vmem:[#allocation18_spill] sm:$0xff] %v8381_v43  ;;  %v8395_v7 = vpack.c.bf16 %v5397_v62, %v8381_v43  ;;  %v568_v53 = vld [vmem:[%s8235_s15] sm:$0xff]  ;;  %v571_v62 = vld [vmem:[%s8235_s15 + $0x18] sm:$0xff]  ;;  %v570_v43 = vld [vmem:[%s8235_s15 + $0x10] sm:$0xff] }
  0x7e   : > { %6090 = vmatpush1.bf16.msra.mxu0 %v8313_v17 }
  0x7f   : > { %6156 = vmatpush1.bf16.msra.mxu1 %v8317_v18  ;;  %6092 = vmatprep.subr.bf16.mxu0 %v8319_v63 }
  0x80   : > { %6158 = vmatprep.subr.bf16.mxu1 %v8331_v40 }
  0x82   : > { %6094 = vmatpush1.bf16.msra.mxu0 %v8353_v13 }
  0x83   : > { %6160 = vmatpush1.bf16.msra.mxu1 %v8357_v58  ;;  %6097 = vmatprep.subr.msk.bf16.mxu0 %vm8371_vm3, %v8360_v36 }
  0x84   : > { %6163 = vmatprep.subr.msk.bf16.mxu1 %vm8371_vm3, %v8376_v38 }
  0x86   : > { %6100 = vmatpush1.bf16.msk.msra.mxu0 %vm8371_vm3, %v8388_v61 }
  0x87   : > { %6166 = vmatpush1.bf16.msk.msra.mxu1 %vm8371_vm3, %v8395_v7  ;;  %6168 = vmatprep.subr.bf16.mxu0 %v7806_v19 }
  0x88   : > { %6234 = vmatprep.subr.bf16.mxu1 %v7817_v23 }
  0x89   : > { %755 = vmatmul.mubr.f32.vlgmr.msra.gmra.mrb[0].mxu0 %v568_v53 }
  0x8a   : > { %951 = vmatmul.mubr.f32.vlgmr.msra.gmra.mrb[0].mxu1 %v568_v53  ;;  %6170 = vmatpush1.bf16.msra.mxu0 %v7819_v24  ;;  %v572_v53 = vld [vmem:[%s8235_s15 + $0x20] sm:$0xff] }
  0x8b   : > { %6236 = vmatpush1.bf16.msra.mxu1 %v7831_v28  ;;  %6172 = vmatprep.subr.bf16.mxu0 %v7844_v32 }
  0x8c   : > { %6238 = vmatprep.subr.bf16.mxu1 %v7846_v33  ;;  %5326 = vmatprep.mubr.msk.f32.mxu0 %vm652_vm0, %v571_v62 }
  0x8d   : > { %5402 = vmatprep.mubr.msk.f32.mxu1 %vm652_vm0, %v571_v62  ;;  %761 = vmatmul.mubr.f32.gmra.mrb[2].mxu0 %v570_v43  ;;  %v575_v62 = vld [vmem:[%s8235_s15 + $0x38] sm:$0xff] }
  0x8e   : > { %6174 = vmatpush1.bf16.msra.mxu0 %v7858_v37  ;;  %957 = vmatmul.mubr.f32.gmra.mrb[2].mxu1 %v570_v43  ;;  %v576_v43 = vld [vmem:[%s8235_s15 + $0x40] sm:$0xff] }
  0x8f   : > { %6240 = vmatpush1.bf16.msra.mxu1 %v7871_v41  ;;  %6176 = vmatprep.subr.bf16.mxu0 %v7873_v42 }
  0x90   : > { %6242 = vmatprep.subr.bf16.mxu1 %v7884_v46  ;;  %5327 = vmatprep.mubr.msk.f32.mxu0 %vm652_vm0, %v573_v29 }
  0x91   : > { %5403 = vmatprep.mubr.msk.f32.mxu1 %vm652_vm0, %v573_v29  ;;  %767 = vmatmul.mubr.f32.gmra.mrb[4].mxu0 %v572_v53  ;;  %v577_v29 = vld [vmem:[%s8235_s15 + $0x48] sm:$0xff] }
  0x92   : > { %6178 = vmatpush1.bf16.msra.mxu0 %v7896_v50  ;;  %963 = vmatmul.mubr.f32.gmra.mrb[4].mxu1 %v572_v53  ;;  %v579_v53 = vld [vmem:[%s8235_s15 + $0x58] sm:$0xff] }
  0x93   : > { %6244 = vmatpush1.bf16.msra.mxu1 %v7909_v54  ;;  %6180 = vmatprep.subr.bf16.mxu0 %v7911_v55 }
  0x94   : > { %6246 = vmatprep.subr.bf16.mxu1 %v7923_v59  ;;  %5328 = vmatprep.mubr.msk.f32.mxu0 %vm652_vm0, %v575_v62 }
  0x95   : > { %5404 = vmatprep.mubr.msk.f32.mxu1 %vm652_vm0, %v575_v62  ;;  %773 = vmatmul.mubr.f32.gmra.mrb[6].mxu0 %v574_v6  ;;  %v578_v62 = vld [vmem:[%s8235_s15 + $0x50] sm:$0xff] }
  0x96   : > { %6182 = vmatpush1.bf16.msra.mxu0 %v7944_v2  ;;  %969 = vmatmul.mubr.f32.gmra.mrb[6].mxu1 %v574_v6  ;;  %v581_v6 = vld [vmem:[%s8235_s15 + $0x68] sm:$0xff] }
  0x97   : > { %6248 = vmatpush1.bf16.msra.mxu1 %v7948_v3  ;;  %6184 = vmatprep.subr.bf16.mxu0 %v7950_v4 }
  0x98   : > { %6250 = vmatprep.subr.bf16.mxu1 %v7962_v8  ;;  %5329 = vmatprep.mubr.msk.f32.mxu0 %vm652_vm0, %v577_v29 }
  0x99   : > { %5405 = vmatprep.mubr.msk.f32.mxu1 %vm652_vm0, %v577_v29  ;;  %779 = vmatmul.mubr.f32.gmra.mrb[8].mxu0 %v576_v43  ;;  %v580_v29 = vld [vmem:[%s8235_s15 + $0x60] sm:$0xff] }
  0x9a   : > { %6186 = vmatpush1.bf16.msra.mxu0 %v7980_v14  ;;  %975 = vmatmul.mubr.f32.gmra.mrb[8].mxu1 %v576_v43  ;;  %v583_v43 = vld [vmem:[%s8235_s15 + $0x78] sm:$0xff] }
  0x9b   : > { %6252 = vmatpush1.bf16.msra.mxu1 %v7984_v15  ;;  %6188 = vmatprep.subr.bf16.mxu0 %v7986_v16 }
  0x9c   : > { %6254 = vmatprep.subr.bf16.mxu1 %v7998_v21  ;;  %5330 = vmatprep.mubr.msk.f32.mxu0 %vm652_vm0, %v579_v53 }
  0x9d   : > { %5406 = vmatprep.mubr.msk.f32.mxu1 %vm652_vm0, %v579_v53  ;;  %785 = vmatmul.mubr.f32.gmra.mrb[10].mxu0 %v578_v62  ;;  %v582_v53 = vld [vmem:[%s8235_s15 + $0x70] sm:$0xff] }
  0x9e   : > { %6190 = vmatpush1.bf16.msra.mxu0 %v8016_v30  ;;  %981 = vmatmul.mubr.f32.gmra.mrb[10].mxu1 %v578_v62  ;;  %v585_v62 = vld [vmem:[%s8235_s15 + $0x88] sm:$0xff] }
  0x9f   : > { %6256 = vmatpush1.bf16.msra.mxu1 %v8020_v31  ;;  %6192 = vmatprep.subr.bf16.mxu0 %v8022_v34 }
  0xa0   : > { %6258 = vmatprep.subr.bf16.mxu1 %v8034_v39  ;;  %5331 = vmatprep.mubr.msk.f32.mxu0 %vm652_vm0, %v581_v6 }
  0xa1   : > { %5407 = vmatprep.mubr.msk.f32.mxu1 %vm652_vm0, %v581_v6  ;;  %791 = vmatmul.mubr.f32.gmra.mrb[12].mxu0 %v580_v29  ;;  %v584_v6 = vld [vmem:[%s8235_s15 + $0x80] sm:$0xff] }
  0xa2   : > { %6194 = vmatpush1.bf16.msra.mxu0 %v8052_v48  ;;  %987 = vmatmul.mubr.f32.gmra.mrb[12].mxu1 %v580_v29  ;;  %v587_v29 = vld [vmem:[%s8235_s15 + $0x98] sm:$0xff] }
  0xa3   : > { %6260 = vmatpush1.bf16.msra.mxu1 %v8056_v49  ;;  %6196 = vmatprep.subr.bf16.mxu0 %v8058_v51 }
  0xa4   : > { %6262 = vmatprep.subr.bf16.mxu1 %v8070_v57  ;;  %5332 = vmatprep.mubr.msk.f32.mxu0 %vm652_vm0, %v583_v43 }
  0xa5   : > { %5408 = vmatprep.mubr.msk.f32.mxu1 %vm652_vm0, %v583_v43  ;;  %797 = vmatmul.mubr.f32.gmra.mrb[14].mxu0 %v582_v53  ;;  %v586_v43 = vld [vmem:[%s8235_s15 + $0x90] sm:$0xff] }
  0xa6   : > { %6198 = vmatpush1.bf16.msra.mxu0 %v8088_v0  ;;  %993 = vmatmul.mubr.f32.gmra.mrb[14].mxu1 %v582_v53  ;;  %v5412_v53 = vld [vmem:[%s8235_s15 + $0xa8] sm:$0xff] }
  0xa7   : > { %6264 = vmatpush1.bf16.msra.mxu1 %v8092_v1  ;;  %6200 = vmatprep.subr.bf16.mxu0 %v8094_v5 }
  0xa8   : > { %6266 = vmatprep.subr.bf16.mxu1 %v8106_v10  ;;  %5333 = vmatprep.mubr.msk.f32.mxu0 %vm652_vm0, %v585_v62 }
  0xa9   : > { %5409 = vmatprep.mubr.msk.f32.mxu1 %vm652_vm0, %v585_v62  ;;  %803 = vmatmul.mubr.f32.gmra.mrb[16].mxu0 %v584_v6  ;;  %v11278_v62 = vld [vmem:[#allocation5_spill] sm:$0xff] }
  0xaa   : > { %6202 = vmatpush1.bf16.msra.mxu0 %v8124_v20  ;;  %999 = vmatmul.mubr.f32.gmra.mrb[16].mxu1 %v584_v6  ;;  %v11279_v6 = vld [vmem:[#allocation6_spill] sm:$0xff] }
  0xab   : > { %6268 = vmatpush1.bf16.msra.mxu1 %v8128_v22  ;;  %6204 = vmatprep.subr.bf16.mxu0 %v8130_v25 }
  0xac   : > { %6270 = vmatprep.subr.bf16.mxu1 %v8143_v35  ;;  %5334 = vmatprep.mubr.msk.f32.mxu0 %vm652_vm0, %v587_v29 }
  0xad   : > { %5410 = vmatprep.mubr.msk.f32.mxu1 %vm652_vm0, %v587_v29  ;;  %809 = vmatmul.mubr.f32.gmra.mrb[18].mxu0 %v586_v43  ;;  %v11280_v29 = vld [vmem:[#allocation7_spill] sm:$0xff] }
  0xae   : > { %6206 = vmatpush1.bf16.msra.mxu0 %v8161_v45  ;;  %1005 = vmatmul.mubr.f32.gmra.mrb[18].mxu1 %v586_v43  ;;  %v11281_v43 = vld [vmem:[#allocation9_spill] sm:$0xff] }
  0xaf   : > { %6272 = vmatpush1.bf16.msra.mxu1 %v8167_v47  ;;  %6208 = vmatprep.subr.bf16.mxu0 %v8169_v52 }
  0xb0   : > { %6274 = vmatprep.subr.bf16.mxu1 %v8181_v60  ;;  %5433 = vmatprep.mubr.msk.f32.mxu0 %vm652_vm0, %v5412_v53 }
  0xb1   : > { %5445 = vmatprep.mubr.msk.f32.mxu1 %vm652_vm0, %v5412_v53  ;;  %v11282_v53 = vld [vmem:[#allocation10_spill] sm:$0xff] }
  0xb2   : > { %6210 = vmatpush1.bf16.msra.mxu0 %v8199_v9 }
  0xb3   : > { %6276 = vmatpush1.bf16.msra.mxu1 %v8203_v11  ;;  %6212 = vmatprep.subr.bf16.mxu0 %v8205_v12  ;;  %v11283_v11 = vld [vmem:[#allocation11_spill] sm:$0xff] }
  0xb4   : > { %6278 = vmatprep.subr.bf16.mxu1 %v8217_v26 }
  0xb6   : > { %6214 = vmatpush1.bf16.msra.mxu0 %v8239_v44 }
  0xb7   : > { %6280 = vmatpush1.bf16.msra.mxu1 %v11278_v62  ;;  %6216 = vmatprep.subr.bf16.mxu0 %v11279_v6 }
  0xb8   : > { %6282 = vmatprep.subr.bf16.mxu1 %v11280_v29 }
  0xba   : > { %6218 = vmatpush1.bf16.msra.mxu0 %v8277_v27 }
  0xbb   : > { %6284 = vmatpush1.bf16.msra.mxu1 %v11281_v43  ;;  %6220 = vmatprep.subr.bf16.mxu0 %v11282_v53 }
  0xbc   : > { %6286 = vmatprep.subr.bf16.mxu1 %v11283_v11 }
  0xbe   : > { %6222 = vmatpush1.bf16.msra.mxu0 %v8313_v17 }
  0xbf   : > { %6288 = vmatpush1.bf16.msra.mxu1 %v8317_v18  ;;  %6224 = vmatprep.subr.bf16.mxu0 %v8319_v63  ;;  %v5411_v63 = vld [vmem:[%s8235_s15 + $0xa0] sm:$0xff] }
  0xc0   : > { %6290 = vmatprep.subr.bf16.mxu1 %v8331_v40 }
  0xc2   : > { %6226 = vmatpush1.bf16.msra.mxu0 %v8353_v13 }
  0xc3   : > { %6292 = vmatpush1.bf16.msra.mxu1 %v8357_v58  ;;  %6229 = vmatprep.subr.msk.bf16.mxu0 %vm8371_vm3, %v8360_v36  ;;  %v5414_v36 = vld [vmem:[%s8235_s15 + $0xb8] sm:$0xff] }
  0xc4   : > { %6295 = vmatprep.subr.msk.bf16.mxu1 %vm8371_vm3, %v8376_v38  ;;  %v5413_v38 = vld [vmem:[%s8235_s15 + $0xb0] sm:$0xff] }
  0xc6   : > { %6232 = vmatpush1.bf16.msk.msra.mxu0 %vm8371_vm3, %v8388_v61  ;;  %v5416_v61 = vld [vmem:[%s8235_s15 + $0xc8] sm:$0xff] }
  0xc7   : > { %6298 = vmatpush1.bf16.msk.msra.mxu1 %vm8371_vm3, %v8395_v7  ;;  %6300 = vmatprep.subr.bf16.mxu0 %v7806_v19  ;;  %v5418_v7 = vld [vmem:[%s8235_s15 + $0xd8] sm:$0xff] }
  0xc8   : > { %6366 = vmatprep.subr.bf16.mxu1 %v7817_v23 }
  0xc9   : > { %1147 = vmatmul.mubr.f32.vlgmr.msra.gmra.mrb[20].mxu0 %v5411_v63 }
  0xca   : > { %1292 = vmatmul.mubr.f32.vlgmr.msra.gmra.mrb[20].mxu1 %v5411_v63  ;;  %6302 = vmatpush1.bf16.msra.mxu0 %v7819_v24  ;;  %v5415_v63 = vld [vmem:[%s8235_s15 + $0xc0] sm:$0xff] }
  0xcb   : > { %6368 = vmatpush1.bf16.msra.mxu1 %v7831_v28  ;;  %5434 = vmatprep.mubr.msk.f32.mxu0 %vm652_vm0, %v5414_v36 }
  0xcc   : > { %6304 = vmatprep.subr.bf16.mxu0 %v7844_v32  ;;  %6370 = vmatprep.subr.bf16.mxu1 %v7846_v33 }
  0xcd   : > { %1153 = vmatmul.mubr.f32.gmra.mrb[22].mxu0 %v5413_v38  ;;  %5446 = vmatprep.mubr.msk.f32.mxu1 %vm652_vm0, %v5414_v36  ;;  %v5417_v36 = vld [vmem:[%s8235_s15 + $0xd0] sm:$0xff] }
  0xce   : > { %6306 = vmatpush1.bf16.msra.mxu0 %v7858_v37  ;;  %1298 = vmatmul.mubr.f32.gmra.mrb[22].mxu1 %v5413_v38  ;;  %v5420_v38 = vld [vmem:[%s8235_s15 + $0xe8] sm:$0xff] }
  0xcf   : > { %6372 = vmatpush1.bf16.msra.mxu1 %v7871_v41  ;;  %5435 = vmatprep.mubr.msk.f32.mxu0 %vm652_vm0, %v5416_v61 }
  0xd0   : > { %6308 = vmatprep.subr.bf16.mxu0 %v7873_v42  ;;  %6374 = vmatprep.subr.bf16.mxu1 %v7884_v46 }
  0xd1   : > { %1159 = vmatmul.mubr.f32.gmra.mrb[24].mxu0 %v5415_v63  ;;  %5447 = vmatprep.mubr.msk.f32.mxu1 %vm652_vm0, %v5416_v61  ;;  %v5419_v61 = vld [vmem:[%s8235_s15 + $0xe0] sm:$0xff] }
  0xd2   : > { %6310 = vmatpush1.bf16.msra.mxu0 %v7896_v50  ;;  %1304 = vmatmul.mubr.f32.gmra.mrb[24].mxu1 %v5415_v63  ;;  %v5422_v63 = vld [vmem:[%s8235_s15 + $0xf8] sm:$0xff] }
  0xd3   : > { %6376 = vmatpush1.bf16.msra.mxu1 %v7909_v54  ;;  %5436 = vmatprep.mubr.msk.f32.mxu0 %vm652_vm0, %v5418_v7 }
  0xd4   : > { %6312 = vmatprep.subr.bf16.mxu0 %v7911_v55  ;;  %6378 = vmatprep.subr.bf16.mxu1 %v7923_v59 }
  0xd5   : > { %1165 = vmatmul.mubr.f32.gmra.mrb[26].mxu0 %v5417_v36  ;;  %5448 = vmatprep.mubr.msk.f32.mxu1 %vm652_vm0, %v5418_v7  ;;  %v5421_v7 = vld [vmem:[%s8235_s15 + $0xf0] sm:$0xff] }
  0xd6   : > { %6314 = vmatpush1.bf16.msra.mxu0 %v7944_v2  ;;  %1310 = vmatmul.mubr.f32.gmra.mrb[26].mxu1 %v5417_v36  ;;  %v5424_v36 = vld [vmem:[%s8235_s15 + $0x108] sm:$0xff] }
  0xd7   : > { %6380 = vmatpush1.bf16.msra.mxu1 %v7948_v3  ;;  %5437 = vmatprep.mubr.msk.f32.mxu0 %vm652_vm0, %v5420_v38 }
  0xd8   : > { %6316 = vmatprep.subr.bf16.mxu0 %v7950_v4  ;;  %6382 = vmatprep.subr.bf16.mxu1 %v7962_v8 }
  0xd9   : > { %1171 = vmatmul.mubr.f32.gmra.mrb[28].mxu0 %v5419_v61  ;;  %5449 = vmatprep.mubr.msk.f32.mxu1 %vm652_vm0, %v5420_v38  ;;  %v5423_v38 = vld [vmem:[%s8235_s15 + $0x100] sm:$0xff] }
  0xda   : > { %6318 = vmatpush1.bf16.msra.mxu0 %v7980_v14  ;;  %1316 = vmatmul.mubr.f32.gmra.mrb[28].mxu1 %v5419_v61  ;;  %v5426_v61 = vld [vmem:[%s8235_s15 + $0x118] sm:$0xff] }
  0xdb   : > { %6384 = vmatpush1.bf16.msra.mxu1 %v7984_v15  ;;  %5438 = vmatprep.mubr.msk.f32.mxu0 %vm652_vm0, %v5422_v63 }
  0xdc   : > { %6320 = vmatprep.subr.bf16.mxu0 %v7986_v16  ;;  %6386 = vmatprep.subr.bf16.mxu1 %v7998_v21 }
  0xdd   : > { %1177 = vmatmul.mubr.f32.gmra.mrb[30].mxu0 %v5421_v7  ;;  %5450 = vmatprep.mubr.msk.f32.mxu1 %vm652_vm0, %v5422_v63  ;;  %v5425_v63 = vld [vmem:[%s8235_s15 + $0x110] sm:$0xff] }
  0xde   : > { %6322 = vmatpush1.bf16.msra.mxu0 %v8016_v30  ;;  %1322 = vmatmul.mubr.f32.gmra.mrb[30].mxu1 %v5421_v7  ;;  %v5428_v7 = vld [vmem:[%s8235_s15 + $0x128] sm:$0xff] }
  0xdf   : > { %6388 = vmatpush1.bf16.msra.mxu1 %v8020_v31  ;;  %5439 = vmatprep.mubr.msk.f32.mxu0 %vm652_vm0, %v5424_v36 }
  0xe0   : > { %6324 = vmatprep.subr.bf16.mxu0 %v8022_v34  ;;  %6390 = vmatprep.subr.bf16.mxu1 %v8034_v39 }
  0xe1   : > { %1183 = vmatmul.mubr.f32.gmra.mrb[32].mxu0 %v5423_v38  ;;  %5451 = vmatprep.mubr.msk.f32.mxu1 %vm652_vm0, %v5424_v36  ;;  %v5427_v36 = vld [vmem:[%s8235_s15 + $0x120] sm:$0xff] }
  0xe2   : > { %6326 = vmatpush1.bf16.msra.mxu0 %v8052_v48  ;;  %1328 = vmatmul.mubr.f32.gmra.mrb[32].mxu1 %v5423_v38  ;;  %v5430_v38 = vld [vmem:[%s8235_s15 + $0x138] sm:$0xff] }
  0xe3   : > { %6392 = vmatpush1.bf16.msra.mxu1 %v8056_v49  ;;  %5440 = vmatprep.mubr.msk.f32.mxu0 %vm652_vm0, %v5426_v61 }
  0xe4   : > { %6328 = vmatprep.subr.bf16.mxu0 %v8058_v51  ;;  %6394 = vmatprep.subr.bf16.mxu1 %v8070_v57 }
  0xe5   : > { %1189 = vmatmul.mubr.f32.gmra.mrb[34].mxu0 %v5425_v63  ;;  %5452 = vmatprep.mubr.msk.f32.mxu1 %vm652_vm0, %v5426_v61  ;;  %v5429_v61 = vld [vmem:[%s8235_s15 + $0x130] sm:$0xff] }
  0xe6   : > { %6330 = vmatpush1.bf16.msra.mxu0 %v8088_v0  ;;  %1334 = vmatmul.mubr.f32.gmra.mrb[34].mxu1 %v5425_v63  ;;  %v5456_v63 = vld [vmem:[%s8235_s15 + $0x148] sm:$0xff] }
  0xe7   : > { %6396 = vmatpush1.bf16.msra.mxu1 %v8092_v1  ;;  %5441 = vmatprep.mubr.msk.f32.mxu0 %vm652_vm0, %v5428_v7 }
  0xe8   : > { %6332 = vmatprep.subr.bf16.mxu0 %v8094_v5  ;;  %6398 = vmatprep.subr.bf16.mxu1 %v8106_v10 }
  0xe9   : > { %1195 = vmatmul.mubr.f32.gmra.mrb[36].mxu0 %v5427_v36  ;;  %5453 = vmatprep.mubr.msk.f32.mxu1 %vm652_vm0, %v5428_v7  ;;  %v11284_v7 = vld [vmem:[#allocation4_spill] sm:$0xff] }
  0xea   : > { %6334 = vmatpush1.bf16.msra.mxu0 %v8124_v20  ;;  %1340 = vmatmul.mubr.f32.gmra.mrb[36].mxu1 %v5427_v36  ;;  %v1529_v36 = vld [vmem:[%s11160_s1 + $0x1f8] sm:$0xf] }
  0xeb   : > { %6400 = vmatpush1.bf16.msra.mxu1 %v8128_v22  ;;  %5442 = vmatprep.mubr.msk.f32.mxu0 %vm652_vm0, %v5430_v38 }
  0xec   : > { %6336 = vmatprep.subr.bf16.mxu0 %v8130_v25  ;;  %6402 = vmatprep.subr.bf16.mxu1 %v8143_v35 }
  0xed   : > { %1201 = vmatmul.mubr.f32.gmra.mrb[38].mxu0 %v5429_v61  ;;  %5454 = vmatprep.mubr.msk.f32.mxu1 %vm652_vm0, %v5430_v38  ;;  %v5550_v38 = vld [vmem:[%s11160_s1 + $0x3f8] sm:$0xf] }
  0xee   : > { %6338 = vmatpush1.bf16.msra.mxu0 %v8161_v45  ;;  %1346 = vmatmul.mubr.f32.gmra.mrb[38].mxu1 %v5429_v61  ;;  %v11285_v61 = vld [vmem:[#allocation13_spill] sm:$0xff] }
  0xef   : > { %6404 = vmatpush1.bf16.msra.mxu1 %v8167_v47  ;;  %6340 = vmatprep.subr.bf16.mxu0 %v8169_v52 }
  0xf0   : > { %6406 = vmatprep.subr.bf16.mxu1 %v8181_v60  ;;  %5477 = vmatprep.mubr.msk.f32.mxu0 %vm652_vm0, %v5456_v63 }
  0xf1   : > { %5553 = vmatprep.mubr.msk.f32.mxu1 %vm652_vm0, %v5456_v63  ;;  %v11286_v63 = vld [vmem:[#allocation15_spill] sm:$0xff] }
  0xf2   : > { %6342 = vmatpush1.bf16.msra.mxu0 %v8199_v9 }
  0xf3   : > { %6408 = vmatpush1.bf16.msra.mxu1 %v11284_v7  ;;  %6344 = vmatprep.subr.bf16.mxu0 %v8205_v12 }
  0xf4   : > { %6410 = vmatprep.subr.bf16.mxu1 %v8217_v26 }
  0xf6   : > { %6346 = vmatpush1.bf16.msra.mxu0 %v8239_v44 }
  0xf7   : > { %6412 = vmatpush1.bf16.msra.mxu1 %v11278_v62  ;;  %6348 = vmatprep.subr.bf16.mxu0 %v11279_v6 }
  0xf8   : > { %6414 = vmatprep.subr.bf16.mxu1 %v11280_v29 }
  0xfa   : > { %6350 = vmatpush1.bf16.msra.mxu0 %v8277_v27 }
  0xfb   : > { %6416 = vmatpush1.bf16.msra.mxu1 %v11281_v43  ;;  %6352 = vmatprep.subr.bf16.mxu0 %v11282_v53  ;;  %v8622_v43 = vpack.c.bf16 %v1529_v36, %v11286_v63  ;;  %v11287_v53 = vld [vmem:[#allocation16_spill] sm:$0xff]  ;;  %v11289_v63 = vld [vmem:[#allocation18_spill] sm:$0xff] }
  0xfc   : > { %6418 = vmatprep.subr.bf16.mxu1 %v11283_v11  ;;  %v1528_v11 = vld [vmem:[%s11160_s1 + $0x1f0] sm:$0xf]  ;;  %v8629_v27 = vpack.c.bf16 %v5550_v38, %v11287_v53 }
  0xfd   : > { %v5457_v53 = vld [vmem:[%s8235_s15 + $0x150] sm:$0xff] }
  0xfe   : > { %6354 = vmatpush1.bf16.msra.mxu0 %v8313_v17  ;;  %v5549_v17 = vld [vmem:[%s11160_s1 + $0x3f0] sm:$0xf] }
  0xff   : > { %6420 = vmatpush1.bf16.msra.mxu1 %v8317_v18  ;;  %6356 = vmatprep.subr.bf16.mxu0 %v11285_v61  ;;  %v11288_v61 = vld [vmem:[#allocation17_spill] sm:$0xff] }
 0x100   : > { %6422 = vmatprep.subr.bf16.mxu1 %v8331_v40  ;;  %v8636_v36 = vpack.c.bf16 %v1528_v11, %v11288_v61  ;;  %v8643_v40 = vpack.c.bf16 %v5549_v17, %v11289_v63  ;;  %v5455_v11 = vld [vmem:[%s8235_s15 + $0x140] sm:$0xff]  ;;  %v5458_v17 = vld [vmem:[%s8235_s15 + $0x158] sm:$0xff] }
 0x101   : > { %v5582_v61 = vld [vmem:[%s8235_s15 + $0x278] sm:$0xff] }
 0x102   : > { %6358 = vmatpush1.bf16.msra.mxu0 %v8353_v13 }
 0x103   : > { %6424 = vmatpush1.bf16.msra.mxu1 %v8357_v58  ;;  %6361 = vmatprep.subr.msk.bf16.mxu0 %vm8371_vm3, %v8622_v43 }
 0x104   : > { %6427 = vmatprep.subr.msk.bf16.mxu1 %vm8371_vm3, %v8629_v27 }
 0x106   : > { %6364 = vmatpush1.bf16.msk.msra.mxu0 %vm8371_vm3, %v8636_v36 }
 0x107   : > { %6430 = vmatpush1.bf16.msk.msra.mxu1 %vm8371_vm3, %v8643_v40  ;;  %6432 = vmatprep.subr.bf16.mxu0 %v7806_v19  ;;  %v5460_v19 = vld [vmem:[%s8235_s15 + $0x168] sm:$0xff] }
 0x108   : > { %6498 = vmatprep.subr.bf16.mxu1 %v7817_v23  ;;  %v5459_v23 = vld [vmem:[%s8235_s15 + $0x160] sm:$0xff] }
 0x109   : > { %1631 = vmatmul.mubr.f32.vlgmr.msra.gmra.mrb[40].mxu0 %v5455_v11 }
 0x10a   : > { %1826 = vmatmul.mubr.f32.vlgmr.msra.gmra.mrb[40].mxu1 %v5455_v11  ;;  %6434 = vmatpush1.bf16.msra.mxu0 %v7819_v24  ;;  %v5462_v24 = vld [vmem:[%s8235_s15 + $0x178] sm:$0xff] }
 0x10b   : > { %6500 = vmatpush1.bf16.msra.mxu1 %v7831_v28  ;;  %6436 = vmatprep.subr.bf16.mxu0 %v7844_v32  ;;  %v5461_v28 = vld [vmem:[%s8235_s15 + $0x170] sm:$0xff]  ;;  %v5464_v32 = vld [vmem:[%s8235_s15 + $0x188] sm:$0xff] }
 0x10c   : > { %6502 = vmatprep.subr.bf16.mxu1 %v7846_v33  ;;  %5478 = vmatprep.mubr.msk.f32.mxu0 %vm652_vm0, %v5458_v17  ;;  %v5463_v33 = vld [vmem:[%s8235_s15 + $0x180] sm:$0xff] }
 0x10d   : > { %5554 = vmatprep.mubr.msk.f32.mxu1 %vm652_vm0, %v5458_v17  ;;  %1637 = vmatmul.mubr.f32.gmra.mrb[42].mxu0 %v5457_v53 }
 0x10e   : > { %6438 = vmatpush1.bf16.msra.mxu0 %v7858_v37  ;;  %1832 = vmatmul.mubr.f32.gmra.mrb[42].mxu1 %v5457_v53  ;;  %v5466_v37 = vld [vmem:[%s8235_s15 + $0x198] sm:$0xff]  ;;  %v5581_v53 = vld [vmem:[%s8235_s15 + $0x270] sm:$0xff] }
 0x10f   : > { %6504 = vmatpush1.bf16.msra.mxu1 %v7871_v41  ;;  %6440 = vmatprep.subr.bf16.mxu0 %v7873_v42  ;;  %v5465_v41 = vld [vmem:[%s8235_s15 + $0x190] sm:$0xff]  ;;  %v5468_v42 = vld [vmem:[%s8235_s15 + $0x1a8] sm:$0xff] }
 0x110   : > { %6506 = vmatprep.subr.bf16.mxu1 %v7884_v46  ;;  %5479 = vmatprep.mubr.msk.f32.mxu0 %vm652_vm0, %v5460_v19  ;;  %v5467_v46 = vld [vmem:[%s8235_s15 + $0x1a0] sm:$0xff] }
 0x111   : > { %5555 = vmatprep.mubr.msk.f32.mxu1 %vm652_vm0, %v5460_v19  ;;  %1643 = vmatmul.mubr.f32.gmra.mrb[44].mxu0 %v5459_v23 }
 0x112   : > { %6442 = vmatpush1.bf16.msra.mxu0 %v7896_v50  ;;  %1838 = vmatmul.mubr.f32.gmra.mrb[44].mxu1 %v5459_v23  ;;  %v5470_v50 = vld [vmem:[%s8235_s15 + $0x1b8] sm:$0xff] }
 0x113   : > { %6508 = vmatpush1.bf16.msra.mxu1 %v7909_v54  ;;  %6444 = vmatprep.subr.bf16.mxu0 %v7911_v55  ;;  %v5469_v54 = vld [vmem:[%s8235_s15 + $0x1b0] sm:$0xff]  ;;  %v5472_v55 = vld [vmem:[%s8235_s15 + $0x1c8] sm:$0xff] }
 0x114   : > { %6510 = vmatprep.subr.bf16.mxu1 %v7923_v59  ;;  %5480 = vmatprep.mubr.msk.f32.mxu0 %vm652_vm0, %v5462_v24  ;;  %v5471_v59 = vld [vmem:[%s8235_s15 + $0x1c0] sm:$0xff] }
 0x115   : > { %5556 = vmatprep.mubr.msk.f32.mxu1 %vm652_vm0, %v5462_v24  ;;  %1649 = vmatmul.mubr.f32.gmra.mrb[46].mxu0 %v5461_v28  ;;  %v5638_v24 = vld [vmem:[%s11162_s3 + $0xf8] sm:$0xff] }
 0x116   : > { %6446 = vmatpush1.bf16.msra.mxu0 %v7944_v2  ;;  %1844 = vmatmul.mubr.f32.gmra.mrb[46].mxu1 %v5461_v28  ;;  %v5474_v2 = vld [vmem:[%s8235_s15 + $0x1d8] sm:$0xff] }
 0x117   : > { %6512 = vmatpush1.bf16.msra.mxu1 %v7948_v3  ;;  %6448 = vmatprep.subr.bf16.mxu0 %v7950_v4  ;;  %v5473_v3 = vld [vmem:[%s8235_s15 + $0x1d0] sm:$0xff]  ;;  %v5564_v4 = vld [vmem:[%s8235_s15 + $0x1e8] sm:$0xff] }
 0x118   : > { %6514 = vmatprep.subr.bf16.mxu1 %v7962_v8  ;;  %5481 = vmatprep.mubr.msk.f32.mxu0 %vm652_vm0, %v5464_v32  ;;  %v11290_v8 = vld [vmem:[#allocation8_spill] sm:$0xff] }
 0x119   : > { %5557 = vmatprep.mubr.msk.f32.mxu1 %vm652_vm0, %v5464_v32  ;;  %1655 = vmatmul.mubr.f32.gmra.mrb[48].mxu0 %v5463_v33 }
 0x11a   : > { %6450 = vmatpush1.bf16.msra.mxu0 %v7980_v14  ;;  %1850 = vmatmul.mubr.f32.gmra.mrb[48].mxu1 %v5463_v33  ;;  %v11291_v14 = vld [vmem:[#allocation9_spill] sm:$0xff] }
 0x11b   : > { %6516 = vmatpush1.bf16.msra.mxu1 %v7984_v15  ;;  %6452 = vmatprep.subr.bf16.mxu0 %v7986_v16  ;;  %v11292_v15 = vld [vmem:[#allocation10_spill] sm:$0xff]  ;;  %v11293_v16 = vld [vmem:[#allocation11_spill] sm:$0xff] }
 0x11c   : > { %6518 = vmatprep.subr.bf16.mxu1 %v7998_v21  ;;  %5482 = vmatprep.mubr.msk.f32.mxu0 %vm652_vm0, %v5466_v37  ;;  %v11294_v21 = vld [vmem:[#allocation12_spill] sm:$0xff] }
 0x11d   : > { %5558 = vmatprep.mubr.msk.f32.mxu1 %vm652_vm0, %v5466_v37  ;;  %1661 = vmatmul.mubr.f32.gmra.mrb[50].mxu0 %v5465_v41  ;;  %v5637_v37 = vld [vmem:[%s11162_s3 + $0xf0] sm:$0xff] }
 0x11e   : > { %6454 = vmatpush1.bf16.msra.mxu0 %v8016_v30  ;;  %1856 = vmatmul.mubr.f32.gmra.mrb[50].mxu1 %v5465_v41  ;;  %v11295_v30 = vld [vmem:[#allocation13_spill] sm:$0xff] }
 0x11f   : > { %6520 = vmatpush1.bf16.msra.mxu1 %v8020_v31  ;;  %6456 = vmatprep.subr.bf16.mxu0 %v8022_v34  ;;  %v11296_v31 = vld [vmem:[#allocation14_spill] sm:$0xff]  ;;  %v5563_v34 = vld [vmem:[%s8235_s15 + $0x1e0] sm:$0xff] }
 0x120   : > { %6522 = vmatprep.subr.bf16.mxu1 %v8034_v39  ;;  %5483 = vmatprep.mubr.msk.f32.mxu0 %vm652_vm0, %v5468_v42  ;;  %v5566_v39 = vld [vmem:[%s8235_s15 + $0x1f8] sm:$0xff] }
 0x121   : > { %5559 = vmatprep.mubr.msk.f32.mxu1 %vm652_vm0, %v5468_v42  ;;  %1667 = vmatmul.mubr.f32.gmra.mrb[52].mxu0 %v5467_v46  ;;  %v5668_v42 = vld [vmem:[%s11162_s3 + $0x408] sm:$0xff] }
 0x122   : > { %6458 = vmatpush1.bf16.msra.mxu0 %v8052_v48  ;;  %1862 = vmatmul.mubr.f32.gmra.mrb[52].mxu1 %v5467_v46  ;;  %v5565_v48 = vld [vmem:[%s8235_s15 + $0x1f0] sm:$0xff] }
 0x123   : > { %6524 = vmatpush1.bf16.msra.mxu1 %v8056_v49  ;;  %6460 = vmatprep.subr.bf16.mxu0 %v8058_v51  ;;  %v5568_v49 = vld [vmem:[%s8235_s15 + $0x208] sm:$0xff]  ;;  %v5567_v51 = vld [vmem:[%s8235_s15 + $0x200] sm:$0xff] }
 0x124   : > { %6526 = vmatprep.subr.bf16.mxu1 %v8070_v57  ;;  %5484 = vmatprep.mubr.msk.f32.mxu0 %vm652_vm0, %v5470_v50  ;;  %v5570_v57 = vld [vmem:[%s8235_s15 + $0x218] sm:$0xff] }
 0x125   : > { %5560 = vmatprep.mubr.msk.f32.mxu1 %vm652_vm0, %v5470_v50  ;;  %1673 = vmatmul.mubr.f32.gmra.mrb[54].mxu0 %v5469_v54  ;;  %v11197_v50 = vmov 0.0|0.0  }
 0x126   : > { %6462 = vmatpush1.bf16.msra.mxu0 %v8088_v0  ;;  %1868 = vmatmul.mubr.f32.gmra.mrb[54].mxu1 %v5469_v54  ;;  %v5569_v0 = vld [vmem:[%s8235_s15 + $0x210] sm:$0xff] }
 0x127   : > { %6528 = vmatpush1.bf16.msra.mxu1 %v8092_v1  ;;  %6464 = vmatprep.subr.bf16.mxu0 %v8094_v5  ;;  %v5572_v1 = vld [vmem:[%s8235_s15 + $0x228] sm:$0xff]  ;;  %v5571_v5 = vld [vmem:[%s8235_s15 + $0x220] sm:$0xff] }
 0x128   : > { %6530 = vmatprep.subr.bf16.mxu1 %v8106_v10  ;;  %5485 = vmatprep.mubr.msk.f32.mxu0 %vm652_vm0, %v5472_v55  ;;  %v5574_v10 = vld [vmem:[%s8235_s15 + $0x238] sm:$0xff] }
 0x129   : > { %5561 = vmatprep.mubr.msk.f32.mxu1 %vm652_vm0, %v5472_v55  ;;  %1679 = vmatmul.mubr.f32.gmra.mrb[56].mxu0 %v5471_v59 }
 0x12a   : > { %6466 = vmatpush1.bf16.msra.mxu0 %v8124_v20  ;;  %1874 = vmatmul.mubr.f32.gmra.mrb[56].mxu1 %v5471_v59  ;;  %v5573_v20 = vld [vmem:[%s8235_s15 + $0x230] sm:$0xff] }
 0x12b   : > { %6532 = vmatpush1.bf16.msra.mxu1 %v8128_v22  ;;  %6468 = vmatprep.subr.bf16.mxu0 %v8130_v25  ;;  %v5576_v22 = vld [vmem:[%s8235_s15 + $0x248] sm:$0xff] }
 0x12c   : > { %6534 = vmatprep.subr.bf16.mxu1 %v8143_v35  ;;  %5486 = vmatprep.mubr.msk.f32.mxu0 %vm652_vm0, %v5474_v2 }
 0x12d   : > { %5562 = vmatprep.mubr.msk.f32.mxu1 %vm652_vm0, %v5474_v2  ;;  %1685 = vmatmul.mubr.f32.gmra.mrb[58].mxu0 %v5473_v3 }
 0x12e   : > { %6470 = vmatpush1.bf16.msra.mxu0 %v8161_v45  ;;  %1880 = vmatmul.mubr.f32.gmra.mrb[58].mxu1 %v5473_v3  ;;  %v5627_v3 = vld [vmem:[%s11162_s3 + $0xa0] sm:$0xff] }
 0x12f   : > { %6536 = vmatpush1.bf16.msra.mxu1 %v8167_v47  ;;  %6472 = vmatprep.subr.bf16.mxu0 %v8169_v52 }
 0x130   : > { %6538 = vmatprep.subr.bf16.mxu1 %v8181_v60  ;;  %5585 = vmatprep.mubr.msk.f32.mxu0 %vm652_vm0, %v5564_v4  ;;  %v5575_v60 = vld [vmem:[%s8235_s15 + $0x240] sm:$0xff] }
 0x131   : > { %5597 = vmatprep.mubr.msk.f32.mxu1 %vm652_vm0, %v5564_v4  ;;  %v5628_v4 = vld [vmem:[%s11162_s3 + $0xa8] sm:$0xff] }
 0x132   : > { %6474 = vmatpush1.bf16.msra.mxu0 %v8199_v9 }
 0x133   : > { %6540 = vmatpush1.bf16.msra.mxu1 %v11284_v7  ;;  %6476 = vmatprep.subr.bf16.mxu0 %v8205_v12  ;;  %v5578_v12 = vld [vmem:[%s8235_s15 + $0x258] sm:$0xff] }
 0x134   : > { %6542 = vmatprep.subr.bf16.mxu1 %v8217_v26 }
 0x136   : > { %6478 = vmatpush1.bf16.msra.mxu0 %v8239_v44 }
 0x137   : > { %6544 = vmatpush1.bf16.msra.mxu1 %v11278_v62  ;;  %6480 = vmatprep.subr.bf16.mxu0 %v11279_v6 }
 0x138   : > { %6546 = vmatprep.subr.bf16.mxu1 %v11280_v29 }
 0x13a   : > { %6482 = vmatpush1.bf16.msra.mxu0 %v11290_v8  ;;  %v5659_v8 = vld [vmem:[%s11162_s3 + $0x3c0] sm:$0xff] }
 0x13b   : > { %6548 = vmatpush1.bf16.msra.mxu1 %v11291_v14  ;;  %6484 = vmatprep.subr.bf16.mxu0 %v11292_v15  ;;  %v8886_v15 = vpack.c.bf16 %v5628_v4, %v5627_v3  ;;  %v5664_v4 = vld [vmem:[%s11162_s3 + $0x3e8] sm:$0xff] }
 0x13c   : > { %6550 = vmatprep.subr.bf16.mxu1 %v11293_v16  ;;  %v5660_v16 = vld [vmem:[%s11162_s3 + $0x3c8] sm:$0xff] }
 0x13e   : > { %6486 = vmatpush1.bf16.msra.mxu0 %v11294_v21 }
 0x13f   : > { %6552 = vmatpush1.bf16.msra.mxu1 %v8317_v18  ;;  %6488 = vmatprep.subr.bf16.mxu0 %v11295_v30  ;;  %v8893_v30 = vpack.c.bf16 %v5660_v16, %v5659_v8 }
 0x140   : > { %6554 = vmatprep.subr.bf16.mxu1 %v11296_v31 }
 0x142   : > { %6490 = vmatpush1.bf16.msra.mxu0 %v8353_v13  ;;  %v5580_v13 = vld [vmem:[%s8235_s15 + $0x268] sm:$0xff] }
 0x143   : > { %6556 = vmatpush1.bf16.msra.mxu1 %v8357_v58  ;;  %6493 = vmatprep.subr.msk.bf16.mxu0 %vm8371_vm3, %v8622_v43  ;;  %v5577_v58 = vld [vmem:[%s8235_s15 + $0x250] sm:$0xff]  ;;  %v5579_v43 = vld [vmem:[%s8235_s15 + $0x260] sm:$0xff] }
 0x144   : > { %6559 = vmatprep.subr.msk.bf16.mxu1 %vm8371_vm3, %v8629_v27 }
 0x146   : > { %6496 = vmatpush1.bf16.msk.msra.mxu0 %vm8371_vm3, %v8636_v36 }
 0x147   : > { %6562 = vmatpush1.bf16.msk.msra.mxu1 %vm8371_vm3, %v8643_v40  ;;  %6563 = vmatprep.subr.bf16.mxu0 %v11197_v50 }
 0x148   : > { %6623 = vmatprep.subr.bf16.mxu1 %v11197_v50 }
 0x149   : > { %2022 = vmatmul.mubr.f32.vlgmr.msra.gmra.mrb[60].mxu0 %v5563_v34 }
 0x14a   : > { %2167 = vmatmul.mubr.f32.vlgmr.msra.gmra.mrb[60].mxu1 %v5563_v34  ;;  %5586 = vmatprep.mubr.msk.f32.mxu0 %vm652_vm0, %v5566_v39 }
 0x14b   : > { %5598 = vmatprep.mubr.msk.f32.mxu1 %vm652_vm0, %v5566_v39  ;;  %6565 = vmatpush1.bf16.msra.mxu0 %v8886_v15 }
 0x14c   : > { %6625 = vmatpush1.bf16.msra.mxu1 %v8893_v30  ;;  %6566 = vmatprep.subr.bf16.mxu0 %v11197_v50 }
 0x14d   : > { %2028 = vmatmul.mubr.f32.gmra.mrb[62].mxu0 %v5565_v48  ;;  %6626 = vmatprep.subr.bf16.mxu1 %v11197_v50 }
 0x14e   : > { %2173 = vmatmul.mubr.f32.gmra.mrb[62].mxu1 %v5565_v48  ;;  %5587 = vmatprep.mubr.msk.f32.mxu0 %vm652_vm0, %v5568_v49 }
 0x14f   : > { %5599 = vmatprep.mubr.msk.f32.mxu1 %vm652_vm0, %v5568_v49  ;;  %v5629_v49 = vld [vmem:[%s11162_s3 + $0xb0] sm:$0xff] }
 0x151   : > { %2034 = vmatmul.mubr.f32.gmra.mrb[64].mxu0 %v5567_v51 }
 0x152   : > { %2179 = vmatmul.mubr.f32.gmra.mrb[64].mxu1 %v5567_v51  ;;  %5588 = vmatprep.mubr.msk.f32.mxu0 %vm652_vm0, %v5570_v57  ;;  %v5630_v51 = vld [vmem:[%s11162_s3 + $0xb8] sm:$0xff] }
 0x153   : > { %5600 = vmatprep.mubr.msk.f32.mxu1 %vm652_vm0, %v5570_v57  ;;  %v5661_v57 = vld [vmem:[%s11162_s3 + $0x3d0] sm:$0xff] }
 0x155   : > { %2040 = vmatmul.mubr.f32.gmra.mrb[66].mxu0 %v5569_v0 }
 0x156   : > { %2185 = vmatmul.mubr.f32.gmra.mrb[66].mxu1 %v5569_v0  ;;  %5589 = vmatprep.mubr.msk.f32.mxu0 %vm652_vm0, %v5572_v1 }
 0x157   : > { %5601 = vmatprep.mubr.msk.f32.mxu1 %vm652_vm0, %v5572_v1  ;;  %v8918_v1 = vpack.c.bf16 %v5630_v51, %v5629_v49 }
 0x159   : > { %2046 = vmatmul.mubr.f32.gmra.mrb[68].mxu0 %v5571_v5 }
 0x15a   : > { %2191 = vmatmul.mubr.f32.gmra.mrb[68].mxu1 %v5571_v5  ;;  %5590 = vmatprep.mubr.msk.f32.mxu0 %vm652_vm0, %v5574_v10  ;;  %v5662_v5 = vld [vmem:[%s11162_s3 + $0x3d8] sm:$0xff] }
 0x15b   : > { %5602 = vmatprep.mubr.msk.f32.mxu1 %vm652_vm0, %v5574_v10  ;;  %6568 = vmatpush1.bf16.msra.mxu0 %v8918_v1 }
 0x15c   : > { %v8788_v25 = vpop.f32.mrb[0].mxu0  ;;  %6569 = vmatprep.subr.bf16.mxu0 %v11197_v50 }
 0x15d   : > { %v8790_v35 = vpop.f32.mrb[0].mxu1  ;;  %v8792_v45 = vpop.f32.mrb[1].mxu0  ;;  %2052 = vmatmul.mubr.f32.gmra.mrb[70].mxu0 %v5573_v20 }
 0x15e   : > { %v1011_v47 = vmax.f32 %v8788_v25, %v8790_v35  ;;  %v8796_v52 = vpop.f32.mrb[1].mxu1  ;;  %2197 = vmatmul.mubr.f32.gmra.mrb[70].mxu1 %v5573_v20  ;;  %5591 = vmatprep.mubr.msk.f32.mxu0 %vm652_vm0, %v5576_v22  ;;  %v8925_v20 = vpack.c.bf16 %v5662_v5, %v5661_v57 }
 0x15f   : > { %5603 = vmatprep.mubr.msk.f32.mxu1 %vm652_vm0, %v5576_v22  ;;  %v11305_v25 = vmax.f32 %v8792_v45, %v8796_v52 }
 0x160   : > { %v8804_v26 = vpop.f32.mrb[2].mxu0  ;;  %6628 = vmatpush1.bf16.msra.mxu1 %v8925_v20 }
 0x161   : > { %2058 = vmatmul.mubr.f32.gmra.mrb[72].mxu0 %v5575_v60  ;;  %v8806_v44 = vpop.f32.mrb[2].mxu1  ;;  %v8808_v27 = vpop.f32.mrb[3].mxu0  ;;  %6629 = vmatprep.subr.bf16.mxu1 %v11197_v50 }
 0x162   : > { %2203 = vmatmul.mubr.f32.gmra.mrb[72].mxu1 %v5575_v60  ;;  %5592 = vmatprep.mubr.msk.f32.mxu0 %vm652_vm0, %v5578_v12  ;;  %v8814_v40 = vpop.f32.mrb[3].mxu1  ;;  %v11308_v52 = vmax.f32 %v8804_v26, %v8806_v44 }
 0x163   : > { %5604 = vmatprep.mubr.msk.f32.mxu1 %vm652_vm0, %v5578_v12  ;;  %v11310_v44 = vmax.f32 %v8808_v27, %v8814_v40 }
 0x164   : > { %v8820_v62 = vpop.f32.mrb[4].mxu0 }
 0x165   : > { %2064 = vmatmul.mubr.f32.gmra.mrb[74].mxu0 %v5577_v58  ;;  %v8822_v6 = vpop.f32.mrb[4].mxu1  ;;  %v8824_v29 = vpop.f32.mrb[5].mxu0 }
 0x166   : > { %2209 = vmatmul.mubr.f32.gmra.mrb[74].mxu1 %v5577_v58  ;;  %5593 = vmatprep.mubr.msk.f32.mxu0 %vm652_vm0, %v5580_v13  ;;  %v8830_v38 = vpop.f32.mrb[5].mxu1  ;;  %v11312_v40 = vmax.f32 %v8820_v62, %v8822_v6 }
 0x167   : > { %5605 = vmatprep.mubr.msk.f32.mxu1 %vm652_vm0, %v5580_v13  ;;  %v5631_v13 = vld [vmem:[%s11162_s3 + $0xc0] sm:$0xff]  ;;  %v11313_v6 = vmax.f32 %v8824_v29, %v8830_v38 }
 0x168   : > { %v8836_v63 = vpop.f32.mrb[6].mxu0 }
 0x169   : > { %2070 = vmatmul.mubr.f32.gmra.mrb[76].mxu0 %v5579_v43  ;;  %v8838_v11 = vpop.f32.mrb[6].mxu1  ;;  %v8840_v17 = vpop.f32.mrb[7].mxu0 }
 0x16a   : > { %2215 = vmatmul.mubr.f32.gmra.mrb[76].mxu1 %v5579_v43  ;;  %5594 = vmatprep.mubr.msk.f32.mxu0 %vm652_vm0, %v5582_v61  ;;  %v8846_v23 = vpop.f32.mrb[7].mxu1  ;;  %v5632_v43 = vld [vmem:[%s11162_s3 + $0xc8] sm:$0xff]  ;;  %v11316_v38 = vmax.f32 %v8836_v63, %v8838_v11 }
 0x16b   : > { %5606 = vmatprep.mubr.msk.f32.mxu1 %vm652_vm0, %v5582_v61  ;;  %v5663_v61 = vld [vmem:[%s11162_s3 + $0x3e0] sm:$0xff]  ;;  %v8950_v3 = vpack.c.bf16 %v5632_v43, %v5631_v13  ;;  %v5633_v13 = vld [vmem:[%s11162_s3 + $0xd0] sm:$0xff]  ;;  %v5634_v43 = vld [vmem:[%s11162_s3 + $0xd8] sm:$0xff]  ;;  %v11317_v11 = vmax.f32 %v8840_v17, %v8846_v23 }
 0x16c   : > { %v8851_v28 = vpop.f32.mrb[8].mxu0  ;;  %v8957_v16 = vpack.c.bf16 %v5664_v4, %v5663_v61  ;;  %v5665_v61 = vld [vmem:[%s11162_s3 + $0x3f0] sm:$0xff]  ;;  %v8982_v57 = vpack.c.bf16 %v5634_v43, %v5633_v13  ;;  %v5636_v13 = vld [vmem:[%s11162_s3 + $0xe8] sm:$0xff]  ;;  %v5667_v43 = vld [vmem:[%s11162_s3 + $0x400] sm:$0xff] }
 0x16d   : > { %2076 = vmatmul.mubr.f32.gmra.mrb[78].mxu0 %v5581_v53  ;;  %v8853_v32 = vpop.f32.mrb[8].mxu1  ;;  %v8855_v33 = vpop.f32.mrb[9].mxu0  ;;  %v9025_v19 = vpack.c.bf16 %v5668_v42, %v5667_v43  ;;  %v1374_v42 = vlaneseq }
 0x16e   : > { %2221 = vmatmul.mubr.f32.gmra.mrb[78].mxu1 %v5581_v53  ;;  %v8859_v41 = vpop.f32.mrb[9].mxu1  ;;  %6571 = vmatpush1.bf16.msra.mxu0 %v8950_v3  ;;  %11297 = vst [vmem:[#allocation5_spill] sm:$0xff] %v8982_v57  ;;  %v5666_v53 = vld [vmem:[%s11162_s3 + $0x3f8] sm:$0xff]  ;;  %v11320_v23 = vmax.f32 %v8851_v28, %v8853_v32 }
 0x16f   : > { %6631 = vmatpush1.bf16.msra.mxu1 %v8957_v16  ;;  %6572 = vmatprep.subr.bf16.mxu0 %v11197_v50  ;;  %v8989_v0 = vpack.c.bf16 %v5666_v53, %v5665_v61  ;;  %v5635_v53 = vld [vmem:[%s11162_s3 + $0xe0] sm:$0xff]  ;;  %11300 = vst [vmem:[#allocation4_spill] sm:$0xff] %v9025_v19  ;;  %v5669_v61 = vld [vmem:[%s11162_s3 + $0x410] sm:$0xff]  ;;  %v1375_v43 = vshrl.u32 %v1374_v42, 7 }
 0x170   : > { %v8863_v46 = vpop.f32.mrb[10].mxu0  ;;  %6632 = vmatprep.subr.bf16.mxu1 %v11197_v50  ;;  %v9014_v4 = vpack.c.bf16 %v5636_v13, %v5635_v53  ;;  %v5670_v53 = vld [vmem:[%s11162_s3 + $0x418] sm:$0xff]  ;;  %v9034_v13 = vpack.c.bf16 %v5638_v24, %v5637_v37  ;;  %v1372_v37 = vld [vmem:[%s11161_s2] sm:$0x3] }
 0x171   : > { %v8867_v54 = vpop.f32.mrb[10].mxu1  ;;  %v8869_v55 = vpop.f32.mrb[11].mxu0  ;;  %11298 = vst [vmem:[#allocation6_spill] sm:$0xff] %v8989_v0  ;;  %v9038_v36 = vpack.c.bf16 %v5670_v53, %v5669_v61  ;;  %v9045_v24 = vsub.s32 0, %v1375_v43  ;;  %v9050_v61 = vsub.s32 1, %v1375_v43  ;;  %v5639_v42 = vld [vmem:[%s11162_s3 + $0x100] sm:$0xff] }
 0x172   : > { %v8873_v2 = vpop.f32.mrb[11].mxu1  ;;  %6574 = vmatpush1.bf16.msra.mxu0 %v8982_v57  ;;  %11299 = vst [vmem:[#allocation7_spill] sm:$0xff] %v9014_v4  ;;  %11301 = vst [vmem:[#allocation15_spill] sm:$0xff] %v9034_v13  ;;  %v5671_v43 = vld [vmem:[%s11162_s3 + $0x420] sm:$0xff] }
 0x173   : > { %6634 = vmatpush1.bf16.msra.mxu1 %v8989_v0  ;;  %6575 = vmatprep.subr.bf16.mxu0 %v11197_v50  ;;  %11302 = vst [vmem:[#allocation16_spill] sm:$0xff] %v9038_v36  ;;  %11303 = vst [vmem:[#allocation17_spill] sm:$0xff] %v9045_v24  ;;  %v9056_v9 = vrot.slane %v1372_v37, %v9045_v24 }
 0x174   : > { %v8891_v21 = vpop.f32.mrb[12].mxu0  ;;  %6635 = vmatprep.subr.bf16.mxu1 %v11197_v50  ;;  %11304 = vst [vmem:[#allocation18_spill] sm:$0xff] %v9050_v61 }
 0x175   : > { %v8895_v31 = vpop.f32.mrb[12].mxu1  ;;  %v8897_v34 = vpop.f32.mrb[13].mxu0 }
 0x176   : > { %v8902_v48 = vpop.f32.mrb[13].mxu1  ;;  %6577 = vmatpush1.bf16.msra.mxu0 %v9014_v4 }
 0x177   : > { %6637 = vmatpush1.bf16.msra.mxu1 %v9025_v19  ;;  %6578 = vmatprep.subr.bf16.mxu0 %v11197_v50 }
 0x178   : > { %v8923_v10 = vpop.f32.mrb[14].mxu0  ;;  %6638 = vmatprep.subr.bf16.mxu1 %v11197_v50 }
 0x179   : > { %v8927_v22 = vpop.f32.mrb[14].mxu1  ;;  %v8929_v60 = vpop.f32.mrb[15].mxu0 }
 0x17a   : > { %v8934_v58 = vpop.f32.mrb[15].mxu1  ;;  %6580 = vmatpush1.bf16.msra.mxu0 %v9034_v13  ;;  %v5672_v13 = vld [vmem:[%s11162_s3 + $0x428] sm:$0xff] }
 0x17b   : > { %6640 = vmatpush1.bf16.msra.mxu1 %v9038_v36  ;;  %6581 = vmatprep.subr.bf16.mxu0 %v11197_v50  ;;  %v9078_v4 = vpack.c.bf16 %v5672_v13, %v5671_v43 }
 0x17c   : > { %v8955_v8 = vpop.f32.mrb[16].mxu0  ;;  %6641 = vmatprep.subr.bf16.mxu1 %v11197_v50  ;;  %v5640_v50 = vld [vmem:[%s11162_s3 + $0x108] sm:$0xff] }
 0x17d   : > { %v8959_v49 = vpop.f32.mrb[16].mxu1  ;;  %v8961_v51 = vpop.f32.mrb[17].mxu0  ;;  %v9073_v36 = vpack.c.bf16 %v5640_v50, %v5639_v42  ;;  %11307 = vst [vmem:[#allocation9_spill] sm:$0xff] %v9078_v4  ;;  %v11309_v42 = vmov 0.0|0.0  }
 0x17e   : > { %v8966_v5 = vpop.f32.mrb[17].mxu1 }
 0x17f   : > { %11306 = vst [vmem:[#allocation8_spill] sm:$0xff] %v9073_v36  ;;  %6583 = vmatpush1.bf16.msra.mxu0 %v9073_v36  ;;  %6643 = vmatpush1.bf16.msra.mxu1 %v9078_v4 }
 0x180   : > { %v8987_v12 = vpop.f32.mrb[18].mxu0  ;;  %6584 = vmatprep.subr.bf16.mxu0 %v11309_v42  ;;  %6644 = vmatprep.subr.bf16.mxu1 %v11309_v42 }
 0x181   : > { %v8991_v39 = vpop.f32.mrb[18].mxu1  ;;  %v8993_v14 = vpop.f32.mrb[19].mxu0 }
 0x182   : > { %v8998_v59 = vpop.f32.mrb[19].mxu1 }
 0x19c   : > { %v1148_v53 = vpop.f32.mrb[20].mxu0 }
 0x19d   : > { %v1207_v7 = vmax.f32 %v1011_v47, %v1148_v53  ;;  %v1150_v56 = vpop.f32.mrb[21].mxu0  ;;  %v1293_v18 = vpop.f32.mrb[20].mxu1  ;;  %v9071_v53 = vrot.slane %v1372_v37, %v9050_v61 }
 0x19e   : > { %v1208_v35 = vmax.f32 %v11305_v25, %v1150_v56  ;;  %v1295_v47 = vpop.f32.mrb[21].mxu1  ;;  %v5674_v25 = vld [vmem:[%s11162_s3 + $0x438] sm:$0xff] }
 0x19f   : > { %v1352_v19 = vmax.f32 %v1207_v7, %v1293_v18  ;;  %v5641_v18 = vld [vmem:[%s11162_s3 + $0x110] sm:$0xff]  ;;  %v5642_v7 = vld [vmem:[%s11162_s3 + $0x118] sm:$0xff] }
 0x1a0   : > { %v1353_v0 = vmax.f32 %v1208_v35, %v1295_v47  ;;  %v1154_v57 = vpop.f32.mrb[22].mxu0  ;;  %v9101_v43 = vpack.c.bf16 %v5642_v7, %v5641_v18 }
 0x1a1   : > { %v1384_v45 = vadd.f32 %v9056_v9, %v1352_v19  ;;  %v1209_v56 = vmax.f32 %v11308_v52, %v1154_v57  ;;  %v1156_v37 = vpop.f32.mrb[23].mxu0  ;;  %v1299_v50 = vpop.f32.mrb[22].mxu1  ;;  %v5673_v19 = vld [vmem:[%s11162_s3 + $0x430] sm:$0xff] }
 0x1a2   : > { %v1385_v26 = vadd.f32 %v9071_v53, %v1353_v0  ;;  %v1210_v57 = vmax.f32 %v11310_v44, %v1156_v37  ;;  %v1301_v13 = vpop.f32.mrb[23].mxu1  ;;  %v9106_v52 = vpack.c.bf16 %v5674_v25, %v5673_v19  ;;  %6586 = vmatpush1.bf16.msra.mxu0 %v9101_v43  ;;  %v5676_v44 = vld [vmem:[%s11162_s3 + $0x448] sm:$0xff] }
 0x1a3   : > { %v1404_v35 = vmax.f32 %v1384_v45, 0.0  ;;  %v1354_v47 = vmax.f32 %v1209_v56, %v1299_v50  ;;  %6587 = vmatprep.subr.bf16.mxu0 %v11309_v42  ;;  %v5643_v45 = vld [vmem:[%s11162_s3 + $0x120] sm:$0xff]  ;;  %v5644_v56 = vld [vmem:[%s11162_s3 + $0x128] sm:$0xff] }
 0x1a4   : > { %11311 = vst [vmem:[#allocation10_spill] sm:$0xff] %v9106_v52  ;;  %v1405_v4 = vmax.f32 %v1385_v26, 0.0  ;;  %v1355_v0 = vmax.f32 %v1210_v57, %v1301_v13  ;;  %v1160_v36 = vpop.f32.mrb[24].mxu0  ;;  %6646 = vmatpush1.bf16.msra.mxu1 %v9106_v52  ;;  %v5675_v50 = vld [vmem:[%s11162_s3 + $0x440] sm:$0xff]  ;;  %v9130_v26 = vpack.c.bf16 %v5644_v56, %v5643_v45 }
 0x1a5   : > { %1424 = vst [vmem:[#allocation2] sm:$0xff] %v1404_v35  ;;  %v1386_v27 = vadd.f32 %v9056_v9, %v1354_v47  ;;  %v1211_v37 = vmax.f32 %v11312_v40, %v1160_v36  ;;  %v1162_v18 = vpop.f32.mrb[25].mxu0  ;;  %v1305_v7 = vpop.f32.mrb[24].mxu1  ;;  %6647 = vmatprep.subr.bf16.mxu1 %v11309_v42  ;;  %v9135_v25 = vpack.c.bf16 %v5676_v44, %v5675_v50 }
 0x1a6   : > { %1426 = vst.msk [vmem:[#allocation2 + $0x8] sm:$0xff] %vm1425_vm4, %v1405_v4  ;;  %v1387_v62 = vadd.f32 %v9071_v53, %v1355_v0  ;;  %v1212_v36 = vmax.f32 %v11313_v6, %v1162_v18  ;;  %v1307_v19 = vpop.f32.mrb[25].mxu1  ;;  %11314 = vst [vmem:[#allocation11_spill] sm:$0xff] %v9130_v26  ;;  %6589 = vmatpush1.bf16.msra.mxu0 %v9130_v26 }
 0x1a7   : > { %v1406_v57 = vmax.f32 %v1386_v27, 0.0  ;;  %v1356_v13 = vmax.f32 %v1211_v37, %v1305_v7  ;;  %11315 = vst [vmem:[#allocation12_spill] sm:$0xff] %v9135_v25  ;;  %6590 = vmatprep.subr.bf16.mxu0 %v11309_v42  ;;  %v5645_v27 = vld [vmem:[%s11162_s3 + $0x130] sm:$0xff]  ;;  %v5646_v37 = vld [vmem:[%s11162_s3 + $0x138] sm:$0xff] }
 0x1a8   : > { %v1407_v4 = vmax.f32 %v1387_v62, 0.0  ;;  %v1357_v35 = vmax.f32 %v1212_v36, %v1307_v19  ;;  %v1166_v47 = vpop.f32.mrb[26].mxu0  ;;  %6649 = vmatpush1.bf16.msra.mxu1 %v9135_v25  ;;  %v5677_v7 = vld [vmem:[%s11162_s3 + $0x450] sm:$0xff]  ;;  %v9159_v50 = vpack.c.bf16 %v5646_v37, %v5645_v27  ;;  %v5678_v62 = vld [vmem:[%s11162_s3 + $0x458] sm:$0xff] }
 0x1a9   : > { %1427 = vst [vmem:[#allocation2 + $0x10] sm:$0xff] %v1406_v57  ;;  %v1388_v29 = vadd.f32 %v9056_v9, %v1356_v13  ;;  %v1213_v0 = vmax.f32 %v11316_v38, %v1166_v47  ;;  %v1168_v40 = vpop.f32.mrb[27].mxu0  ;;  %v1311_v18 = vpop.f32.mrb[26].mxu1  ;;  %6650 = vmatprep.subr.bf16.mxu1 %v11309_v42  ;;  %v9164_v19 = vpack.c.bf16 %v5678_v62, %v5677_v7 }
 0x1aa   : > { %1428 = vst.msk [vmem:[#allocation2 + $0x18] sm:$0xff] %vm1425_vm4, %v1407_v4  ;;  %v1389_v63 = vadd.f32 %v9071_v53, %v1357_v35  ;;  %v1214_v45 = vmax.f32 %v11317_v11, %v1168_v40  ;;  %v1313_v56 = vpop.f32.mrb[27].mxu1  ;;  %11318 = vst [vmem:[#allocation13_spill] sm:$0xff] %v9159_v50  ;;  %6592 = vmatpush1.bf16.msra.mxu0 %v9159_v50  ;;  %v11321_v38 = vmax.f32 %v8855_v33, %v8859_v41 }
 0x1ab   : > { %v1408_v6 = vmax.f32 %v1388_v29, 0.0  ;;  %v1358_v36 = vmax.f32 %v1213_v0, %v1311_v18  ;;  %11319 = vst [vmem:[#allocation14_spill] sm:$0xff] %v9164_v19  ;;  %6593 = vmatprep.subr.bf16.mxu0 %v11309_v42  ;;  %v11323_v41 = vmax.f32 %v8869_v55, %v8873_v2  ;;  %v11325_v2 = vmax.f32 %v8897_v34, %v8902_v48 }
 0x1ac   : > { %v1409_v44 = vmax.f32 %v1389_v63, 0.0  ;;  %v1359_v57 = vmax.f32 %v1214_v45, %v1313_v56  ;;  %v1172_v13 = vpop.f32.mrb[28].mxu0  ;;  %6652 = vmatpush1.bf16.msra.mxu1 %v9164_v19  ;;  %v11322_v63 = vmax.f32 %v8863_v46, %v8867_v54  ;;  %v11324_v54 = vmax.f32 %v8891_v21, %v8895_v31 }
 0x1ad   : > { %1429 = vst [vmem:[#allocation2 + $0x20] sm:$0xff] %v1408_v6  ;;  %v1390_v17 = vadd.f32 %v9056_v9, %v1358_v36  ;;  %v1215_v4 = vmax.f32 %v11320_v23, %v1172_v13  ;;  %v1174_v35 = vpop.f32.mrb[29].mxu0  ;;  %v1317_v47 = vpop.f32.mrb[28].mxu1  ;;  %6653 = vmatprep.subr.bf16.mxu1 %v11309_v42  ;;  %v11326_v31 = vmax.f32 %v8923_v10, %v8927_v22 }
 0x1ae   : > { %1430 = vst.msk [vmem:[#allocation2 + $0x28] sm:$0xff] %vm1425_vm4, %v1409_v44  ;;  %v1391_v29 = vadd.f32 %v9071_v53, %v1359_v57  ;;  %v1216_v0 = vmax.f32 %v11321_v38, %v1174_v35  ;;  %v1319_v40 = vpop.f32.mrb[29].mxu1  ;;  %v11327_v48 = vmax.f32 %v8929_v60, %v8934_v58  ;;  %v11328_v22 = vmax.f32 %v8955_v8, %v8959_v49 }
 0x1af   : > { %v1410_v18 = vmax.f32 %v1390_v17, 0.0  ;;  %v1360_v28 = vmax.f32 %v1215_v4, %v1317_v47  ;;  %v11329_v58 = vmax.f32 %v8961_v51, %v8966_v5  ;;  %v11330_v49 = vmax.f32 %v8987_v12, %v8991_v39 }
 0x1b0   : > { %v1411_v32 = vmax.f32 %v1391_v29, 0.0  ;;  %v1361_v27 = vmax.f32 %v1216_v0, %v1319_v40  ;;  %v1178_v37 = vpop.f32.mrb[30].mxu0  ;;  %v11331_v5 = vmax.f32 %v8993_v14, %v8998_v59 }
 0x1b1   : > { %1431 = vst [vmem:[#allocation2 + $0x30] sm:$0xff] %v1410_v18  ;;  %v1392_v7 = vadd.f32 %v9056_v9, %v1360_v28  ;;  %v1217_v11 = vmax.f32 %v11322_v63, %v1178_v37  ;;  %v1180_v45 = vpop.f32.mrb[31].mxu0  ;;  %v1323_v56 = vpop.f32.mrb[30].mxu1 }
 0x1b2   : > { %1432 = vst.msk [vmem:[#allocation2 + $0x38] sm:$0xff] %vm1425_vm4, %v1411_v32  ;;  %v1393_v33 = vadd.f32 %v9071_v53, %v1361_v27  ;;  %v1218_v62 = vmax.f32 %v11323_v41, %v1180_v45  ;;  %v1325_v6 = vpop.f32.mrb[31].mxu1 }
 0x1b3   : > { %v1412_v36 = vmax.f32 %v1392_v7, 0.0  ;;  %v1362_v44 = vmax.f32 %v1217_v11, %v1323_v56 }
 0x1b4   : > { %v1413_v57 = vmax.f32 %v1393_v33, 0.0  ;;  %v1363_v13 = vmax.f32 %v1218_v62, %v1325_v6  ;;  %v1184_v17 = vpop.f32.mrb[32].mxu0 }
 0x1b5   : > { %1433 = vst [vmem:[#allocation2 + $0x40] sm:$0xff] %v1412_v36  ;;  %v1394_v46 = vadd.f32 %v9056_v9, %v1362_v44  ;;  %v1219_v23 = vmax.f32 %v11324_v54, %v1184_v17  ;;  %v1186_v4 = vpop.f32.mrb[33].mxu0  ;;  %v1329_v35 = vpop.f32.mrb[32].mxu1 }
 0x1b6   : > { %1434 = vst.msk [vmem:[#allocation2 + $0x48] sm:$0xff] %vm1425_vm4, %v1413_v57  ;;  %v1395_v55 = vadd.f32 %v9071_v53, %v1363_v13  ;;  %v1220_v47 = vmax.f32 %v11325_v2, %v1186_v4  ;;  %v1331_v29 = vpop.f32.mrb[33].mxu1 }
 0x1b7   : > { %v1414_v38 = vmax.f32 %v1394_v46, 0.0  ;;  %v1364_v0 = vmax.f32 %v1219_v23, %v1329_v35 }
 0x1b8   : > { %v1415_v40 = vmax.f32 %v1395_v55, 0.0  ;;  %v1365_v18 = vmax.f32 %v1220_v47, %v1331_v29  ;;  %v1190_v28 = vpop.f32.mrb[34].mxu0 }
 0x1b9   : > { %1435 = vst [vmem:[#allocation2 + $0x50] sm:$0xff] %v1414_v38  ;;  %v1396_v21 = vadd.f32 %v9056_v9, %v1364_v0  ;;  %v1221_v32 = vmax.f32 %v11326_v31, %v1190_v28  ;;  %v1192_v27 = vpop.f32.mrb[35].mxu0  ;;  %v1335_v37 = vpop.f32.mrb[34].mxu1 }
 0x1ba   : > { %1436 = vst.msk [vmem:[#allocation2 + $0x58] sm:$0xff] %vm1425_vm4, %v1415_v40  ;;  %v1397_v34 = vadd.f32 %v9071_v53, %v1365_v18  ;;  %v1222_v7 = vmax.f32 %v11327_v48, %v1192_v27  ;;  %v1337_v63 = vpop.f32.mrb[35].mxu1 }
 0x1bb   : > { %v1416_v11 = vmax.f32 %v1396_v21, 0.0  ;;  %v1366_v45 = vmax.f32 %v1221_v32, %v1335_v37 }
 0x1bc   : > { %v1417_v56 = vmax.f32 %v1397_v34, 0.0  ;;  %v1367_v33 = vmax.f32 %v1222_v7, %v1337_v63  ;;  %v1196_v41 = vpop.f32.mrb[36].mxu0 }
 0x1bd   : > { %1437 = vst [vmem:[#allocation2 + $0x60] sm:$0xff] %v1416_v11  ;;  %v1398_v10 = vadd.f32 %v9056_v9, %v1366_v45  ;;  %v1223_v62 = vmax.f32 %v11328_v22, %v1196_v41  ;;  %v1198_v6 = vpop.f32.mrb[37].mxu0  ;;  %v1341_v36 = vpop.f32.mrb[36].mxu1 }
 0x1be   : > { %1438 = vst.msk [vmem:[#allocation2 + $0x68] sm:$0xff] %vm1425_vm4, %v1417_v56  ;;  %v1399_v60 = vadd.f32 %v9071_v53, %v1367_v33  ;;  %v1224_v44 = vmax.f32 %v11329_v58, %v1198_v6  ;;  %v1343_v57 = vpop.f32.mrb[37].mxu1 }
 0x1bf   : > { %v1418_v13 = vmax.f32 %v1398_v10, 0.0  ;;  %v1368_v17 = vmax.f32 %v1223_v62, %v1341_v36 }
 0x1c0   : > { %v1419_v46 = vmax.f32 %v1399_v60, 0.0  ;;  %v1369_v54 = vmax.f32 %v1224_v44, %v1343_v57  ;;  %v1202_v23 = vpop.f32.mrb[38].mxu0 }
 0x1c1   : > { %1439 = vst [vmem:[#allocation2 + $0x70] sm:$0xff] %v1418_v13  ;;  %v1400_v8 = vadd.f32 %v9056_v9, %v1368_v17  ;;  %v1225_v4 = vmax.f32 %v11330_v49, %v1202_v23  ;;  %v1204_v35 = vpop.f32.mrb[39].mxu0  ;;  %v1347_v55 = vpop.f32.mrb[38].mxu1 }
 0x1c2   : > { %1440 = vst.msk [vmem:[#allocation2 + $0x78] sm:$0xff] %vm1425_vm4, %v1419_v46  ;;  %v1401_v51 = vadd.f32 %v9071_v53, %v1369_v54  ;;  %v1226_v2 = vmax.f32 %v11331_v5, %v1204_v35  ;;  %v1349_v47 = vpop.f32.mrb[39].mxu1 }
 0x1c3   : > { %v1420_v29 = vmax.f32 %v1400_v8, 0.0  ;;  %v1370_v38 = vmax.f32 %v1225_v4, %v1347_v55 }
 0x1c4   : > { %v1421_v0 = vmax.f32 %v1401_v51, 0.0  ;;  %v1371_v40 = vmax.f32 %v1226_v2, %v1349_v47 }
 0x1c5   : > { %1441 = vst [vmem:[#allocation2 + $0x80] sm:$0xff] %v1420_v29  ;;  %v1402_v18 = vadd.f32 %v9056_v9, %v1370_v38 }
 0x1c6   : > { %1442 = vst.msk [vmem:[#allocation2 + $0x88] sm:$0xff] %vm1425_vm4, %v1421_v0  ;;  %v1403_v39 = vadd.f32 %v9071_v53, %v1371_v40 }
 0x1c7   : > { %v1422_v12 = vmax.f32 %v1402_v18, 0.0 }
 0x1c8   : > { %v1423_v28 = vmax.f32 %v1403_v39, 0.0 }
 0x1c9   : > { %1443 = vst [vmem:[#allocation2 + $0x90] sm:$0xff] %v1422_v12 }
 0x1ca   : > { %1444 = vst.msk [vmem:[#allocation2 + $0x98] sm:$0xff] %vm1425_vm4, %v1423_v28 }
 0x1dc   : > { %v9228_v21 = vpop.f32.mrb[40].mxu0 }
 0x1dd   : > { %v1827_v59 = vpop.f32.mrb[40].mxu1  ;;  %v9230_v14 = vpop.f32.mrb[41].mxu0 }
 0x1de   : > { %v1886_v31 = vmax.f32 %v9228_v21, %v1827_v59  ;;  %v9233_v32 = vpop.f32.mrb[41].mxu1 }
 0x1df   : > { %v1887_v9 = vmax.f32 %v9230_v14, %v9233_v32  ;;  %v2247_v14 = vld [vmem:[%s11161_s2] sm:$0x3] }
 0x1e0   : > { %v9237_v27 = vpop.f32.mrb[42].mxu0  ;;  %v9349_v41 = vrot.slane %v2247_v14, %v9045_v24  ;;  %v9352_v12 = vrot.slane %v2247_v14, %v9050_v61 }
 0x1e1   : > { %v9239_v53 = vpop.f32.mrb[42].mxu1  ;;  %v9241_v37 = vpop.f32.mrb[43].mxu0 }
 0x1e2   : > { %v9245_v48 = vpop.f32.mrb[43].mxu1  ;;  %v11332_v25 = vmax.f32 %v9237_v27, %v9239_v53 }
 0x1e4   : > { %v9249_v63 = vpop.f32.mrb[44].mxu0 }
 0x1e5   : > { %v9251_v11 = vpop.f32.mrb[44].mxu1  ;;  %v9253_v45 = vpop.f32.mrb[45].mxu0 }
 0x1e6   : > { %v9257_v33 = vpop.f32.mrb[45].mxu1 }
 0x1e8   : > { %v9261_v10 = vpop.f32.mrb[46].mxu0 }
 0x1e9   : > { %v9263_v22 = vpop.f32.mrb[46].mxu1  ;;  %v9265_v62 = vpop.f32.mrb[47].mxu0 }
 0x1ea   : > { %v9269_v36 = vpop.f32.mrb[47].mxu1 }
 0x1ec   : > { %v9273_v58 = vpop.f32.mrb[48].mxu0 }
 0x1ed   : > { %v9275_v44 = vpop.f32.mrb[48].mxu1  ;;  %v9277_v57 = vpop.f32.mrb[49].mxu0 }
 0x1ee   : > { %v9281_v17 = vpop.f32.mrb[49].mxu1 }
 0x1f0   : > { %v9285_v54 = vpop.f32.mrb[50].mxu0 }
 0x1f1   : > { %v9287_v23 = vpop.f32.mrb[50].mxu1  ;;  %v9289_v8 = vpop.f32.mrb[51].mxu0 }
 0x1f2   : > { %v9293_v4 = vpop.f32.mrb[51].mxu1 }
 0x1f4   : > { %v9297_v55 = vpop.f32.mrb[52].mxu0 }
 0x1f5   : > { %v9299_v51 = vpop.f32.mrb[52].mxu1  ;;  %v9301_v5 = vpop.f32.mrb[53].mxu0 }
 0x1f6   : > { %v9305_v47 = vpop.f32.mrb[53].mxu1 }
 0x1f8   : > { %v9309_v38 = vpop.f32.mrb[54].mxu0 }
 0x1f9   : > { %v9311_v0 = vpop.f32.mrb[54].mxu1  ;;  %v9313_v40 = vpop.f32.mrb[55].mxu0 }
 0x1fa   : > { %v9317_v39 = vpop.f32.mrb[55].mxu1 }
 0x1fc   : > { %v9321_v28 = vpop.f32.mrb[56].mxu0 }
 0x1fd   : > { %v9323_v21 = vpop.f32.mrb[56].mxu1  ;;  %v9325_v59 = vpop.f32.mrb[57].mxu0 }
 0x1fe   : > { %v9329_v32 = vpop.f32.mrb[57].mxu1 }
 0x200   : > { %v9333_v18 = vpop.f32.mrb[58].mxu0 }
 0x201   : > { %v9335_v2 = vpop.f32.mrb[58].mxu1  ;;  %v9337_v35 = vpop.f32.mrb[59].mxu0 }
 0x202   : > { %v9341_v49 = vpop.f32.mrb[59].mxu1 }
 0x21c   : > { %v2023_v13 = vpop.f32.mrb[60].mxu0 }
 0x21d   : > { %v2082_v29 = vmax.f32 %v1886_v31, %v2023_v13  ;;  %v2025_v60 = vpop.f32.mrb[61].mxu0  ;;  %v2168_v6 = vpop.f32.mrb[60].mxu1 }
 0x21e   : > { %v2083_v56 = vmax.f32 %v1887_v9, %v2025_v60  ;;  %v2170_v7 = vpop.f32.mrb[61].mxu1  ;;  %v11333_v9 = vmax.f32 %v9241_v37, %v9245_v48  ;;  %v11335_v37 = vmax.f32 %v9253_v45, %v9257_v33 }
 0x21f   : > { %v2227_v34 = vmax.f32 %v2082_v29, %v2168_v6 }
 0x220   : > { %v2228_v19 = vmax.f32 %v2083_v56, %v2170_v7  ;;  %v2029_v50 = vpop.f32.mrb[62].mxu0 }
 0x221   : > { %v2259_v46 = vadd.f32 %v9349_v41, %v2227_v34  ;;  %v2084_v26 = vmax.f32 %v11332_v25, %v2029_v50  ;;  %v2031_v31 = vpop.f32.mrb[63].mxu0  ;;  %v2174_v13 = vpop.f32.mrb[62].mxu1  ;;  %v11334_v25 = vmax.f32 %v9249_v63, %v9251_v11  ;;  %v2332_v63 = vld [vmem:[%s11162_s3] sm:$0xff] }
 0x222   : > { %v2260_v52 = vadd.f32 %v9352_v12, %v2228_v19  ;;  %v2085_v60 = vmax.f32 %v11333_v9, %v2031_v31  ;;  %v2176_v24 = vpop.f32.mrb[63].mxu1  ;;  %v11336_v31 = vmax.f32 %v9261_v10, %v9263_v22  ;;  %v2333_v9 = vld [vmem:[%s11162_s3 + $0x8] sm:$0xff]  ;;  %v11337_v10 = vmax.f32 %v9265_v62, %v9269_v36  ;;  %v2335_v62 = vld [vmem:[%s11162_s3 + $0x18] sm:$0xff] }
 0x223   : > { %v2279_v14 = vmax.f32 %v2259_v46, 0.0  ;;  %v2229_v61 = vmax.f32 %v2084_v26, %v2174_v13 }
 0x224   : > { %v2280_v6 = vmax.f32 %v2260_v52, 0.0  ;;  %v2230_v7 = vmax.f32 %v2085_v60, %v2176_v24  ;;  %v2035_v56 = vpop.f32.mrb[64].mxu0  ;;  %v5607_v60 = vld [vmem:[%s11162_s3 + $0x320] sm:$0xff] }
 0x225   : > { %2300 = vst [vmem:[#allocation2 + $0xa0] sm:$0xff] %v2279_v14  ;;  %v2261_v34 = vadd.f32 %v9349_v41, %v2229_v61  ;;  %v2086_v50 = vmax.f32 %v11334_v25, %v2035_v56  ;;  %v2037_v27 = vpop.f32.mrb[65].mxu0  ;;  %v2180_v53 = vpop.f32.mrb[64].mxu1 }
 0x226   : > { %2301 = vst.msk [vmem:[#allocation2 + $0xa8] sm:$0xff] %vm1425_vm4, %v2280_v6  ;;  %v2262_v19 = vadd.f32 %v9352_v12, %v2230_v7  ;;  %v2087_v26 = vmax.f32 %v11335_v37, %v2037_v27  ;;  %v2182_v52 = vpop.f32.mrb[65].mxu1  ;;  %v5608_v6 = vld [vmem:[%s11162_s3 + $0x328] sm:$0xff] }
 0x227   : > { %v9371_v24 = vmax.f32 %v2261_v34, 0.0  ;;  %v2231_v48 = vmax.f32 %v2086_v50, %v2180_v53  ;;  %v9399_v37 = vpack.c.bf16 %v5608_v6, %v5607_v60 }
 0x228   : > { %v2282_v46 = vmax.f32 %v2262_v19, 0.0  ;;  %v2232_v61 = vmax.f32 %v2087_v26, %v2182_v52  ;;  %v2041_v29 = vpop.f32.mrb[66].mxu0  ;;  %v9397_v19 = vpack.c.bf16 %v2333_v9, %v2332_v63  ;;  %v2334_v26 = vld [vmem:[%s11162_s3 + $0x10] sm:$0xff]  ;;  %v11338_v52 = vmax.f32 %v9273_v58, %v9275_v44 }
 0x229   : > { %2302 = vst [vmem:[#allocation2 + $0xb0] sm:$0xff] %v9371_v24  ;;  %v2263_v11 = vadd.f32 %v9349_v41, %v2231_v48  ;;  %v2088_v45 = vmax.f32 %v11336_v31, %v2041_v29  ;;  %v2043_v33 = vpop.f32.mrb[67].mxu0  ;;  %v2186_v13 = vpop.f32.mrb[66].mxu1  ;;  %v5609_v63 = vld [vmem:[%s11162_s3 + $0x330] sm:$0xff] }
 0x22a   : > { %2303 = vst.msk [vmem:[#allocation2 + $0xb8] sm:$0xff] %vm1425_vm4, %v2282_v46  ;;  %v2264_v7 = vadd.f32 %v9352_v12, %v2232_v61  ;;  %v2089_v22 = vmax.f32 %v11337_v10, %v2043_v33  ;;  %v2188_v56 = vpop.f32.mrb[67].mxu1  ;;  %v2337_v10 = vld [vmem:[%s11162_s3 + $0x28] sm:$0xff] }
 0x22b   : > { %v9395_v34 = vmax.f32 %v2263_v11, 0.0  ;;  %v2233_v25 = vmax.f32 %v2088_v45, %v2186_v13  ;;  %v5610_v11 = vld [vmem:[%s11162_s3 + $0x338] sm:$0xff]  ;;  %v11339_v45 = vmax.f32 %v9277_v57, %v9281_v17  ;;  %v2336_v17 = vld [vmem:[%s11162_s3 + $0x20] sm:$0xff] }
 0x22c   : > { %v2284_v50 = vmax.f32 %v2264_v7, 0.0  ;;  %v2234_v27 = vmax.f32 %v2089_v22, %v2188_v56  ;;  %v2047_v53 = vpop.f32.mrb[68].mxu0  ;;  %v9429_v7 = vpack.c.bf16 %v2335_v62, %v2334_v26  ;;  %v9431_v57 = vpack.c.bf16 %v5610_v11, %v5609_v63  ;;  %v5612_v26 = vld [vmem:[%s11162_s3 + $0x348] sm:$0xff]  ;;  %v2338_v63 = vld [vmem:[%s11162_s3 + $0x30] sm:$0xff]  ;;  %v2339_v11 = vld [vmem:[%s11162_s3 + $0x38] sm:$0xff] }
 0x22d   : > { %2304 = vst [vmem:[#allocation2 + $0xc0] sm:$0xff] %v9395_v34  ;;  %v2265_v36 = vadd.f32 %v9349_v41, %v2233_v25  ;;  %v2090_v48 = vmax.f32 %v11338_v52, %v2047_v53  ;;  %v2049_v46 = vpop.f32.mrb[69].mxu0  ;;  %v2192_v61 = vpop.f32.mrb[68].mxu1  ;;  %v2374_v29 = vld [vmem:[#allocation2 + $0xa8] sm:$0xff]  ;;  %v11340_v22 = vmax.f32 %v9285_v54, %v9287_v23  ;;  %v5611_v53 = vld [vmem:[%s11162_s3 + $0x340] sm:$0xff]  ;;  %v11341_v23 = vmax.f32 %v9289_v8, %v9293_v4 }
 0x22e   : > { %2305 = vst.msk [vmem:[#allocation2 + $0xc8] sm:$0xff] %vm1425_vm4, %v2284_v50  ;;  %v2266_v31 = vadd.f32 %v9352_v12, %v2234_v27  ;;  %v2091_v58 = vmax.f32 %v11339_v45, %v2049_v46  ;;  %5647 = vmatprep.mubr.msk.f32.mxu0 %vm1425_vm4, %v2374_v29  ;;  %5679 = vmatprep.mubr.msk.f32.mxu1 %vm1425_vm4, %v2374_v29  ;;  %v2194_v44 = vpop.f32.mrb[69].mxu1 }
 0x22f   : > { %v9425_v33 = vmax.f32 %v2265_v36, 0.0  ;;  %v2235_v13 = vmax.f32 %v2090_v48, %v2192_v61  ;;  %2489 = vmatmul.mubr.f32.vlgmr.msra.gmra.mrb[80].mxu0 %v2279_v14  ;;  %2718 = vmatmul.mubr.f32.vlgmr.msra.gmra.mrb[80].mxu1 %v2279_v14  ;;  %v9465_v4 = vpack.c.bf16 %v2337_v10, %v2336_v17  ;;  %v9467_v29 = vpack.c.bf16 %v5612_v26, %v5611_v53 }
 0x230   : > { %v2286_v9 = vmax.f32 %v2266_v31, 0.0  ;;  %v2236_v60 = vmax.f32 %v2091_v58, %v2194_v44  ;;  %6595 = vmatpush1.bf16.msra.mxu0 %v9397_v19  ;;  %6655 = vmatpush1.bf16.msra.mxu1 %v9399_v37  ;;  %v2053_v6 = vpop.f32.mrb[70].mxu0  ;;  %v11342_v31 = vmax.f32 %v9297_v55, %v9299_v51  ;;  %v11343_v51 = vmax.f32 %v9301_v5, %v9305_v47 }
 0x231   : > { %2306 = vst [vmem:[#allocation2 + $0xd0] sm:$0xff] %v9425_v33  ;;  %v2267_v14 = vadd.f32 %v9349_v41, %v2235_v13  ;;  %v2092_v56 = vmax.f32 %v11340_v22, %v2053_v6  ;;  %v2055_v25 = vpop.f32.mrb[71].mxu0  ;;  %v2198_v50 = vpop.f32.mrb[70].mxu1  ;;  %v2376_v27 = vld [vmem:[#allocation2 + $0xb8] sm:$0xff]  ;;  %6596 = vmatprep.subr.bf16.mxu0 %v11309_v42  ;;  %6656 = vmatprep.subr.bf16.mxu1 %v11309_v42 }
 0x232   : > { %2307 = vst.msk [vmem:[#allocation2 + $0xd8] sm:$0xff] %vm1425_vm4, %v2286_v9  ;;  %v2268_v54 = vadd.f32 %v9352_v12, %v2236_v60  ;;  %v2093_v62 = vmax.f32 %v11341_v23, %v2055_v25  ;;  %5648 = vmatprep.mubr.msk.f32.mxu0 %vm1425_vm4, %v2376_v27  ;;  %5680 = vmatprep.mubr.msk.f32.mxu1 %vm1425_vm4, %v2376_v27  ;;  %v2200_v36 = vpop.f32.mrb[71].mxu1  ;;  %v5613_v9 = vld [vmem:[%s11162_s3 + $0x350] sm:$0xff]  ;;  %v5614_v60 = vld [vmem:[%s11162_s3 + $0x358] sm:$0xff]  ;;  %v2341_v27 = vld [vmem:[%s11162_s3 + $0x48] sm:$0xff] }
 0x233   : > { %v9459_v52 = vmax.f32 %v2267_v14, 0.0  ;;  %v2237_v48 = vmax.f32 %v2092_v56, %v2198_v50  ;;  %2494 = vmatmul.mubr.f32.gmra.mrb[82].mxu0 %v9371_v24  ;;  %2723 = vmatmul.mubr.f32.gmra.mrb[82].mxu1 %v9371_v24  ;;  %v9505_v47 = vpack.c.bf16 %v2339_v11, %v2338_v63  ;;  %v9507_v25 = vpack.c.bf16 %v5614_v60, %v5613_v9  ;;  %v2340_v50 = vld [vmem:[%s11162_s3 + $0x40] sm:$0xff] }
 0x234   : > { %v2288_v46 = vmax.f32 %v2268_v54, 0.0  ;;  %v2238_v61 = vmax.f32 %v2093_v62, %v2200_v36  ;;  %6598 = vmatpush1.bf16.msra.mxu0 %v9429_v7  ;;  %6658 = vmatpush1.bf16.msra.mxu1 %v9431_v57  ;;  %v2059_v8 = vpop.f32.mrb[72].mxu0  ;;  %v11344_v53 = vmax.f32 %v9309_v38, %v9311_v0  ;;  %v5615_v36 = vld [vmem:[%s11162_s3 + $0x360] sm:$0xff]  ;;  %v11345_v0 = vmax.f32 %v9313_v40, %v9317_v39 }
 0x235   : > { %2308 = vst [vmem:[#allocation2 + $0xe0] sm:$0xff] %v9459_v52  ;;  %v2269_v24 = vadd.f32 %v9349_v41, %v2237_v48  ;;  %v2094_v45 = vmax.f32 %v11342_v31, %v2059_v8  ;;  %v2061_v58 = vpop.f32.mrb[73].mxu0  ;;  %v2204_v44 = vpop.f32.mrb[72].mxu1  ;;  %v9480_v13 = vld [vmem:[#allocation2 + $0xc8] sm:$0xff]  ;;  %6599 = vmatprep.subr.bf16.mxu0 %v11309_v42  ;;  %6659 = vmatprep.subr.bf16.mxu1 %v11309_v42 }
 0x236   : > { %2309 = vst.msk [vmem:[#allocation2 + $0xe8] sm:$0xff] %vm1425_vm4, %v2288_v46  ;;  %v2270_v55 = vadd.f32 %v9352_v12, %v2238_v61  ;;  %v2095_v6 = vmax.f32 %v11343_v51, %v2061_v58  ;;  %5649 = vmatprep.mubr.msk.f32.mxu0 %vm1425_vm4, %v9480_v13  ;;  %5681 = vmatprep.mubr.msk.f32.mxu1 %vm1425_vm4, %v9480_v13  ;;  %v2206_v17 = vpop.f32.mrb[73].mxu1  ;;  %v5616_v48 = vld [vmem:[%s11162_s3 + $0x368] sm:$0xff]  ;;  %v2343_v58 = vld [vmem:[%s11162_s3 + $0x58] sm:$0xff] }
 0x237   : > { %v9499_v10 = vmax.f32 %v2269_v24, 0.0  ;;  %v2239_v14 = vmax.f32 %v2094_v45, %v2204_v44  ;;  %2499 = vmatmul.mubr.f32.gmra.mrb[84].mxu0 %v9395_v34  ;;  %2728 = vmatmul.mubr.f32.gmra.mrb[84].mxu1 %v9395_v34  ;;  %v9545_v39 = vpack.c.bf16 %v2341_v27, %v2340_v50  ;;  %v9547_v31 = vpack.c.bf16 %v5616_v48, %v5615_v36  ;;  %v2342_v45 = vld [vmem:[%s11162_s3 + $0x50] sm:$0xff] }
 0x238   : > { %v2290_v22 = vmax.f32 %v2270_v55, 0.0  ;;  %v2240_v56 = vmax.f32 %v2095_v6, %v2206_v17  ;;  %6601 = vmatpush1.bf16.msra.mxu0 %v9465_v4  ;;  %6661 = vmatpush1.bf16.msra.mxu1 %v9467_v29  ;;  %v2065_v5 = vpop.f32.mrb[74].mxu0  ;;  %v11346_v44 = vmax.f32 %v9321_v28, %v9323_v21  ;;  %v5617_v6 = vld [vmem:[%s11162_s3 + $0x370] sm:$0xff]  ;;  %v5618_v17 = vld [vmem:[%s11162_s3 + $0x378] sm:$0xff]  ;;  %v11347_v21 = vmax.f32 %v9325_v59, %v9329_v32 }
 0x239   : > { %2310 = vst [vmem:[#allocation2 + $0xf0] sm:$0xff] %v9499_v10  ;;  %v2271_v34 = vadd.f32 %v9349_v41, %v2239_v14  ;;  %v2096_v26 = vmax.f32 %v11344_v53, %v2065_v5  ;;  %v2067_v54 = vpop.f32.mrb[75].mxu0  ;;  %v2210_v23 = vpop.f32.mrb[74].mxu1  ;;  %v9520_v62 = vld [vmem:[#allocation2 + $0xd8] sm:$0xff]  ;;  %6602 = vmatprep.subr.bf16.mxu0 %v11309_v42  ;;  %6662 = vmatprep.subr.bf16.mxu1 %v11309_v42  ;;  %v2344_v53 = vld [vmem:[%s11162_s3 + $0x60] sm:$0xff] }
 0x23a   : > { %2311 = vst.msk [vmem:[#allocation2 + $0xf8] sm:$0xff] %vm1425_vm4, %v2290_v22  ;;  %v2272_v38 = vadd.f32 %v9352_v12, %v2240_v56  ;;  %v2097_v46 = vmax.f32 %v11345_v0, %v2067_v54  ;;  %5650 = vmatprep.mubr.msk.f32.mxu0 %vm1425_vm4, %v9520_v62  ;;  %5682 = vmatprep.mubr.msk.f32.mxu1 %vm1425_vm4, %v9520_v62  ;;  %v2212_v61 = vpop.f32.mrb[75].mxu1  ;;  %v5619_v0 = vld [vmem:[%s11162_s3 + $0x380] sm:$0xff] }
 0x23b   : > { %v9539_v8 = vmax.f32 %v2271_v34, 0.0  ;;  %v2241_v63 = vmax.f32 %v2096_v26, %v2210_v23  ;;  %2504 = vmatmul.mubr.f32.gmra.mrb[86].mxu0 %v9425_v33  ;;  %2733 = vmatmul.mubr.f32.gmra.mrb[86].mxu1 %v9425_v33  ;;  %v9585_v32 = vpack.c.bf16 %v2343_v58, %v2342_v45  ;;  %v9587_v34 = vpack.c.bf16 %v5618_v17, %v5617_v6  ;;  %v2345_v26 = vld [vmem:[%s11162_s3 + $0x68] sm:$0xff] }
 0x23c   : > { %v2292_v11 = vmax.f32 %v2272_v38, 0.0  ;;  %v2242_v24 = vmax.f32 %v2097_v46, %v2212_v61  ;;  %6604 = vmatpush1.bf16.msra.mxu0 %v9505_v47  ;;  %6664 = vmatpush1.bf16.msra.mxu1 %v9507_v25  ;;  %v2071_v40 = vpop.f32.mrb[76].mxu0  ;;  %v11348_v54 = vmax.f32 %v9333_v18, %v9335_v2  ;;  %v5620_v46 = vld [vmem:[%s11162_s3 + $0x388] sm:$0xff]  ;;  %v11349_v18 = vmax.f32 %v9337_v35, %v9341_v49 }
 0x23d   : > { %2312 = vst [vmem:[#allocation2 + $0x100] sm:$0xff] %v9539_v8  ;;  %v2273_v33 = vadd.f32 %v9349_v41, %v2241_v63  ;;  %v2098_v9 = vmax.f32 %v11346_v44, %v2071_v40  ;;  %v2073_v60 = vpop.f32.mrb[77].mxu0  ;;  %v2216_v55 = vpop.f32.mrb[76].mxu1  ;;  %v9560_v51 = vld [vmem:[#allocation2 + $0xe8] sm:$0xff]  ;;  %6605 = vmatprep.subr.bf16.mxu0 %v11309_v42  ;;  %6665 = vmatprep.subr.bf16.mxu1 %v11309_v42 }
 0x23e   : > { %2313 = vst.msk [vmem:[#allocation2 + $0x108] sm:$0xff] %vm1425_vm4, %v2292_v11  ;;  %v2274_v28 = vadd.f32 %v9352_v12, %v2242_v24  ;;  %v2099_v14 = vmax.f32 %v11347_v21, %v2073_v60  ;;  %5651 = vmatprep.mubr.msk.f32.mxu0 %vm1425_vm4, %v9560_v51  ;;  %5683 = vmatprep.mubr.msk.f32.mxu1 %vm1425_vm4, %v9560_v51  ;;  %v2218_v22 = vpop.f32.mrb[77].mxu1  ;;  %v2321_v49 = vld [vmem:[#allocation2 + $0x8] sm:$0xff]  ;;  %v5621_v60 = vld [vmem:[%s11162_s3 + $0x390] sm:$0xff] }
 0x23f   : > { %v9579_v56 = vmax.f32 %v2273_v33, 0.0  ;;  %v2243_v5 = vmax.f32 %v2098_v9, %v2216_v55  ;;  %2509 = vmatmul.mubr.f32.gmra.mrb[88].mxu0 %v9459_v52  ;;  %2738 = vmatmul.mubr.f32.gmra.mrb[88].mxu1 %v9459_v52  ;;  %v9623_v35 = vpack.c.bf16 %v2345_v26, %v2344_v53  ;;  %v9625_v58 = vpack.c.bf16 %v5620_v46, %v5619_v0  ;;  %v2346_v33 = vld [vmem:[%s11162_s3 + $0x70] sm:$0xff]  ;;  %v2347_v9 = vld [vmem:[%s11162_s3 + $0x78] sm:$0xff]  ;;  %v5717_v0 = vld [vmem:[%s11162_s3 + $0x460] sm:$0xff] }
 0x240   : > { %v2294_v50 = vmax.f32 %v2274_v28, 0.0  ;;  %v2244_v27 = vmax.f32 %v2099_v14, %v2218_v22  ;;  %6607 = vmatpush1.bf16.msra.mxu0 %v9545_v39  ;;  %6667 = vmatpush1.bf16.msra.mxu1 %v9547_v31  ;;  %v2077_v59 = vpop.f32.mrb[78].mxu0  ;;  %v5622_v55 = vld [vmem:[%s11162_s3 + $0x398] sm:$0xff]  ;;  %v9648_v28 = vpack.c.bf16 %v2347_v9, %v2346_v33  ;;  %v2348_v14 = vld [vmem:[%s11162_s3 + $0x80] sm:$0xff]  ;;  %v5625_v26 = vld [vmem:[%s11162_s3 + $0x3b0] sm:$0xff] }
 0x241   : > { %2314 = vst [vmem:[#allocation2 + $0x110] sm:$0xff] %v9579_v56  ;;  %v2275_v52 = vadd.f32 %v9349_v41, %v2243_v5  ;;  %v2100_v23 = vmax.f32 %v11348_v54, %v2077_v59  ;;  %v2079_v36 = vpop.f32.mrb[79].mxu0  ;;  %v2222_v48 = vpop.f32.mrb[78].mxu1  ;;  %v9600_v38 = vld [vmem:[#allocation2 + $0xf8] sm:$0xff]  ;;  %6608 = vmatprep.subr.bf16.mxu0 %v11309_v42  ;;  %6668 = vmatprep.subr.bf16.mxu1 %v11309_v42  ;;  %v5623_v22 = vld [vmem:[%s11162_s3 + $0x3a0] sm:$0xff]  ;;  %v5624_v5 = vld [vmem:[%s11162_s3 + $0x3a8] sm:$0xff] }
 0x242   : > { %2315 = vst.msk [vmem:[#allocation2 + $0x118] sm:$0xff] %vm1425_vm4, %v2294_v50  ;;  %v2276_v2 = vadd.f32 %v9352_v12, %v2244_v27  ;;  %v2101_v61 = vmax.f32 %v11349_v18, %v2079_v36  ;;  %5652 = vmatprep.mubr.msk.f32.mxu0 %vm1425_vm4, %v9600_v38  ;;  %5684 = vmatprep.mubr.msk.f32.mxu1 %vm1425_vm4, %v9600_v38  ;;  %v2224_v63 = vpop.f32.mrb[79].mxu1  ;;  %v2350_v59 = vld [vmem:[%s11162_s3 + $0x90] sm:$0xff]  ;;  %v2351_v53 = vld [vmem:[%s11162_s3 + $0x98] sm:$0xff]  ;;  %v5691_v36 = vld [vmem:[%s11162_s3 + $0x140] sm:$0xff] }
 0x243   : > { %v2295_v11 = vmax.f32 %v2275_v52, 0.0  ;;  %v2245_v24 = vmax.f32 %v2100_v23, %v2222_v48  ;;  %2514 = vmatmul.mubr.f32.gmra.mrb[90].mxu0 %v9499_v10  ;;  %2743 = vmatmul.mubr.f32.gmra.mrb[90].mxu1 %v9499_v10  ;;  %v9650_v21 = vpack.c.bf16 %v5622_v55, %v5621_v60  ;;  %v9671_v27 = vpack.c.bf16 %v5624_v5, %v5623_v22  ;;  %v5626_v52 = vld [vmem:[%s11162_s3 + $0x3b8] sm:$0xff]  ;;  %v5692_v48 = vld [vmem:[%s11162_s3 + $0x148] sm:$0xff]  ;;  %v5695_v9 = vld [vmem:[%s11162_s3 + $0x160] sm:$0xff] }
 0x244   : > { %v2296_v40 = vmax.f32 %v2276_v2, 0.0  ;;  %v2246_v45 = vmax.f32 %v2101_v61, %v2224_v63  ;;  %6610 = vmatpush1.bf16.msra.mxu0 %v9585_v32  ;;  %6670 = vmatpush1.bf16.msra.mxu1 %v9587_v34  ;;  %v9689_v54 = vpack.c.bf16 %v2351_v53, %v2350_v59  ;;  %v9691_v23 = vpack.c.bf16 %v5626_v52, %v5625_v26  ;;  %v5718_v46 = vld [vmem:[%s11162_s3 + $0x468] sm:$0xff]  ;;  %v2320_v2 = vld [vmem:[#allocation2] sm:$0xff]  ;;  %v5693_v63 = vld [vmem:[%s11162_s3 + $0x150] sm:$0xff] }
 0x245   : > { %2316 = vst [vmem:[#allocation2 + $0x120] sm:$0xff] %v2295_v11  ;;  %v2277_v44 = vadd.f32 %v9349_v41, %v2245_v24  ;;  %5653 = vmatprep.mubr.msk.f32.mxu0 %vm1425_vm4, %v2321_v49  ;;  %5685 = vmatprep.mubr.msk.f32.mxu1 %vm1425_vm4, %v2321_v49  ;;  %v9711_v18 = vpack.c.bf16 %v5692_v48, %v5691_v36  ;;  %v5694_v11 = vld [vmem:[%s11162_s3 + $0x158] sm:$0xff]  ;;  %v5719_v24 = vld [vmem:[%s11162_s3 + $0x470] sm:$0xff]  ;;  %v5696_v60 = vld [vmem:[%s11162_s3 + $0x168] sm:$0xff] }
 0x246   : > { %2317 = vst.msk [vmem:[#allocation2 + $0x128] sm:$0xff] %vm1425_vm4, %v2296_v40  ;;  %v2278_v41 = vadd.f32 %v9352_v12, %v2246_v45  ;;  %6611 = vmatprep.subr.bf16.mxu0 %v11309_v42  ;;  %6671 = vmatprep.subr.bf16.mxu1 %v11309_v42  ;;  %v2349_v12 = vld [vmem:[%s11162_s3 + $0x88] sm:$0xff]  ;;  %v9713_v61 = vpack.c.bf16 %v5718_v46, %v5717_v0  ;;  %v5720_v40 = vld [vmem:[%s11162_s3 + $0x478] sm:$0xff]  ;;  %v2322_v49 = vld [vmem:[#allocation2 + $0x10] sm:$0xff] }
 0x247   : > { %v2297_v6 = vmax.f32 %v2277_v44, 0.0  ;;  %v9669_v50 = vpack.c.bf16 %v2349_v12, %v2348_v14  ;;  %v2323_v45 = vld [vmem:[#allocation2 + $0x18] sm:$0xff]  ;;  %v9731_v33 = vpack.c.bf16 %v5694_v11, %v5693_v63  ;;  %v9733_v44 = vpack.c.bf16 %v5720_v40, %v5719_v24  ;;  %v5721_v55 = vld [vmem:[%s11162_s3 + $0x480] sm:$0xff]  ;;  %v5697_v22 = vld [vmem:[%s11162_s3 + $0x170] sm:$0xff] }
 0x248   : > { %v2298_v17 = vmax.f32 %v2278_v41, 0.0  ;;  %6613 = vmatpush1.bf16.msra.mxu0 %v9623_v35  ;;  %6673 = vmatpush1.bf16.msra.mxu1 %v9625_v58  ;;  %v5722_v41 = vld [vmem:[%s11162_s3 + $0x488] sm:$0xff]  ;;  %v9759_v14 = vpack.c.bf16 %v5696_v60, %v5695_v9  ;;  %v5698_v5 = vld [vmem:[%s11162_s3 + $0x178] sm:$0xff]  ;;  %v5723_v59 = vld [vmem:[%s11162_s3 + $0x490] sm:$0xff] }
 0x249   : > { %2318 = vst [vmem:[#allocation2 + $0x130] sm:$0xff] %v2297_v6  ;;  %6614 = vmatprep.subr.bf16.mxu0 %v11309_v42  ;;  %6674 = vmatprep.subr.bf16.mxu1 %v11309_v42  ;;  %v9749_v6 = vld [vmem:[#allocation2 + $0x28] sm:$0xff]  ;;  %v9761_v12 = vpack.c.bf16 %v5722_v41, %v5721_v55  ;;  %v5724_v53 = vld [vmem:[%s11162_s3 + $0x498] sm:$0xff]  ;;  %v9787_v52 = vld [vmem:[#allocation2 + $0x30] sm:$0xff]  ;;  %v9789_v36 = vpack.c.bf16 %v5698_v5, %v5697_v22 }
 0x24a   : > { %2319 = vst.msk [vmem:[#allocation2 + $0x138] sm:$0xff] %vm1425_vm4, %v2298_v17  ;;  %v9757_v17 = vld [vmem:[#allocation2 + $0x20] sm:$0xff]  ;;  %v9779_v26 = vld [vmem:[#allocation2 + $0x38] sm:$0xff]  ;;  %v9791_v48 = vpack.c.bf16 %v5724_v53, %v5723_v59  ;;  %v5700_v46 = vld [vmem:[%s11162_s3 + $0x188] sm:$0xff] }
 0x24b   : > { %v5699_v0 = vld [vmem:[%s11162_s3 + $0x180] sm:$0xff]  ;;  %v5726_v63 = vld [vmem:[%s11162_s3 + $0x4a8] sm:$0xff]  ;;  %v5702_v9 = vld [vmem:[%s11162_s3 + $0x198] sm:$0xff] }
 0x24c   : > { %6616 = vmatpush1.bf16.msra.mxu0 %v9648_v28  ;;  %6676 = vmatpush1.bf16.msra.mxu1 %v9650_v21  ;;  %11350 = vst [vmem:[#allocation19_spill] sm:$0xff] %v9791_v48  ;;  %v9809_v11 = vld [vmem:[#allocation2 + $0x48] sm:$0xff]  ;;  %v9817_v24 = vld [vmem:[#allocation2 + $0x40] sm:$0xff]  ;;  %v9819_v40 = vpack.c.bf16 %v5700_v46, %v5699_v0  ;;  %v5727_v60 = vld [vmem:[%s11162_s3 + $0x4b0] sm:$0xff] }
 0x24d   : > { %6617 = vmatprep.subr.bf16.mxu0 %v11309_v42  ;;  %6677 = vmatprep.subr.bf16.mxu1 %v11309_v42  ;;  %v5728_v55 = vld [vmem:[%s11162_s3 + $0x4b8] sm:$0xff]  ;;  %v9847_v22 = vld [vmem:[#allocation2 + $0x50] sm:$0xff]  ;;  %v5703_v53 = vld [vmem:[%s11162_s3 + $0x1a0] sm:$0xff] }
 0x24e   : > { %11351 = vst [vmem:[#allocation20_spill] sm:$0xff] %v9819_v40  ;;  %v9839_v41 = vld [vmem:[#allocation2 + $0x58] sm:$0xff]  ;;  %v9851_v59 = vpack.c.bf16 %v5728_v55, %v5727_v60  ;;  %v5704_v0 = vld [vmem:[%s11162_s3 + $0x1a8] sm:$0xff]  ;;  %v5729_v46 = vld [vmem:[%s11162_s3 + $0x4c0] sm:$0xff] }
 0x24f   : > { %v5706_v60 = vld [vmem:[%s11162_s3 + $0x1b8] sm:$0xff]  ;;  %v5731_v55 = vld [vmem:[%s11162_s3 + $0x4d0] sm:$0xff] }
 0x250   : > { %6619 = vmatpush1.bf16.msra.mxu0 %v9669_v50  ;;  %6679 = vmatpush1.bf16.msra.mxu1 %v9671_v27  ;;  %11354 = vst [vmem:[#allocation23_spill] sm:$0xff] %v9851_v59 }
 0x251   : > { %6620 = vmatprep.subr.bf16.mxu0 %v11309_v42  ;;  %6680 = vmatprep.subr.bf16.mxu1 %v11309_v42 }
 0x254   : > { %6622 = vmatpush1.bf16.msra.mxu0 %v9689_v54  ;;  %6682 = vmatpush1.bf16.msra.mxu1 %v9691_v23 }
 0x255   : > { %6683 = vmatprep.subr.bf16.mxu0 %v11309_v42  ;;  %6713 = vmatprep.subr.bf16.mxu1 %v11309_v42 }
 0x257   : > { %2602 = vmatmul.mubr.f32.vlgmr.msra.gmra.mrb[80].mxu0 %v2320_v2  ;;  %2813 = vmatmul.mubr.f32.vlgmr.msra.gmra.mrb[80].mxu1 %v2320_v2  ;;  %v5725_v2 = vld [vmem:[%s11162_s3 + $0x4a0] sm:$0xff] }
 0x258   : > { %5654 = vmatprep.mubr.msk.f32.mxu0 %vm1425_vm4, %v2323_v45  ;;  %5686 = vmatprep.mubr.msk.f32.mxu1 %vm1425_vm4, %v2323_v45  ;;  %v9821_v45 = vpack.c.bf16 %v5726_v63, %v5725_v2  ;;  %v5730_v2 = vld [vmem:[%s11162_s3 + $0x4c8] sm:$0xff]  ;;  %v9875_v63 = vpack.c.bf16 %v5704_v0, %v5703_v53  ;;  %v5732_v53 = vld [vmem:[%s11162_s3 + $0x4d8] sm:$0xff] }
 0x259   : > { %6685 = vmatpush1.bf16.msra.mxu0 %v9711_v18  ;;  %6715 = vmatpush1.bf16.msra.mxu1 %v9713_v61 }
 0x25a   : > { %6686 = vmatprep.subr.bf16.mxu0 %v11309_v42  ;;  %6716 = vmatprep.subr.bf16.mxu1 %v11309_v42  ;;  %11352 = vst [vmem:[#allocation21_spill] sm:$0xff] %v9821_v45  ;;  %11355 = vst [vmem:[#allocation24_spill] sm:$0xff] %v9875_v63 }
 0x25b   : > { %2607 = vmatmul.mubr.f32.gmra.mrb[82].mxu0 %v2322_v49  ;;  %2818 = vmatmul.mubr.f32.gmra.mrb[82].mxu1 %v2322_v49  ;;  %v5701_v49 = vld [vmem:[%s11162_s3 + $0x190] sm:$0xff] }
 0x25c   : > { %5655 = vmatprep.mubr.msk.f32.mxu0 %vm1425_vm4, %v9749_v6  ;;  %5687 = vmatprep.mubr.msk.f32.mxu1 %vm1425_vm4, %v9749_v6  ;;  %v9849_v5 = vpack.c.bf16 %v5702_v9, %v5701_v49  ;;  %v9877_v49 = vpack.c.bf16 %v5730_v2, %v5729_v46  ;;  %v5705_v9 = vld [vmem:[%s11162_s3 + $0x1b0] sm:$0xff]  ;;  %v9897_v46 = vpack.c.bf16 %v5732_v53, %v5731_v55  ;;  %v5707_v2 = vld [vmem:[%s11162_s3 + $0x1c0] sm:$0xff] }
 0x25d   : > { %6688 = vmatpush1.bf16.msra.mxu0 %v9731_v33  ;;  %6718 = vmatpush1.bf16.msra.mxu1 %v9733_v44  ;;  %v9895_v0 = vpack.c.bf16 %v5706_v60, %v5705_v9  ;;  %v5734_v9 = vld [vmem:[%s11162_s3 + $0x4e8] sm:$0xff]  ;;  %v5709_v53 = vld [vmem:[%s11162_s3 + $0x1d0] sm:$0xff] }
 0x25e   : > { %6689 = vmatprep.subr.bf16.mxu0 %v11309_v42  ;;  %6719 = vmatprep.subr.bf16.mxu1 %v11309_v42  ;;  %11353 = vst [vmem:[#allocation22_spill] sm:$0xff] %v9849_v5  ;;  %11356 = vst [vmem:[#allocation25_spill] sm:$0xff] %v9877_v49 }
 0x25f   : > { %2612 = vmatmul.mubr.f32.gmra.mrb[84].mxu0 %v9757_v17  ;;  %2823 = vmatmul.mubr.f32.gmra.mrb[84].mxu1 %v9757_v17  ;;  %11357 = vst [vmem:[#allocation26_spill] sm:$0xff] %v9895_v0  ;;  %11358 = vst [vmem:[#allocation27_spill] sm:$0xff] %v9897_v46 }
 0x260   : > { %5656 = vmatprep.mubr.msk.f32.mxu0 %vm1425_vm4, %v9779_v26  ;;  %5688 = vmatprep.mubr.msk.f32.mxu1 %vm1425_vm4, %v9779_v26 }
 0x261   : > { %6691 = vmatpush1.bf16.msra.mxu0 %v9759_v14  ;;  %6721 = vmatpush1.bf16.msra.mxu1 %v9761_v12 }
 0x262   : > { %6692 = vmatprep.subr.bf16.mxu0 %v11309_v42  ;;  %6722 = vmatprep.subr.bf16.mxu1 %v11309_v42 }
 0x263   : > { %2617 = vmatmul.mubr.f32.gmra.mrb[86].mxu0 %v9787_v52  ;;  %2828 = vmatmul.mubr.f32.gmra.mrb[86].mxu1 %v9787_v52 }
 0x264   : > { %5657 = vmatprep.mubr.msk.f32.mxu0 %vm1425_vm4, %v9809_v11  ;;  %5689 = vmatprep.mubr.msk.f32.mxu1 %vm1425_vm4, %v9809_v11 }
 0x265   : > { %6694 = vmatpush1.bf16.msra.mxu0 %v9789_v36  ;;  %6724 = vmatpush1.bf16.msra.mxu1 %v9791_v48  ;;  %v10211_v48 = vld [vmem:[#allocation2 + $0xc0] sm:$0xff] }
 0x266   : > { %6695 = vmatprep.subr.bf16.mxu0 %v11309_v42  ;;  %6725 = vmatprep.subr.bf16.mxu1 %v11309_v42  ;;  %11385 = vst [vmem:[#allocation54_spill] sm:$0xff] %v10211_v48 }
 0x267   : > { %2622 = vmatmul.mubr.f32.gmra.mrb[88].mxu0 %v9817_v24  ;;  %2833 = vmatmul.mubr.f32.gmra.mrb[88].mxu1 %v9817_v24 }
 0x268   : > { %5658 = vmatprep.mubr.msk.f32.mxu0 %vm1425_vm4, %v9839_v41  ;;  %5690 = vmatprep.mubr.msk.f32.mxu1 %vm1425_vm4, %v9839_v41 }
 0x269   : > { %6697 = vmatpush1.bf16.msra.mxu0 %v9819_v40  ;;  %6727 = vmatpush1.bf16.msra.mxu1 %v9821_v45  ;;  %v5755_v40 = vld [vmem:[%s11162_s3 + $0x240] sm:$0xff] }
 0x26a   : > { %6698 = vmatprep.subr.bf16.mxu0 %v11309_v42  ;;  %6728 = vmatprep.subr.bf16.mxu1 %v11309_v42 }
 0x26b   : > { %2627 = vmatmul.mubr.f32.gmra.mrb[90].mxu0 %v9847_v22  ;;  %2838 = vmatmul.mubr.f32.gmra.mrb[90].mxu1 %v9847_v22 }
 0x26c   : > { %5711 = vmatprep.mubr.msk.f32.mxu0 %vm1425_vm4, %v9749_v6  ;;  %5737 = vmatprep.mubr.msk.f32.mxu1 %vm1425_vm4, %v9749_v6 }
 0x26d   : > { %6700 = vmatpush1.bf16.msra.mxu0 %v9849_v5  ;;  %6730 = vmatpush1.bf16.msra.mxu1 %v9851_v59  ;;  %v5708_v59 = vld [vmem:[%s11162_s3 + $0x1c8] sm:$0xff]  ;;  %v5753_v5 = vld [vmem:[%s11162_s3 + $0x230] sm:$0xff] }
 0x26e   : > { %6701 = vmatprep.subr.bf16.mxu0 %v11309_v42  ;;  %6731 = vmatprep.subr.bf16.mxu1 %v11309_v42  ;;  %v9915_v60 = vpack.c.bf16 %v5708_v59, %v5707_v2  ;;  %v5736_v59 = vld [vmem:[%s11162_s3 + $0x4f8] sm:$0xff] }
 0x270   : > { %11359 = vst [vmem:[#allocation28_spill] sm:$0xff] %v9915_v60 }
 0x271   : > { %6703 = vmatpush1.bf16.msra.mxu0 %v9875_v63  ;;  %6733 = vmatpush1.bf16.msra.mxu1 %v9877_v49  ;;  %v5733_v49 = vld [vmem:[%s11162_s3 + $0x4e0] sm:$0xff]  ;;  %v5710_v63 = vld [vmem:[%s11162_s3 + $0x1d8] sm:$0xff] }
 0x272   : > { %6704 = vmatprep.subr.bf16.mxu0 %v11309_v42  ;;  %6734 = vmatprep.subr.bf16.mxu1 %v11309_v42  ;;  %v9917_v55 = vpack.c.bf16 %v5734_v9, %v5733_v49  ;;  %v9935_v49 = vpack.c.bf16 %v5710_v63, %v5709_v53  ;;  %v5743_v9 = vld [vmem:[%s11162_s3 + $0x1e0] sm:$0xff]  ;;  %v5770_v63 = vld [vmem:[%s11162_s3 + $0x508] sm:$0xff] }
 0x274   : > { %11360 = vst [vmem:[#allocation29_spill] sm:$0xff] %v9917_v55  ;;  %11361 = vst [vmem:[#allocation30_spill] sm:$0xff] %v9935_v49 }
 0x275   : > { %6706 = vmatpush1.bf16.msra.mxu0 %v9895_v0  ;;  %6736 = vmatpush1.bf16.msra.mxu1 %v9897_v46  ;;  %v5735_v46 = vld [vmem:[%s11162_s3 + $0x4f0] sm:$0xff]  ;;  %v5744_v0 = vld [vmem:[%s11162_s3 + $0x1e8] sm:$0xff] }
 0x276   : > { %6707 = vmatprep.subr.bf16.mxu0 %v11309_v42  ;;  %6737 = vmatprep.subr.bf16.mxu1 %v11309_v42  ;;  %v9937_v2 = vpack.c.bf16 %v5736_v59, %v5735_v46  ;;  %v9957_v46 = vpack.c.bf16 %v5744_v0, %v5743_v9  ;;  %v5745_v59 = vld [vmem:[%s11162_s3 + $0x1f0] sm:$0xff]  ;;  %v5747_v9 = vld [vmem:[%s11162_s3 + $0x200] sm:$0xff] }
 0x278   : > { %11362 = vst [vmem:[#allocation31_spill] sm:$0xff] %v9937_v2  ;;  %11363 = vst [vmem:[#allocation32_spill] sm:$0xff] %v9957_v46 }
 0x279   : > { %6709 = vmatpush1.bf16.msra.mxu0 %v9915_v60  ;;  %6739 = vmatpush1.bf16.msra.mxu1 %v9917_v55  ;;  %v5769_v55 = vld [vmem:[%s11162_s3 + $0x500] sm:$0xff]  ;;  %v5746_v60 = vld [vmem:[%s11162_s3 + $0x1f8] sm:$0xff] }
 0x27a   : > { %6710 = vmatprep.subr.bf16.mxu0 %v11309_v42  ;;  %6740 = vmatprep.subr.bf16.mxu1 %v11309_v42  ;;  %v9959_v53 = vpack.c.bf16 %v5770_v63, %v5769_v55  ;;  %v9981_v0 = vpack.c.bf16 %v5746_v60, %v5745_v59  ;;  %v5748_v63 = vld [vmem:[%s11162_s3 + $0x208] sm:$0xff]  ;;  %v5749_v59 = vld [vmem:[%s11162_s3 + $0x210] sm:$0xff] }
 0x27b   : > { %v5774_v60 = vld [vmem:[%s11162_s3 + $0x528] sm:$0xff] }
 0x27c   : > { %11364 = vst [vmem:[#allocation33_spill] sm:$0xff] %v9959_v53  ;;  %11365 = vst [vmem:[#allocation34_spill] sm:$0xff] %v9981_v0 }
 0x27d   : > { %6712 = vmatpush1.bf16.msra.mxu0 %v9935_v49  ;;  %6742 = vmatpush1.bf16.msra.mxu1 %v9937_v2  ;;  %v5771_v2 = vld [vmem:[%s11162_s3 + $0x510] sm:$0xff]  ;;  %v5772_v49 = vld [vmem:[%s11162_s3 + $0x518] sm:$0xff] }
 0x27e   : > { %6743 = vmatprep.subr.bf16.mxu0 %v11309_v42  ;;  %6773 = vmatprep.subr.bf16.mxu1 %v11309_v42  ;;  %v9983_v55 = vpack.c.bf16 %v5772_v49, %v5771_v2  ;;  %v10007_v49 = vpack.c.bf16 %v5748_v63, %v5747_v9 }
 0x280   : > { %2960 = vmatmul.mubr.f32.vlgmr.msra.gmra.mrb[80].mxu0 %v9757_v17  ;;  %3082 = vmatmul.mubr.f32.vlgmr.msra.gmra.mrb[80].mxu1 %v9757_v17  ;;  %11366 = vst [vmem:[#allocation35_spill] sm:$0xff] %v9983_v55  ;;  %11367 = vst [vmem:[#allocation36_spill] sm:$0xff] %v10007_v49 }
 0x281   : > { %5712 = vmatprep.mubr.msk.f32.mxu0 %vm1425_vm4, %v9779_v26  ;;  %5738 = vmatprep.mubr.msk.f32.mxu1 %vm1425_vm4, %v9779_v26 }
 0x282   : > { %6745 = vmatpush1.bf16.msra.mxu0 %v9957_v46  ;;  %6775 = vmatpush1.bf16.msra.mxu1 %v9959_v53  ;;  %v5773_v53 = vld [vmem:[%s11162_s3 + $0x520] sm:$0xff]  ;;  %v5750_v46 = vld [vmem:[%s11162_s3 + $0x218] sm:$0xff] }
 0x283   : > { %6746 = vmatprep.subr.bf16.mxu0 %v11309_v42  ;;  %6776 = vmatprep.subr.bf16.mxu1 %v11309_v42  ;;  %v10009_v2 = vpack.c.bf16 %v5774_v60, %v5773_v53  ;;  %v5776_v53 = vld [vmem:[%s11162_s3 + $0x538] sm:$0xff]  ;;  %v10033_v9 = vpack.c.bf16 %v5750_v46, %v5749_v59  ;;  %v5751_v60 = vld [vmem:[%s11162_s3 + $0x220] sm:$0xff]  ;;  %v5778_v46 = vld [vmem:[%s11162_s3 + $0x548] sm:$0xff] }
 0x284   : > { %2965 = vmatmul.mubr.f32.gmra.mrb[82].mxu0 %v9787_v52  ;;  %3087 = vmatmul.mubr.f32.gmra.mrb[82].mxu1 %v9787_v52  ;;  %v10061_v59 = vld [vmem:[#allocation2 + $0x60] sm:$0xff] }
 0x285   : > { %5713 = vmatprep.mubr.msk.f32.mxu0 %vm1425_vm4, %v9809_v11  ;;  %5739 = vmatprep.mubr.msk.f32.mxu1 %vm1425_vm4, %v9809_v11  ;;  %11368 = vst [vmem:[#allocation37_spill] sm:$0xff] %v10009_v2  ;;  %11369 = vst [vmem:[#allocation38_spill] sm:$0xff] %v10033_v9 }
 0x286   : > { %6748 = vmatpush1.bf16.msra.mxu0 %v9981_v0  ;;  %6778 = vmatpush1.bf16.msra.mxu1 %v9983_v55  ;;  %v5775_v55 = vld [vmem:[%s11162_s3 + $0x530] sm:$0xff]  ;;  %v5752_v0 = vld [vmem:[%s11162_s3 + $0x228] sm:$0xff] }
 0x287   : > { %6749 = vmatprep.subr.bf16.mxu0 %v11309_v42  ;;  %6779 = vmatprep.subr.bf16.mxu1 %v11309_v42  ;;  %v10035_v63 = vpack.c.bf16 %v5776_v53, %v5775_v55  ;;  %v10053_v55 = vld [vmem:[#allocation2 + $0x68] sm:$0xff]  ;;  %v10063_v53 = vpack.c.bf16 %v5752_v0, %v5751_v60  ;;  %v5780_v0 = vld [vmem:[%s11162_s3 + $0x558] sm:$0xff]  ;;  %v10091_v60 = vld [vmem:[#allocation2 + $0x70] sm:$0xff] }
 0x288   : > { %2970 = vmatmul.mubr.f32.gmra.mrb[84].mxu0 %v9817_v24  ;;  %3092 = vmatmul.mubr.f32.gmra.mrb[84].mxu1 %v9817_v24 }
 0x289   : > { %5714 = vmatprep.mubr.msk.f32.mxu0 %vm1425_vm4, %v9839_v41  ;;  %5740 = vmatprep.mubr.msk.f32.mxu1 %vm1425_vm4, %v9839_v41  ;;  %11370 = vst [vmem:[#allocation39_spill] sm:$0xff] %v10035_v63  ;;  %11371 = vst [vmem:[#allocation40_spill] sm:$0xff] %v10063_v53 }
 0x28a   : > { %6751 = vmatpush1.bf16.msra.mxu0 %v10007_v49  ;;  %6781 = vmatpush1.bf16.msra.mxu1 %v10009_v2  ;;  %v5777_v2 = vld [vmem:[%s11162_s3 + $0x540] sm:$0xff] }
 0x28b   : > { %6752 = vmatprep.subr.bf16.mxu0 %v11309_v42  ;;  %6782 = vmatprep.subr.bf16.mxu1 %v11309_v42  ;;  %v10065_v49 = vpack.c.bf16 %v5778_v46, %v5777_v2  ;;  %v10083_v2 = vld [vmem:[#allocation2 + $0x78] sm:$0xff] }
 0x28c   : > { %2975 = vmatmul.mubr.f32.gmra.mrb[86].mxu0 %v9847_v22  ;;  %3097 = vmatmul.mubr.f32.gmra.mrb[86].mxu1 %v9847_v22 }
 0x28d   : > { %5715 = vmatprep.mubr.msk.f32.mxu0 %vm1425_vm4, %v10053_v55  ;;  %5741 = vmatprep.mubr.msk.f32.mxu1 %vm1425_vm4, %v10053_v55  ;;  %11372 = vst [vmem:[#allocation41_spill] sm:$0xff] %v10065_v49 }
 0x28e   : > { %6754 = vmatpush1.bf16.msra.mxu0 %v10033_v9  ;;  %6784 = vmatpush1.bf16.msra.mxu1 %v10035_v63  ;;  %v5754_v9 = vld [vmem:[%s11162_s3 + $0x238] sm:$0xff]  ;;  %v5779_v63 = vld [vmem:[%s11162_s3 + $0x550] sm:$0xff] }
 0x28f   : > { %6755 = vmatprep.subr.bf16.mxu0 %v11309_v42  ;;  %6785 = vmatprep.subr.bf16.mxu1 %v11309_v42  ;;  %v10093_v46 = vpack.c.bf16 %v5754_v9, %v5753_v5  ;;  %v10095_v45 = vpack.c.bf16 %v5780_v0, %v5779_v63  ;;  %v5782_v5 = vld [vmem:[%s11162_s3 + $0x568] sm:$0xff]  ;;  %v5757_v0 = vld [vmem:[%s11162_s3 + $0x250] sm:$0xff] }
 0x290   : > { %2980 = vmatmul.mubr.f32.gmra.mrb[88].mxu0 %v10061_v59  ;;  %3102 = vmatmul.mubr.f32.gmra.mrb[88].mxu1 %v10061_v59 }
 0x291   : > { %5716 = vmatprep.mubr.msk.f32.mxu0 %vm1425_vm4, %v10083_v2  ;;  %5742 = vmatprep.mubr.msk.f32.mxu1 %vm1425_vm4, %v10083_v2  ;;  %11373 = vst [vmem:[#allocation42_spill] sm:$0xff] %v10093_v46  ;;  %11374 = vst [vmem:[#allocation43_spill] sm:$0xff] %v10095_v45 }
 0x292   : > { %6757 = vmatpush1.bf16.msra.mxu0 %v10063_v53  ;;  %6787 = vmatpush1.bf16.msra.mxu1 %v10065_v49  ;;  %v5756_v53 = vld [vmem:[%s11162_s3 + $0x248] sm:$0xff]  ;;  %v5781_v49 = vld [vmem:[%s11162_s3 + $0x560] sm:$0xff] }
 0x293   : > { %6758 = vmatprep.subr.bf16.mxu0 %v11309_v42  ;;  %6788 = vmatprep.subr.bf16.mxu1 %v11309_v42  ;;  %v10119_v9 = vpack.c.bf16 %v5756_v53, %v5755_v40  ;;  %v10121_v63 = vpack.c.bf16 %v5782_v5, %v5781_v49  ;;  %v5784_v40 = vld [vmem:[%s11162_s3 + $0x578] sm:$0xff]  ;;  %v5759_v5 = vld [vmem:[%s11162_s3 + $0x260] sm:$0xff] }
 0x294   : > { %2985 = vmatmul.mubr.f32.gmra.mrb[90].mxu0 %v10091_v60  ;;  %3107 = vmatmul.mubr.f32.gmra.mrb[90].mxu1 %v10091_v60 }
 0x295   : > { %5763 = vmatprep.mubr.msk.f32.mxu0 %vm1425_vm4, %v9480_v13  ;;  %5789 = vmatprep.mubr.msk.f32.mxu1 %vm1425_vm4, %v9480_v13  ;;  %11375 = vst [vmem:[#allocation44_spill] sm:$0xff] %v10119_v9  ;;  %11376 = vst [vmem:[#allocation45_spill] sm:$0xff] %v10121_v63  ;;  %v5758_v13 = vld [vmem:[%s11162_s3 + $0x258] sm:$0xff] }
 0x296   : > { %6760 = vmatpush1.bf16.msra.mxu0 %v10093_v46  ;;  %6790 = vmatpush1.bf16.msra.mxu1 %v10095_v45  ;;  %v5783_v45 = vld [vmem:[%s11162_s3 + $0x570] sm:$0xff]  ;;  %v10139_v49 = vpack.c.bf16 %v5758_v13, %v5757_v0  ;;  %v5760_v46 = vld [vmem:[%s11162_s3 + $0x268] sm:$0xff] }
 0x297   : > { %6761 = vmatprep.subr.bf16.mxu0 %v11309_v42  ;;  %6791 = vmatprep.subr.bf16.mxu1 %v11309_v42  ;;  %v10141_v53 = vpack.c.bf16 %v5784_v40, %v5783_v45  ;;  %v5786_v45 = vld [vmem:[%s11162_s3 + $0x588] sm:$0xff]  ;;  %v10159_v0 = vpack.c.bf16 %v5760_v46, %v5759_v5  ;;  %v5761_v40 = vld [vmem:[%s11162_s3 + $0x270] sm:$0xff]  ;;  %v5788_v46 = vld [vmem:[%s11162_s3 + $0x598] sm:$0xff] }
 0x298   : > { %11377 = vst [vmem:[#allocation46_spill] sm:$0xff] %v10139_v49 }
 0x299   : > { %11378 = vst [vmem:[#allocation47_spill] sm:$0xff] %v10141_v53  ;;  %11379 = vst [vmem:[#allocation48_spill] sm:$0xff] %v10159_v0 }
 0x29a   : > { %6763 = vmatpush1.bf16.msra.mxu0 %v10119_v9  ;;  %6793 = vmatpush1.bf16.msra.mxu1 %v10121_v63  ;;  %v5785_v63 = vld [vmem:[%s11162_s3 + $0x580] sm:$0xff]  ;;  %v5762_v9 = vld [vmem:[%s11162_s3 + $0x278] sm:$0xff] }
 0x29b   : > { %6764 = vmatprep.subr.bf16.mxu0 %v11309_v42  ;;  %6794 = vmatprep.subr.bf16.mxu1 %v11309_v42  ;;  %v10161_v13 = vpack.c.bf16 %v5786_v45, %v5785_v63  ;;  %v10179_v63 = vpack.c.bf16 %v5762_v9, %v5761_v40  ;;  %v5795_v45 = vld [vmem:[%s11162_s3 + $0x280] sm:$0xff]  ;;  %v5822_v9 = vld [vmem:[%s11162_s3 + $0x5a8] sm:$0xff] }
 0x29d   : > { %11380 = vst [vmem:[#allocation49_spill] sm:$0xff] %v10161_v13  ;;  %11381 = vst [vmem:[#allocation50_spill] sm:$0xff] %v10179_v63 }
 0x29e   : > { %6766 = vmatpush1.bf16.msra.mxu0 %v10139_v49  ;;  %6796 = vmatpush1.bf16.msra.mxu1 %v10141_v53  ;;  %v5787_v53 = vld [vmem:[%s11162_s3 + $0x590] sm:$0xff]  ;;  %v5796_v49 = vld [vmem:[%s11162_s3 + $0x288] sm:$0xff] }
 0x29f   : > { %6767 = vmatprep.subr.bf16.mxu0 %v11309_v42  ;;  %6797 = vmatprep.subr.bf16.mxu1 %v11309_v42  ;;  %v10181_v5 = vpack.c.bf16 %v5788_v46, %v5787_v53  ;;  %v10201_v53 = vpack.c.bf16 %v5796_v49, %v5795_v45  ;;  %v5797_v46 = vld [vmem:[%s11162_s3 + $0x290] sm:$0xff]  ;;  %v5824_v49 = vld [vmem:[%s11162_s3 + $0x5b8] sm:$0xff] }
 0x2a1   : > { %11382 = vst [vmem:[#allocation51_spill] sm:$0xff] %v10181_v5  ;;  %11383 = vst [vmem:[#allocation52_spill] sm:$0xff] %v10201_v53 }
 0x2a2   : > { %6769 = vmatpush1.bf16.msra.mxu0 %v10159_v0  ;;  %6799 = vmatpush1.bf16.msra.mxu1 %v10161_v13  ;;  %v5821_v13 = vld [vmem:[%s11162_s3 + $0x5a0] sm:$0xff]  ;;  %v5798_v0 = vld [vmem:[%s11162_s3 + $0x298] sm:$0xff] }
 0x2a3   : > { %6770 = vmatprep.subr.bf16.mxu0 %v11309_v42  ;;  %6800 = vmatprep.subr.bf16.mxu1 %v11309_v42  ;;  %v10203_v40 = vpack.c.bf16 %v5822_v9, %v5821_v13  ;;  %v10227_v13 = vpack.c.bf16 %v5798_v0, %v5797_v46  ;;  %v5799_v9 = vld [vmem:[%s11162_s3 + $0x2a0] sm:$0xff]  ;;  %v5826_v0 = vld [vmem:[%s11162_s3 + $0x5c8] sm:$0xff] }
 0x2a5   : > { %11384 = vst [vmem:[#allocation53_spill] sm:$0xff] %v10203_v40 }
 0x2a6   : > { %6772 = vmatpush1.bf16.msra.mxu0 %v10179_v63  ;;  %6802 = vmatpush1.bf16.msra.mxu1 %v10181_v5  ;;  %v5823_v5 = vld [vmem:[%s11162_s3 + $0x5b0] sm:$0xff]  ;;  %v5800_v63 = vld [vmem:[%s11162_s3 + $0x2a8] sm:$0xff] }
 0x2a7   : > { %6803 = vmatprep.subr.bf16.mxu0 %v11309_v42  ;;  %6833 = vmatprep.subr.bf16.mxu1 %v11309_v42  ;;  %v10229_v45 = vpack.c.bf16 %v5824_v49, %v5823_v5  ;;  %v10255_v5 = vpack.c.bf16 %v5800_v63, %v5799_v9  ;;  %v5801_v49 = vld [vmem:[%s11162_s3 + $0x2b0] sm:$0xff]  ;;  %v5828_v63 = vld [vmem:[%s11162_s3 + $0x5d8] sm:$0xff] }
 0x2a9   : > { %3235 = vmatmul.mubr.f32.vlgmr.msra.gmra.mrb[80].mxu0 %v10211_v48  ;;  %3357 = vmatmul.mubr.f32.vlgmr.msra.gmra.mrb[80].mxu1 %v10211_v48  ;;  %v10237_v48 = vld [vmem:[#allocation2 + $0xd0] sm:$0xff]  ;;  %11386 = vst [vmem:[#allocation55_spill] sm:$0xff] %v10255_v5 }
 0x2aa   : > { %5764 = vmatprep.mubr.msk.f32.mxu0 %vm1425_vm4, %v9520_v62  ;;  %5790 = vmatprep.mubr.msk.f32.mxu1 %vm1425_vm4, %v9520_v62  ;;  %v5825_v62 = vld [vmem:[%s11162_s3 + $0x5c0] sm:$0xff] }
 0x2ab   : > { %6805 = vmatpush1.bf16.msra.mxu0 %v10201_v53  ;;  %6835 = vmatpush1.bf16.msra.mxu1 %v10203_v40  ;;  %v10257_v46 = vpack.c.bf16 %v5826_v0, %v5825_v62  ;;  %v5802_v40 = vld [vmem:[%s11162_s3 + $0x2b8] sm:$0xff]  ;;  %v10265_v53 = vld [vmem:[#allocation2 + $0xe0] sm:$0xff] }
 0x2ac   : > { %6806 = vmatprep.subr.bf16.mxu0 %v11309_v42  ;;  %6836 = vmatprep.subr.bf16.mxu1 %v11309_v42  ;;  %v10283_v9 = vpack.c.bf16 %v5802_v40, %v5801_v49  ;;  %v5803_v0 = vld [vmem:[%s11162_s3 + $0x2c0] sm:$0xff]  ;;  %v5830_v40 = vld [vmem:[%s11162_s3 + $0x5e8] sm:$0xff] }
 0x2ad   : > { %3240 = vmatmul.mubr.f32.gmra.mrb[82].mxu0 %v10237_v48  ;;  %3362 = vmatmul.mubr.f32.gmra.mrb[82].mxu1 %v10237_v48  ;;  %11387 = vst [vmem:[#allocation56_spill] sm:$0xff] %v10257_v46  ;;  %v10303_v49 = vld [vmem:[#allocation2 + $0x108] sm:$0xff] }
 0x2ae   : > { %5765 = vmatprep.mubr.msk.f32.mxu0 %vm1425_vm4, %v9560_v51  ;;  %5791 = vmatprep.mubr.msk.f32.mxu1 %vm1425_vm4, %v9560_v51  ;;  %v5827_v51 = vld [vmem:[%s11162_s3 + $0x5d0] sm:$0xff]  ;;  %11388 = vst [vmem:[#allocation57_spill] sm:$0xff] %v10283_v9 }
 0x2af   : > { %6808 = vmatpush1.bf16.msra.mxu0 %v10227_v13  ;;  %6838 = vmatpush1.bf16.msra.mxu1 %v10229_v45  ;;  %v10285_v62 = vpack.c.bf16 %v5828_v63, %v5827_v51 }
 0x2b0   : > { %6809 = vmatprep.subr.bf16.mxu0 %v11309_v42  ;;  %6839 = vmatprep.subr.bf16.mxu1 %v11309_v42 }
 0x2b1   : > { %3245 = vmatmul.mubr.f32.gmra.mrb[84].mxu0 %v10265_v53  ;;  %3367 = vmatmul.mubr.f32.gmra.mrb[84].mxu1 %v10265_v53  ;;  %11389 = vst [vmem:[#allocation58_spill] sm:$0xff] %v10285_v62 }
 0x2b2   : > { %5766 = vmatprep.mubr.msk.f32.mxu0 %vm1425_vm4, %v9600_v38  ;;  %5792 = vmatprep.mubr.msk.f32.mxu1 %vm1425_vm4, %v9600_v38  ;;  %v5804_v38 = vld [vmem:[%s11162_s3 + $0x2c8] sm:$0xff] }
 0x2b3   : > { %6811 = vmatpush1.bf16.msra.mxu0 %v10255_v5  ;;  %6841 = vmatpush1.bf16.msra.mxu1 %v10257_v46  ;;  %v5829_v46 = vld [vmem:[%s11162_s3 + $0x5e0] sm:$0xff]  ;;  %v10311_v51 = vpack.c.bf16 %v5804_v38, %v5803_v0  ;;  %v5806_v5 = vld [vmem:[%s11162_s3 + $0x2d8] sm:$0xff] }
 0x2b4   : > { %6812 = vmatprep.subr.bf16.mxu0 %v11309_v42  ;;  %6842 = vmatprep.subr.bf16.mxu1 %v11309_v42  ;;  %v10313_v63 = vpack.c.bf16 %v5830_v40, %v5829_v46  ;;  %v5832_v46 = vld [vmem:[%s11162_s3 + $0x5f8] sm:$0xff] }
 0x2b5   : > { %3250 = vmatmul.mubr.f32.gmra.mrb[86].mxu0 %v9499_v10  ;;  %3372 = vmatmul.mubr.f32.gmra.mrb[86].mxu1 %v9499_v10  ;;  %v5805_v10 = vld [vmem:[%s11162_s3 + $0x2d0] sm:$0xff]  ;;  %v10331_v0 = vld [vmem:[#allocation2 + $0x118] sm:$0xff] }
 0x2b6   : > { %5767 = vmatprep.mubr.msk.f32.mxu0 %vm1425_vm4, %v10303_v49  ;;  %5793 = vmatprep.mubr.msk.f32.mxu1 %vm1425_vm4, %v10303_v49  ;;  %11390 = vst [vmem:[#allocation59_spill] sm:$0xff] %v10313_v63  ;;  %v10339_v38 = vpack.c.bf16 %v5806_v5, %v5805_v10  ;;  %v5834_v5 = vld [vmem:[%s11162_s3 + $0x608] sm:$0xff] }
 0x2b7   : > { %6814 = vmatpush1.bf16.msra.mxu0 %v10283_v9  ;;  %6844 = vmatpush1.bf16.msra.mxu1 %v10285_v62  ;;  %v5831_v62 = vld [vmem:[%s11162_s3 + $0x5f0] sm:$0xff]  ;;  %v5808_v9 = vld [vmem:[%s11162_s3 + $0x2e8] sm:$0xff] }
 0x2b8   : > { %6815 = vmatprep.subr.bf16.mxu0 %v11309_v42  ;;  %6845 = vmatprep.subr.bf16.mxu1 %v11309_v42  ;;  %11391 = vst [vmem:[#allocation60_spill] sm:$0xff] %v10339_v38  ;;  %v10341_v40 = vpack.c.bf16 %v5832_v46, %v5831_v62  ;;  %v5809_v46 = vld [vmem:[%s11162_s3 + $0x2f0] sm:$0xff] }
 0x2b9   : > { %3255 = vmatmul.mubr.f32.gmra.mrb[88].mxu0 %v9539_v8  ;;  %3377 = vmatmul.mubr.f32.gmra.mrb[88].mxu1 %v9539_v8  ;;  %v5807_v8 = vld [vmem:[%s11162_s3 + $0x2e0] sm:$0xff] }
 0x2ba   : > { %5768 = vmatprep.mubr.msk.f32.mxu0 %vm1425_vm4, %v10331_v0  ;;  %5794 = vmatprep.mubr.msk.f32.mxu1 %vm1425_vm4, %v10331_v0  ;;  %11392 = vst [vmem:[#allocation61_spill] sm:$0xff] %v10341_v40  ;;  %v10365_v62 = vpack.c.bf16 %v5808_v9, %v5807_v8  ;;  %v5836_v9 = vld [vmem:[%s11162_s3 + $0x618] sm:$0xff] }
 0x2bb   : > { %6817 = vmatpush1.bf16.msra.mxu0 %v10311_v51  ;;  %6847 = vmatpush1.bf16.msra.mxu1 %v10313_v63  ;;  %v5833_v63 = vld [vmem:[%s11162_s3 + $0x600] sm:$0xff] }
 0x2bc   : > { %6818 = vmatprep.subr.bf16.mxu0 %v11309_v42  ;;  %6848 = vmatprep.subr.bf16.mxu1 %v11309_v42  ;;  %11393 = vst [vmem:[#allocation62_spill] sm:$0xff] %v10365_v62  ;;  %v10367_v10 = vpack.c.bf16 %v5834_v5, %v5833_v63  ;;  %v5811_v5 = vld [vmem:[%s11162_s3 + $0x300] sm:$0xff] }
 0x2bd   : > { %3260 = vmatmul.mubr.f32.gmra.mrb[90].mxu0 %v9579_v56  ;;  %3382 = vmatmul.mubr.f32.gmra.mrb[90].mxu1 %v9579_v56  ;;  %v5810_v56 = vld [vmem:[%s11162_s3 + $0x2f8] sm:$0xff] }
 0x2be   : > { %5815 = vmatprep.mubr.msk.f32.mxu0 %vm1425_vm4, %v9809_v11  ;;  %5841 = vmatprep.mubr.msk.f32.mxu1 %vm1425_vm4, %v9809_v11  ;;  %11394 = vst [vmem:[#allocation63_spill] sm:$0xff] %v10367_v10  ;;  %v10385_v63 = vpack.c.bf16 %v5810_v56, %v5809_v46 }
 0x2bf   : > { %6820 = vmatpush1.bf16.msra.mxu0 %v10339_v38  ;;  %6850 = vmatpush1.bf16.msra.mxu1 %v10341_v40  ;;  %v5835_v40 = vld [vmem:[%s11162_s3 + $0x610] sm:$0xff]  ;;  %v5812_v38 = vld [vmem:[%s11162_s3 + $0x308] sm:$0xff] }
 0x2c0   : > { %6821 = vmatprep.subr.bf16.mxu0 %v11309_v42  ;;  %6851 = vmatprep.subr.bf16.mxu1 %v11309_v42  ;;  %v10387_v8 = vpack.c.bf16 %v5836_v9, %v5835_v40  ;;  %v5838_v40 = vld [vmem:[%s11162_s3 + $0x628] sm:$0xff]  ;;  %v10405_v46 = vpack.c.bf16 %v5812_v38, %v5811_v5  ;;  %v5813_v9 = vld [vmem:[%s11162_s3 + $0x310] sm:$0xff]  ;;  %v5840_v38 = vld [vmem:[%s11162_s3 + $0x638] sm:$0xff] }
 0x2c2   : > { %11395 = vst [vmem:[#allocation64_spill] sm:$0xff] %v10387_v8 }
 0x2c3   : > { %6823 = vmatpush1.bf16.msra.mxu0 %v10365_v62  ;;  %6853 = vmatpush1.bf16.msra.mxu1 %v10367_v10  ;;  %v5837_v10 = vld [vmem:[%s11162_s3 + $0x620] sm:$0xff]  ;;  %v5814_v62 = vld [vmem:[%s11162_s3 + $0x318] sm:$0xff] }
 0x2c4   : > { %6824 = vmatprep.subr.bf16.mxu0 %v11309_v42  ;;  %6854 = vmatprep.subr.bf16.mxu1 %v11309_v42  ;;  %v10407_v56 = vpack.c.bf16 %v5838_v40, %v5837_v10  ;;  %v10425_v10 = vpack.c.bf16 %v5814_v62, %v5813_v9  ;;  %v11399_v62 = vld [vmem:[#allocation4_spill] sm:$0xff]  ;;  %v11400_v40 = vld [vmem:[#allocation15_spill] sm:$0xff] }
 0x2c5   : > { %v11401_v9 = vld [vmem:[#allocation16_spill] sm:$0xff] }
 0x2c7   : > { %6826 = vmatpush1.bf16.msra.mxu0 %v10385_v63  ;;  %6856 = vmatpush1.bf16.msra.mxu1 %v10387_v8  ;;  %v5839_v8 = vld [vmem:[%s11162_s3 + $0x630] sm:$0xff] }
 0x2c8   : > { %6827 = vmatprep.subr.bf16.mxu0 %v11309_v42  ;;  %6857 = vmatprep.subr.bf16.mxu1 %v11309_v42  ;;  %v10427_v5 = vpack.c.bf16 %v5840_v38, %v5839_v8  ;;  %v10489_v8 = vld [vmem:[#allocation2 + $0x90] sm:$0xff]  ;;  %v11402_v38 = vld [vmem:[#allocation8_spill] sm:$0xff] }
 0x2cb   : > { %6829 = vmatpush1.bf16.msra.mxu0 %v10405_v46  ;;  %6859 = vmatpush1.bf16.msra.mxu1 %v10407_v56 }
 0x2cc   : > { %6830 = vmatprep.subr.bf16.mxu0 %v11309_v42  ;;  %6860 = vmatprep.subr.bf16.mxu1 %v11309_v42 }
 0x2cf   : > { %6832 = vmatpush1.bf16.msra.mxu0 %v10425_v10  ;;  %6862 = vmatpush1.bf16.msra.mxu1 %v10427_v5 }
 0x2d0   : > { %6863 = vmatprep.subr.bf16.mxu0 %v11309_v42  ;;  %6923 = vmatprep.subr.bf16.mxu1 %v11309_v42 }
 0x2d2   : > { %3510 = vmatmul.mubr.f32.vlgmr.msra.gmra.mrb[80].mxu0 %v9817_v24  ;;  %3632 = vmatmul.mubr.f32.vlgmr.msra.gmra.mrb[80].mxu1 %v9817_v24 }
 0x2d3   : > { %5816 = vmatprep.mubr.msk.f32.mxu0 %vm1425_vm4, %v9839_v41  ;;  %5842 = vmatprep.mubr.msk.f32.mxu1 %vm1425_vm4, %v9839_v41 }
 0x2d4   : > { %6865 = vmatpush1.bf16.msra.mxu0 %v8886_v15  ;;  %6925 = vmatpush1.bf16.msra.mxu1 %v8893_v30  ;;  %v10467_v15 = vld [vmem:[#allocation2 + $0x88] sm:$0xff] }
 0x2d5   : > { %6866 = vmatprep.subr.bf16.mxu0 %v11309_v42  ;;  %6926 = vmatprep.subr.bf16.mxu1 %v11309_v42  ;;  %v11396_v30 = vld [vmem:[#allocation5_spill] sm:$0xff] }
 0x2d6   : > { %3515 = vmatmul.mubr.f32.gmra.mrb[82].mxu0 %v9847_v22  ;;  %3637 = vmatmul.mubr.f32.gmra.mrb[82].mxu1 %v9847_v22 }
 0x2d7   : > { %5817 = vmatprep.mubr.msk.f32.mxu0 %vm1425_vm4, %v10053_v55  ;;  %5843 = vmatprep.mubr.msk.f32.mxu1 %vm1425_vm4, %v10053_v55 }
 0x2d8   : > { %6868 = vmatpush1.bf16.msra.mxu0 %v8918_v1  ;;  %6928 = vmatpush1.bf16.msra.mxu1 %v8925_v20  ;;  %v11397_v1 = vld [vmem:[#allocation6_spill] sm:$0xff]  ;;  %v10475_v20 = vld [vmem:[#allocation2 + $0x80] sm:$0xff] }
 0x2d9   : > { %6869 = vmatprep.subr.bf16.mxu0 %v11309_v42  ;;  %6929 = vmatprep.subr.bf16.mxu1 %v11309_v42 }
 0x2da   : > { %3520 = vmatmul.mubr.f32.gmra.mrb[84].mxu0 %v10061_v59  ;;  %3642 = vmatmul.mubr.f32.gmra.mrb[84].mxu1 %v10061_v59 }
 0x2db   : > { %5818 = vmatprep.mubr.msk.f32.mxu0 %vm1425_vm4, %v10083_v2  ;;  %5844 = vmatprep.mubr.msk.f32.mxu1 %vm1425_vm4, %v10083_v2 }
 0x2dc   : > { %6871 = vmatpush1.bf16.msra.mxu0 %v8950_v3  ;;  %6931 = vmatpush1.bf16.msra.mxu1 %v8957_v16  ;;  %v10481_v3 = vld [vmem:[#allocation2 + $0x98] sm:$0xff] }
 0x2dd   : > { %6872 = vmatprep.subr.bf16.mxu0 %v11309_v42  ;;  %6932 = vmatprep.subr.bf16.mxu1 %v11309_v42  ;;  %v11398_v16 = vld [vmem:[#allocation7_spill] sm:$0xff] }
 0x2de   : > { %3525 = vmatmul.mubr.f32.gmra.mrb[86].mxu0 %v10091_v60  ;;  %3647 = vmatmul.mubr.f32.gmra.mrb[86].mxu1 %v10091_v60 }
 0x2df   : > { %5819 = vmatprep.mubr.msk.f32.mxu0 %vm1425_vm4, %v10467_v15  ;;  %5845 = vmatprep.mubr.msk.f32.mxu1 %vm1425_vm4, %v10467_v15 }
 0x2e0   : > { %6874 = vmatpush1.bf16.msra.mxu0 %v11396_v30  ;;  %6934 = vmatpush1.bf16.msra.mxu1 %v11397_v1  ;;  %v11403_v30 = vld [vmem:[#allocation9_spill] sm:$0xff]  ;;  %v11404_v1 = vld [vmem:[#allocation10_spill] sm:$0xff] }
 0x2e1   : > { %6875 = vmatprep.subr.bf16.mxu0 %v11309_v42  ;;  %6935 = vmatprep.subr.bf16.mxu1 %v11309_v42 }
 0x2e2   : > { %3530 = vmatmul.mubr.f32.gmra.mrb[88].mxu0 %v10475_v20  ;;  %3652 = vmatmul.mubr.f32.gmra.mrb[88].mxu1 %v10475_v20 }
 0x2e3   : > { %5820 = vmatprep.mubr.msk.f32.mxu0 %vm1425_vm4, %v10481_v3  ;;  %5846 = vmatprep.mubr.msk.f32.mxu1 %vm1425_vm4, %v10481_v3 }
 0x2e4   : > { %6877 = vmatpush1.bf16.msra.mxu0 %v11398_v16  ;;  %6937 = vmatpush1.bf16.msra.mxu1 %v11399_v62  ;;  %v11406_v16 = vld [vmem:[#allocation12_spill] sm:$0xff]  ;;  %v11407_v62 = vld [vmem:[#allocation13_spill] sm:$0xff] }
 0x2e5   : > { %6878 = vmatprep.subr.bf16.mxu0 %v11309_v42  ;;  %6938 = vmatprep.subr.bf16.mxu1 %v11309_v42 }
 0x2e6   : > { %3535 = vmatmul.mubr.f32.gmra.mrb[90].mxu0 %v10489_v8  ;;  %3657 = vmatmul.mubr.f32.gmra.mrb[90].mxu1 %v10489_v8 }
 0x2e7   : > { %5847 = vmatprep.mubr.msk.f32.mxu0 %vm1425_vm4, %v9749_v6  ;;  %5859 = vmatprep.mubr.msk.f32.mxu1 %vm1425_vm4, %v9749_v6  ;;  %v11405_v6 = vld [vmem:[#allocation11_spill] sm:$0xff] }
 0x2e8   : > { %6880 = vmatpush1.bf16.msra.mxu0 %v11400_v40  ;;  %6940 = vmatpush1.bf16.msra.mxu1 %v11401_v9  ;;  %v11408_v40 = vld [vmem:[#allocation14_spill] sm:$0xff]  ;;  %v11432_v9 = vld [vmem:[#allocation41_spill] sm:$0xff] }
 0x2e9   : > { %6881 = vmatprep.subr.bf16.mxu0 %v11309_v42  ;;  %6941 = vmatprep.subr.bf16.mxu1 %v11309_v42 }
 0x2ec   : > { %6883 = vmatpush1.bf16.msra.mxu0 %v11402_v38  ;;  %6943 = vmatpush1.bf16.msra.mxu1 %v11403_v30  ;;  %v7505_v38 = vld [vmem:[#allocation2 + $0x110] sm:$0xff]  ;;  %v7506_v30 = vld [vmem:[#allocation2 + $0x48] sm:$0xff] }
 0x2ed   : > { %6884 = vmatprep.subr.bf16.mxu0 %v11309_v42  ;;  %6944 = vmatprep.subr.bf16.mxu1 %v11309_v42 }
 0x2f0   : > { %6886 = vmatpush1.bf16.msra.mxu0 %v9101_v43  ;;  %6946 = vmatpush1.bf16.msra.mxu1 %v11404_v1  ;;  %v7492_v43 = vld [vmem:[#allocation2 + $0xa8] sm:$0xff]  ;;  %v11433_v1 = vld [vmem:[#allocation42_spill] sm:$0xff] }
 0x2f1   : > { %6887 = vmatprep.subr.bf16.mxu0 %v11309_v42  ;;  %6947 = vmatprep.subr.bf16.mxu1 %v11309_v42 }
 0x2f4   : > { %6889 = vmatpush1.bf16.msra.mxu0 %v11405_v6  ;;  %6949 = vmatpush1.bf16.msra.mxu1 %v11406_v16  ;;  %v11434_v6 = vld [vmem:[#allocation43_spill] sm:$0xff]  ;;  %v11435_v16 = vld [vmem:[#allocation44_spill] sm:$0xff] }
 0x2f5   : > { %6890 = vmatprep.subr.bf16.mxu0 %v11309_v42  ;;  %6950 = vmatprep.subr.bf16.mxu1 %v11309_v42 }
 0x2f8   : > { %6892 = vmatpush1.bf16.msra.mxu0 %v11407_v62  ;;  %6952 = vmatpush1.bf16.msra.mxu1 %v11408_v40  ;;  %v11436_v62 = vld [vmem:[#allocation45_spill] sm:$0xff]  ;;  %v11437_v40 = vld [vmem:[#allocation46_spill] sm:$0xff] }
 0x2f9   : > { %6893 = vmatprep.subr.bf16.mxu0 %v11309_v42  ;;  %6953 = vmatprep.subr.bf16.mxu1 %v11309_v42 }
 0x2fb   : > { %3739 = vmatmul.mubr.f32.vlgmr.msra.gmra.mrb[92].mxu0 %v9757_v17  ;;  %3929 = vmatmul.mubr.f32.vlgmr.msra.gmra.mrb[92].mxu1 %v9757_v17  ;;  %v11422_v17 = vld [vmem:[#allocation54_spill] sm:$0xff] }
 0x2fc   : > { %5848 = vmatprep.mubr.msk.f32.mxu0 %vm1425_vm4, %v9779_v26  ;;  %6895 = vmatpush1.bf16.msra.mxu0 %v9397_v19  ;;  %v7493_v19 = vld [vmem:[#allocation2 + $0xa0] sm:$0xff] }
 0x2fd   : > { %5860 = vmatprep.mubr.msk.f32.mxu1 %vm1425_vm4, %v9779_v26  ;;  %6955 = vmatpush1.bf16.msra.mxu1 %v9399_v37  ;;  %v7494_v37 = vld [vmem:[#allocation2 + $0xb8] sm:$0xff]  ;;  %v11425_v26 = vld [vmem:[#allocation34_spill] sm:$0xff] }
 0x2fe   : > { %6896 = vmatprep.subr.bf16.mxu0 %v11309_v42  ;;  %6956 = vmatprep.subr.bf16.mxu1 %v11309_v42 }
 0x2ff   : > { %3744 = vmatmul.mubr.f32.gmra.mrb[94].mxu0 %v9787_v52  ;;  %3934 = vmatmul.mubr.f32.gmra.mrb[94].mxu1 %v9787_v52  ;;  %v11426_v52 = vld [vmem:[#allocation35_spill] sm:$0xff] }
 0x300   : > { %5849 = vmatprep.mubr.msk.f32.mxu0 %vm1425_vm4, %v9809_v11  ;;  %6898 = vmatpush1.bf16.msra.mxu0 %v9429_v7  ;;  %v7495_v7 = vld [vmem:[#allocation2 + $0xb0] sm:$0xff] }
 0x301   : > { %5861 = vmatprep.mubr.msk.f32.mxu1 %vm1425_vm4, %v9809_v11  ;;  %6958 = vmatpush1.bf16.msra.mxu1 %v9431_v57  ;;  %v7496_v57 = vld [vmem:[#allocation2 + $0xc8] sm:$0xff]  ;;  %v11429_v11 = vld [vmem:[#allocation38_spill] sm:$0xff] }
 0x302   : > { %6899 = vmatprep.subr.bf16.mxu0 %v11309_v42  ;;  %6959 = vmatprep.subr.bf16.mxu1 %v11309_v42 }
 0x303   : > { %3749 = vmatmul.mubr.f32.gmra.mrb[96].mxu0 %v9817_v24  ;;  %3939 = vmatmul.mubr.f32.gmra.mrb[96].mxu1 %v9817_v24  ;;  %v11430_v24 = vld [vmem:[#allocation39_spill] sm:$0xff] }
 0x304   : > { %5850 = vmatprep.mubr.msk.f32.mxu0 %vm1425_vm4, %v9839_v41  ;;  %6901 = vmatpush1.bf16.msra.mxu0 %v9465_v4  ;;  %v7497_v4 = vld [vmem:[#allocation2 + $0xc0] sm:$0xff] }
 0x305   : > { %5862 = vmatprep.mubr.msk.f32.mxu1 %vm1425_vm4, %v9839_v41  ;;  %6961 = vmatpush1.bf16.msra.mxu1 %v9467_v29  ;;  %v7498_v29 = vld [vmem:[#allocation2 + $0xd8] sm:$0xff]  ;;  %v7504_v41 = vld [vmem:[#allocation2 + $0x100] sm:$0xff] }
 0x306   : > { %6902 = vmatprep.subr.bf16.mxu0 %v11309_v42  ;;  %6962 = vmatprep.subr.bf16.mxu1 %v11309_v42 }
 0x307   : > { %3754 = vmatmul.mubr.f32.gmra.mrb[98].mxu0 %v9847_v22  ;;  %3944 = vmatmul.mubr.f32.gmra.mrb[98].mxu1 %v9847_v22  ;;  %v11431_v22 = vld [vmem:[#allocation40_spill] sm:$0xff] }
 0x308   : > { %5851 = vmatprep.mubr.msk.f32.mxu0 %vm1425_vm4, %v10053_v55  ;;  %6904 = vmatpush1.bf16.msra.mxu0 %v9505_v47  ;;  %v7499_v47 = vld [vmem:[#allocation2 + $0xd0] sm:$0xff] }
 0x309   : > { %5863 = vmatprep.mubr.msk.f32.mxu1 %vm1425_vm4, %v10053_v55  ;;  %6964 = vmatpush1.bf16.msra.mxu1 %v9507_v25  ;;  %v7500_v25 = vld [vmem:[#allocation2 + $0xe8] sm:$0xff] }
 0x30a   : > { %6905 = vmatprep.subr.bf16.mxu0 %v11309_v42  ;;  %6965 = vmatprep.subr.bf16.mxu1 %v11309_v42 }
 0x30b   : > { %3759 = vmatmul.mubr.f32.gmra.mrb[100].mxu0 %v10061_v59  ;;  %3949 = vmatmul.mubr.f32.gmra.mrb[100].mxu1 %v10061_v59 }
 0x30c   : > { %5852 = vmatprep.mubr.msk.f32.mxu0 %vm1425_vm4, %v10083_v2  ;;  %6907 = vmatpush1.bf16.msra.mxu0 %v9545_v39  ;;  %v11409_v39 = vld [vmem:[#allocation19_spill] sm:$0xff] }
 0x30d   : > { %5864 = vmatprep.mubr.msk.f32.mxu1 %vm1425_vm4, %v10083_v2  ;;  %6967 = vmatpush1.bf16.msra.mxu1 %v9547_v31  ;;  %v7501_v31 = vld [vmem:[#allocation2 + $0xe0] sm:$0xff] }
 0x30e   : > { %6908 = vmatprep.subr.bf16.mxu0 %v11309_v42  ;;  %6968 = vmatprep.subr.bf16.mxu1 %v11309_v42 }
 0x30f   : > { %3764 = vmatmul.mubr.f32.gmra.mrb[102].mxu0 %v10091_v60  ;;  %3954 = vmatmul.mubr.f32.gmra.mrb[102].mxu1 %v10091_v60 }
 0x310   : > { %6910 = vmatpush1.bf16.msra.mxu0 %v9585_v32  ;;  %5853 = vmatprep.mubr.msk.f32.mxu0 %vm1425_vm4, %v7492_v43  ;;  %v7502_v32 = vld [vmem:[#allocation2 + $0xf8] sm:$0xff] }
 0x311   : > { %6970 = vmatpush1.bf16.msra.mxu1 %v9587_v34  ;;  %5865 = vmatprep.mubr.msk.f32.mxu1 %vm1425_vm4, %v7492_v43  ;;  %v11410_v34 = vld [vmem:[#allocation20_spill] sm:$0xff]  ;;  %v11438_v43 = vld [vmem:[#allocation47_spill] sm:$0xff] }
 0x312   : > { %6911 = vmatprep.subr.bf16.mxu0 %v11309_v42  ;;  %6971 = vmatprep.subr.bf16.mxu1 %v11309_v42 }
 0x314   : > { %6913 = vmatpush1.bf16.msra.mxu0 %v9623_v35  ;;  %v11411_v35 = vld [vmem:[#allocation21_spill] sm:$0xff] }
 0x315   : > { %6973 = vmatpush1.bf16.msra.mxu1 %v9625_v58  ;;  %6914 = vmatprep.subr.bf16.mxu0 %v11309_v42  ;;  %v7503_v58 = vld [vmem:[#allocation2 + $0xf0] sm:$0xff] }
 0x316   : > { %6974 = vmatprep.subr.bf16.mxu1 %v11309_v42 }
 0x318   : > { %6916 = vmatpush1.bf16.msra.mxu0 %v9648_v28  ;;  %v11412_v28 = vld [vmem:[#allocation22_spill] sm:$0xff] }
 0x319   : > { %6976 = vmatpush1.bf16.msra.mxu1 %v9650_v21  ;;  %6917 = vmatprep.subr.bf16.mxu0 %v11309_v42  ;;  %v11413_v21 = vld [vmem:[#allocation23_spill] sm:$0xff] }
 0x31a   : > { %6977 = vmatprep.subr.bf16.mxu1 %v11309_v42 }
 0x31c   : > { %6919 = vmatpush1.bf16.msra.mxu0 %v9669_v50  ;;  %v11414_v50 = vld [vmem:[#allocation24_spill] sm:$0xff] }
 0x31d   : > { %6979 = vmatpush1.bf16.msra.mxu1 %v9671_v27  ;;  %6920 = vmatprep.subr.bf16.mxu0 %v11309_v42  ;;  %v11415_v27 = vld [vmem:[#allocation25_spill] sm:$0xff] }
 0x31e   : > { %6980 = vmatprep.subr.bf16.mxu1 %v11309_v42 }
 0x320   : > { %6922 = vmatpush1.bf16.msra.mxu0 %v9689_v54  ;;  %v11416_v54 = vld [vmem:[#allocation26_spill] sm:$0xff] }
 0x321   : > { %6982 = vmatpush1.bf16.msra.mxu1 %v9691_v23  ;;  %6983 = vmatprep.subr.bf16.mxu0 %v11309_v42  ;;  %v11417_v23 = vld [vmem:[#allocation27_spill] sm:$0xff] }
 0x322   : > { %7013 = vmatprep.subr.bf16.mxu1 %v11309_v42 }
 0x323   : > { %3834 = vmatmul.mubr.f32.vlgmr.msra.gmra.mrb[92].mxu0 %v7493_v19 }
 0x324   : > { %4024 = vmatmul.mubr.f32.vlgmr.msra.gmra.mrb[92].mxu1 %v7493_v19  ;;  %5854 = vmatprep.mubr.msk.f32.mxu0 %vm1425_vm4, %v7494_v37  ;;  %v11439_v19 = vld [vmem:[#allocation48_spill] sm:$0xff] }
 0x325   : > { %5866 = vmatprep.mubr.msk.f32.mxu1 %vm1425_vm4, %v7494_v37  ;;  %6985 = vmatpush1.bf16.msra.mxu0 %v9711_v18  ;;  %v11418_v18 = vld [vmem:[#allocation28_spill] sm:$0xff]  ;;  %v11440_v37 = vld [vmem:[#allocation49_spill] sm:$0xff] }
 0x326   : > { %7015 = vmatpush1.bf16.msra.mxu1 %v9713_v61  ;;  %6986 = vmatprep.subr.bf16.mxu0 %v11309_v42  ;;  %v11419_v61 = vld [vmem:[#allocation29_spill] sm:$0xff] }
 0x327   : > { %3839 = vmatmul.mubr.f32.gmra.mrb[94].mxu0 %v7495_v7  ;;  %7016 = vmatprep.subr.bf16.mxu1 %v11309_v42 }
 0x328   : > { %4029 = vmatmul.mubr.f32.gmra.mrb[94].mxu1 %v7495_v7  ;;  %5855 = vmatprep.mubr.msk.f32.mxu0 %vm1425_vm4, %v7496_v57  ;;  %v11441_v7 = vld [vmem:[#allocation50_spill] sm:$0xff] }
 0x329   : > { %5867 = vmatprep.mubr.msk.f32.mxu1 %vm1425_vm4, %v7496_v57  ;;  %6988 = vmatpush1.bf16.msra.mxu0 %v9731_v33  ;;  %v11420_v33 = vld [vmem:[#allocation30_spill] sm:$0xff] }
 0x32a   : > { %7018 = vmatpush1.bf16.msra.mxu1 %v9733_v44  ;;  %6989 = vmatprep.subr.bf16.mxu0 %v11309_v42  ;;  %v11421_v44 = vld [vmem:[#allocation31_spill] sm:$0xff] }
 0x32b   : > { %3844 = vmatmul.mubr.f32.gmra.mrb[96].mxu0 %v7497_v4  ;;  %7019 = vmatprep.subr.bf16.mxu1 %v11309_v42 }
 0x32c   : > { %4034 = vmatmul.mubr.f32.gmra.mrb[96].mxu1 %v7497_v4  ;;  %5856 = vmatprep.mubr.msk.f32.mxu0 %vm1425_vm4, %v7498_v29  ;;  %v7507_v4 = vld [vmem:[#allocation2 + $0x40] sm:$0xff] }
 0x32d   : > { %5868 = vmatprep.mubr.msk.f32.mxu1 %vm1425_vm4, %v7498_v29  ;;  %6991 = vmatpush1.bf16.msra.mxu0 %v9759_v14  ;;  %v11423_v14 = vld [vmem:[#allocation32_spill] sm:$0xff] }
 0x32e   : > { %7021 = vmatpush1.bf16.msra.mxu1 %v9761_v12  ;;  %6992 = vmatprep.subr.bf16.mxu0 %v11309_v42  ;;  %v11424_v12 = vld [vmem:[#allocation33_spill] sm:$0xff] }
 0x32f   : > { %3849 = vmatmul.mubr.f32.gmra.mrb[98].mxu0 %v7499_v47  ;;  %7022 = vmatprep.subr.bf16.mxu1 %v11309_v42 }
 0x330   : > { %4039 = vmatmul.mubr.f32.gmra.mrb[98].mxu1 %v7499_v47  ;;  %5857 = vmatprep.mubr.msk.f32.mxu0 %vm1425_vm4, %v7500_v25  ;;  %v11443_v47 = vld [vmem:[#allocation52_spill] sm:$0xff] }
 0x331   : > { %5869 = vmatprep.mubr.msk.f32.mxu1 %vm1425_vm4, %v7500_v25  ;;  %6994 = vmatpush1.bf16.msra.mxu0 %v9789_v36  ;;  %v11427_v36 = vld [vmem:[#allocation36_spill] sm:$0xff] }
 0x332   : > { %7024 = vmatpush1.bf16.msra.mxu1 %v11409_v39  ;;  %6995 = vmatprep.subr.bf16.mxu0 %v11309_v42  ;;  %v7509_v39 = vld [vmem:[#allocation2 + $0x50] sm:$0xff] }
 0x333   : > { %3854 = vmatmul.mubr.f32.gmra.mrb[100].mxu0 %v7501_v31  ;;  %7025 = vmatprep.subr.bf16.mxu1 %v11309_v42 }
 0x334   : > { %4044 = vmatmul.mubr.f32.gmra.mrb[100].mxu1 %v7501_v31  ;;  %5858 = vmatprep.mubr.msk.f32.mxu0 %vm1425_vm4, %v7502_v32  ;;  %v11445_v31 = vld [vmem:[#allocation55_spill] sm:$0xff] }
 0x335   : > { %5870 = vmatprep.mubr.msk.f32.mxu1 %vm1425_vm4, %v7502_v32  ;;  %6997 = vmatpush1.bf16.msra.mxu0 %v11410_v34  ;;  %v5908_v34 = vld [vmem:[%s11164_s5 + $0x60] sm:$0xff] }
 0x336   : > { %7027 = vmatpush1.bf16.msra.mxu1 %v11411_v35  ;;  %6998 = vmatprep.subr.bf16.mxu0 %v11309_v42  ;;  %v5910_v35 = vld [vmem:[%s11164_s5 + $0x70] sm:$0xff] }
 0x337   : > { %3859 = vmatmul.mubr.f32.gmra.mrb[102].mxu0 %v7503_v58  ;;  %7028 = vmatprep.subr.bf16.mxu1 %v11309_v42 }
 0x338   : > { %4049 = vmatmul.mubr.f32.gmra.mrb[102].mxu1 %v7503_v58  ;;  %5871 = vmatprep.mubr.msk.f32.mxu0 %vm1425_vm4, %v7496_v57 }
 0x339   : > { %7000 = vmatpush1.bf16.msra.mxu0 %v11412_v28  ;;  %5877 = vmatprep.mubr.msk.f32.mxu1 %vm1425_vm4, %v7496_v57  ;;  %v11442_v57 = vld [vmem:[#allocation51_spill] sm:$0xff] }
 0x33a   : > { %7030 = vmatpush1.bf16.msra.mxu1 %v11413_v21  ;;  %7001 = vmatprep.subr.bf16.mxu0 %v11309_v42 }
 0x33b   : > { %7031 = vmatprep.subr.bf16.mxu1 %v11309_v42 }
 0x33d   : > { %7003 = vmatpush1.bf16.msra.mxu0 %v11414_v50  ;;  %v4465_v50 = vld [vmem:[#allocation2 + $0x110] sm:$0xff] }
 0x33e   : > { %7033 = vmatpush1.bf16.msra.mxu1 %v11415_v27  ;;  %7004 = vmatprep.subr.bf16.mxu0 %v11309_v42 }
 0x33f   : > { %7034 = vmatprep.subr.bf16.mxu1 %v11309_v42 }
 0x341   : > { %7006 = vmatpush1.bf16.msra.mxu0 %v11416_v54  ;;  %v4468_v54 = vld [vmem:[#allocation2 + $0x128] sm:$0xff] }
 0x342   : > { %7036 = vmatpush1.bf16.msra.mxu1 %v11417_v23  ;;  %7007 = vmatprep.subr.bf16.mxu0 %v11309_v42 }
 0x343   : > { %7037 = vmatprep.subr.bf16.mxu1 %v11309_v42 }
 0x345   : > { %7009 = vmatpush1.bf16.msra.mxu0 %v11418_v18 }
 0x346   : > { %7039 = vmatpush1.bf16.msra.mxu1 %v11419_v61  ;;  %7010 = vmatprep.subr.bf16.mxu0 %v11309_v42 }
 0x347   : > { %7040 = vmatprep.subr.bf16.mxu1 %v11309_v42 }
 0x349   : > { %7012 = vmatpush1.bf16.msra.mxu0 %v11420_v33  ;;  %v4467_v33 = vld [vmem:[#allocation2 + $0x120] sm:$0xff] }
 0x34a   : > { %7042 = vmatpush1.bf16.msra.mxu1 %v11421_v44  ;;  %7043 = vmatprep.subr.bf16.mxu0 %v11309_v42 }
 0x34b   : > { %7073 = vmatprep.subr.bf16.mxu1 %v11309_v42 }
 0x34c   : > { %4119 = vmatmul.mubr.f32.vlgmr.msra.gmra.mrb[92].mxu0 %v11422_v17 }
 0x34d   : > { %4220 = vmatmul.mubr.f32.vlgmr.msra.gmra.mrb[92].mxu1 %v11422_v17  ;;  %5872 = vmatprep.mubr.msk.f32.mxu0 %vm1425_vm4, %v7498_v29  ;;  %v4470_v17 = vld [vmem:[#allocation2 + $0x138] sm:$0xff] }
 0x34e   : > { %5878 = vmatprep.mubr.msk.f32.mxu1 %vm1425_vm4, %v7498_v29  ;;  %7045 = vmatpush1.bf16.msra.mxu0 %v11423_v14  ;;  %v7508_v29 = vld [vmem:[#allocation2 + $0x58] sm:$0xff] }
 0x34f   : > { %7075 = vmatpush1.bf16.msra.mxu1 %v11424_v12  ;;  %7046 = vmatprep.subr.bf16.mxu0 %v11309_v42 }
 0x350   : > { %4124 = vmatmul.mubr.f32.gmra.mrb[94].mxu0 %v10237_v48  ;;  %7076 = vmatprep.subr.bf16.mxu1 %v11309_v42 }
 0x351   : > { %4225 = vmatmul.mubr.f32.gmra.mrb[94].mxu1 %v10237_v48  ;;  %5873 = vmatprep.mubr.msk.f32.mxu0 %vm1425_vm4, %v7500_v25  ;;  %v11428_v48 = vld [vmem:[#allocation37_spill] sm:$0xff] }
 0x352   : > { %5879 = vmatprep.mubr.msk.f32.mxu1 %vm1425_vm4, %v7500_v25  ;;  %7048 = vmatpush1.bf16.msra.mxu0 %v11425_v26  ;;  %v11444_v25 = vld [vmem:[#allocation53_spill] sm:$0xff] }
 0x353   : > { %7078 = vmatpush1.bf16.msra.mxu1 %v11426_v52  ;;  %7049 = vmatprep.subr.bf16.mxu0 %v11309_v42  ;;  %v4469_v52 = vld [vmem:[#allocation2 + $0x130] sm:$0xff] }
 0x354   : > { %4129 = vmatmul.mubr.f32.gmra.mrb[96].mxu0 %v10265_v53  ;;  %7079 = vmatprep.subr.bf16.mxu1 %v11309_v42 }
 0x355   : > { %4230 = vmatmul.mubr.f32.gmra.mrb[96].mxu1 %v10265_v53  ;;  %5874 = vmatprep.mubr.msk.f32.mxu0 %vm1425_vm4, %v7502_v32 }
 0x356   : > { %5880 = vmatprep.mubr.msk.f32.mxu1 %vm1425_vm4, %v7502_v32  ;;  %7051 = vmatpush1.bf16.msra.mxu0 %v11427_v36  ;;  %v5911_v32 = vld [vmem:[%s11164_s5 + $0x78] sm:$0xff] }
 0x357   : > { %7081 = vmatpush1.bf16.msra.mxu1 %v11428_v48  ;;  %7052 = vmatprep.subr.bf16.mxu0 %v11309_v42 }
 0x358   : > { %4134 = vmatmul.mubr.f32.gmra.mrb[98].mxu0 %v7503_v58  ;;  %7082 = vmatprep.subr.bf16.mxu1 %v11309_v42 }
 0x359   : > { %4235 = vmatmul.mubr.f32.gmra.mrb[98].mxu1 %v7503_v58  ;;  %5875 = vmatprep.mubr.msk.f32.mxu0 %vm1425_vm4, %v10303_v49 }
 0x35a   : > { %5881 = vmatprep.mubr.msk.f32.mxu1 %vm1425_vm4, %v10303_v49  ;;  %7054 = vmatpush1.bf16.msra.mxu0 %v11429_v11 }
 0x35b   : > { %7084 = vmatpush1.bf16.msra.mxu1 %v11430_v24  ;;  %7055 = vmatprep.subr.bf16.mxu0 %v11309_v42 }
 0x35c   : > { %4139 = vmatmul.mubr.f32.gmra.mrb[100].mxu0 %v7504_v41  ;;  %7085 = vmatprep.subr.bf16.mxu1 %v11309_v42 }
 0x35d   : > { %4240 = vmatmul.mubr.f32.gmra.mrb[100].mxu1 %v7504_v41  ;;  %5876 = vmatprep.mubr.msk.f32.mxu0 %vm1425_vm4, %v10331_v0 }
 0x35e   : > { %5882 = vmatprep.mubr.msk.f32.mxu1 %vm1425_vm4, %v10331_v0  ;;  %7057 = vmatpush1.bf16.msra.mxu0 %v11431_v22 }
 0x35f   : > { %7087 = vmatpush1.bf16.msra.mxu1 %v11432_v9  ;;  %7058 = vmatprep.subr.bf16.mxu0 %v11309_v42 }
 0x360   : > { %4144 = vmatmul.mubr.f32.gmra.mrb[102].mxu0 %v7505_v38  ;;  %7088 = vmatprep.subr.bf16.mxu1 %v11309_v42 }
 0x361   : > { %4245 = vmatmul.mubr.f32.gmra.mrb[102].mxu1 %v7505_v38  ;;  %5883 = vmatprep.mubr.msk.f32.mxu0 %vm1425_vm4, %v7506_v30 }
 0x362   : > { %7060 = vmatpush1.bf16.msra.mxu0 %v11433_v1  ;;  %5889 = vmatprep.mubr.msk.f32.mxu1 %vm1425_vm4, %v7506_v30 }
 0x363   : > { %7090 = vmatpush1.bf16.msra.mxu1 %v11434_v6  ;;  %7061 = vmatprep.subr.bf16.mxu0 %v11309_v42 }
 0x364   : > { %7091 = vmatprep.subr.bf16.mxu1 %v11309_v42 }
 0x366   : > { %7063 = vmatpush1.bf16.msra.mxu0 %v11435_v16 }
 0x367   : > { %7093 = vmatpush1.bf16.msra.mxu1 %v11436_v62  ;;  %7064 = vmatprep.subr.bf16.mxu0 %v11309_v42 }
 0x368   : > { %7094 = vmatprep.subr.bf16.mxu1 %v11309_v42 }
 0x36a   : > { %7066 = vmatpush1.bf16.msra.mxu0 %v11437_v40 }
 0x36b   : > { %7096 = vmatpush1.bf16.msra.mxu1 %v11438_v43  ;;  %7067 = vmatprep.subr.bf16.mxu0 %v11309_v42 }
 0x36c   : > { %7097 = vmatprep.subr.bf16.mxu1 %v11309_v42 }
 0x36e   : > { %7069 = vmatpush1.bf16.msra.mxu0 %v11439_v19  ;;  %v5913_v19 = vld [vmem:[%s11164_s5 + $0x88] sm:$0xff] }
 0x36f   : > { %7099 = vmatpush1.bf16.msra.mxu1 %v11440_v37  ;;  %7070 = vmatprep.subr.bf16.mxu0 %v11309_v42  ;;  %v5915_v37 = vld [vmem:[%s11164_s5 + $0x98] sm:$0xff] }
 0x370   : > { %7100 = vmatprep.subr.bf16.mxu1 %v11309_v42 }
 0x372   : > { %7072 = vmatpush1.bf16.msra.mxu0 %v11441_v7  ;;  %v7167_v7 = vpack.c.bf16 %v5915_v37, %v5913_v19  ;;  %v5061_v19 = vld [vmem:[%s11166_s7 + $0xd8] sm:$0xff] }
 0x373   : > { %7102 = vmatpush1.bf16.msra.mxu1 %v11442_v57  ;;  %7103 = vmatprep.subr.bf16.mxu0 %v11309_v42  ;;  %v5912_v57 = vld [vmem:[%s11164_s5 + $0x80] sm:$0xff] }
 0x374   : > { %7133 = vmatprep.subr.bf16.mxu1 %v11309_v42 }
 0x375   : > { %4321 = vmatmul.mubr.f32.vlgmr.msra.gmra.mrb[92].mxu0 %v7507_v4 }
 0x376   : > { %4422 = vmatmul.mubr.f32.vlgmr.msra.gmra.mrb[92].mxu1 %v7507_v4  ;;  %5884 = vmatprep.mubr.msk.f32.mxu0 %vm1425_vm4, %v7508_v29  ;;  %v5914_v4 = vld [vmem:[%s11164_s5 + $0x90] sm:$0xff] }
 0x377   : > { %5890 = vmatprep.mubr.msk.f32.mxu1 %vm1425_vm4, %v7508_v29  ;;  %7105 = vmatpush1.bf16.msra.mxu0 %v11443_v47  ;;  %v7169_v29 = vpack.c.bf16 %v5914_v4, %v5912_v57  ;;  %v5917_v47 = vld [vmem:[%s11164_s5 + $0xa8] sm:$0xff]  ;;  %v5044_v57 = vld [vmem:[%s11166_s7 + $0x50] sm:$0xff]  ;;  %v5045_v4 = vld [vmem:[%s11166_s7 + $0x58] sm:$0xff] }
 0x378   : > { %7135 = vmatpush1.bf16.msra.mxu1 %v11444_v25  ;;  %7106 = vmatprep.subr.bf16.mxu0 %v11309_v42  ;;  %v5919_v25 = vld [vmem:[%s11164_s5 + $0xb8] sm:$0xff] }
 0x379   : > { %4326 = vmatmul.mubr.f32.gmra.mrb[94].mxu0 %v7509_v39  ;;  %7136 = vmatprep.subr.bf16.mxu1 %v11309_v42 }
 0x37a   : > { %4427 = vmatmul.mubr.f32.gmra.mrb[94].mxu1 %v7509_v39  ;;  %5885 = vmatprep.mubr.msk.f32.mxu0 %vm1425_vm4, %v10053_v55  ;;  %v7171_v39 = vpack.c.bf16 %v5919_v25, %v5917_v47  ;;  %v5063_v47 = vld [vmem:[%s11166_s7 + $0xe8] sm:$0xff]  ;;  %v7221_v25 = vpack.c.bf16 %v5045_v4, %v5044_v57 }
 0x37b   : > { %5891 = vmatprep.mubr.msk.f32.mxu1 %vm1425_vm4, %v10053_v55  ;;  %7108 = vmatpush1.bf16.msra.mxu0 %v10227_v13  ;;  %v11446_v55 = vld [vmem:[#allocation56_spill] sm:$0xff]  ;;  %v4460_v13 = vld [vmem:[#allocation2 + $0xe8] sm:$0xff] }
 0x37c   : > { %7138 = vmatpush1.bf16.msra.mxu1 %v10229_v45  ;;  %7109 = vmatprep.subr.bf16.mxu0 %v11309_v42  ;;  %v11450_v45 = vld [vmem:[#allocation60_spill] sm:$0xff] }
 0x37d   : > { %4331 = vmatmul.mubr.f32.gmra.mrb[96].mxu0 %v10061_v59  ;;  %7139 = vmatprep.subr.bf16.mxu1 %v11309_v42 }
 0x37e   : > { %4432 = vmatmul.mubr.f32.gmra.mrb[96].mxu1 %v10061_v59  ;;  %5886 = vmatprep.mubr.msk.f32.mxu0 %vm1425_vm4, %v10083_v2  ;;  %v11447_v59 = vld [vmem:[#allocation57_spill] sm:$0xff] }
 0x37f   : > { %5892 = vmatprep.mubr.msk.f32.mxu1 %vm1425_vm4, %v10083_v2  ;;  %7111 = vmatpush1.bf16.msra.mxu0 %v11445_v31  ;;  %v11448_v2 = vld [vmem:[#allocation58_spill] sm:$0xff]  ;;  %v5916_v31 = vld [vmem:[%s11164_s5 + $0xa0] sm:$0xff] }
 0x380   : > { %7141 = vmatpush1.bf16.msra.mxu1 %v11446_v55  ;;  %7112 = vmatprep.subr.bf16.mxu0 %v11309_v42  ;;  %v5918_v55 = vld [vmem:[%s11164_s5 + $0xb0] sm:$0xff] }
 0x381   : > { %4336 = vmatmul.mubr.f32.gmra.mrb[98].mxu0 %v10091_v60  ;;  %7142 = vmatprep.subr.bf16.mxu1 %v11309_v42 }
 0x382   : > { %4437 = vmatmul.mubr.f32.gmra.mrb[98].mxu1 %v10091_v60  ;;  %5887 = vmatprep.mubr.msk.f32.mxu0 %vm1425_vm4, %v10467_v15  ;;  %v11449_v60 = vld [vmem:[#allocation59_spill] sm:$0xff] }
 0x383   : > { %5893 = vmatprep.mubr.msk.f32.mxu1 %vm1425_vm4, %v10467_v15  ;;  %7114 = vmatpush1.bf16.msra.mxu0 %v11447_v59  ;;  %v11451_v15 = vld [vmem:[#allocation61_spill] sm:$0xff]  ;;  %v7173_v59 = vpack.c.bf16 %v5918_v55, %v5916_v31 }
 0x384   : > { %7144 = vmatpush1.bf16.msra.mxu1 %v11448_v2  ;;  %7115 = vmatprep.subr.bf16.mxu0 %v11309_v42  ;;  %v4723_v2 = vld [vmem:[%s11164_s5 + $0x8] sm:$0xff] }
 0x385   : > { %4341 = vmatmul.mubr.f32.gmra.mrb[100].mxu0 %v10475_v20  ;;  %7145 = vmatprep.subr.bf16.mxu1 %v11309_v42 }
 0x386   : > { %4442 = vmatmul.mubr.f32.gmra.mrb[100].mxu1 %v10475_v20  ;;  %5888 = vmatprep.mubr.msk.f32.mxu0 %vm1425_vm4, %v10481_v3  ;;  %v11453_v20 = vld [vmem:[#allocation63_spill] sm:$0xff] }
 0x387   : > { %5894 = vmatprep.mubr.msk.f32.mxu1 %vm1425_vm4, %v10481_v3  ;;  %7117 = vmatpush1.bf16.msra.mxu0 %v10311_v51  ;;  %v11452_v51 = vld [vmem:[#allocation62_spill] sm:$0xff]  ;;  %v11454_v3 = vld [vmem:[#allocation64_spill] sm:$0xff] }
 0x388   : > { %7147 = vmatpush1.bf16.msra.mxu1 %v11449_v60  ;;  %7118 = vmatprep.subr.bf16.mxu0 %v11309_v42  ;;  %v4725_v60 = vld [vmem:[%s11164_s5 + $0x18] sm:$0xff] }
 0x389   : > { %4346 = vmatmul.mubr.f32.gmra.mrb[102].mxu0 %v10489_v8  ;;  %7148 = vmatprep.subr.bf16.mxu1 %v11309_v42 }
 0x38a   : > { %4447 = vmatmul.mubr.f32.gmra.mrb[102].mxu1 %v10489_v8  ;;  %5895 = vmatprep.mubr.msk.f32.mxu0 %vm1425_vm4, %v4460_v13  ;;  %v5909_v8 = vld [vmem:[%s11164_s5 + $0x68] sm:$0xff] }
 0x38b   : > { %7120 = vmatpush1.bf16.msra.mxu0 %v11450_v45  ;;  %5901 = vmatprep.mubr.msk.f32.mxu1 %vm1425_vm4, %v4460_v13  ;;  %v7175_v13 = vpack.c.bf16 %v4725_v60, %v4723_v2  ;;  %v7536_v45 = vmov 0.0  }
 0x38c   : > { %7150 = vmatpush1.bf16.msra.mxu1 %v11451_v15  ;;  %7121 = vmatprep.subr.bf16.mxu0 %v11309_v42  ;;  %v5050_v15 = vld [vmem:[%s11166_s7 + $0x80] sm:$0xff] }
 0x38d   : > { %7151 = vmatprep.subr.bf16.mxu1 %v11309_v42 }
 0x38f   : > { %7123 = vmatpush1.bf16.msra.mxu0 %v11452_v51  ;;  %v5051_v51 = vld [vmem:[%s11166_s7 + $0x88] sm:$0xff] }
 0x390   : > { %7153 = vmatpush1.bf16.msra.mxu1 %v11453_v20  ;;  %7124 = vmatprep.subr.bf16.mxu0 %v11309_v42  ;;  %v5034_v20 = vld [vmem:[%s11166_s7] sm:$0xff] }
 0x391   : > { %7154 = vmatprep.subr.bf16.mxu1 %v11309_v42 }
 0x393   : > { %7126 = vmatpush1.bf16.msra.mxu0 %v10385_v63  ;;  %v7163_v63 = vpack.c.bf16 %v5911_v32, %v5909_v8  ;;  %v5035_v8 = vld [vmem:[%s11166_s7 + $0x8] sm:$0xff]  ;;  %v5052_v32 = vld [vmem:[%s11166_s7 + $0x90] sm:$0xff] }
 0x394   : > { %7156 = vmatpush1.bf16.msra.mxu1 %v11454_v3  ;;  %7127 = vmatprep.subr.bf16.mxu0 %v11309_v42  ;;  %v7199_v3 = vpack.c.bf16 %v5051_v51, %v5050_v15 }
 0x395   : > { %7157 = vmatprep.subr.bf16.mxu1 %v11309_v42 }
 0x397   : > { %7129 = vmatpush1.bf16.msra.mxu0 %v10405_v46  ;;  %v7165_v46 = vpack.c.bf16 %v5910_v35, %v5908_v34  ;;  %v7201_v34 = vpack.c.bf16 %v5035_v8, %v5034_v20 }
 0x398   : > { %7159 = vmatpush1.bf16.msra.mxu1 %v10407_v56  ;;  %7130 = vmatprep.subr.bf16.mxu0 %v11309_v42  ;;  %v4462_v56 = vld [vmem:[#allocation2 + $0xf8] sm:$0xff] }
 0x399   : > { %7160 = vmatprep.subr.bf16.mxu1 %v11309_v42  ;;  %v4461_v42 = vld [vmem:[#allocation2 + $0xf0] sm:$0xff] }
 0x39b   : > { %7132 = vmatpush1.bf16.msra.mxu0 %v10425_v10  ;;  %v4463_v10 = vld [vmem:[#allocation2 + $0x100] sm:$0xff] }
 0x39c   : > { %7162 = vmatpush1.bf16.msra.mxu1 %v10427_v5  ;;  %7164 = vmatprep.subr.bf16.mxu0 %v7163_v63  ;;  %v5053_v63 = vld [vmem:[%s11166_s7 + $0x98] sm:$0xff] }
 0x39d   : > { %v7203_v35 = vpack.c.bf16 %v5053_v63, %v5052_v32  ;;  %7200 = vmatprep.subr.bf16.mxu1 %v7199_v3 }
 0x39e   : > { %4554 = vmatmul.mubr.f32.vlgmr.msra.gmra.mrb[92].mxu0 %v10265_v53 }
 0x39f   : > { %4655 = vmatmul.mubr.f32.vlgmr.msra.gmra.mrb[92].mxu1 %v10265_v53  ;;  %5896 = vmatprep.mubr.msk.f32.mxu0 %vm1425_vm4, %v4462_v56 }
 0x3a0   : > { %5902 = vmatprep.mubr.msk.f32.mxu1 %vm1425_vm4, %v4462_v56  ;;  %7166 = vmatpush1.bf16.msra.mxu0 %v7165_v46  ;;  %v5036_v46 = vld [vmem:[%s11166_s7 + $0x10] sm:$0xff]  ;;  %v5037_v56 = vld [vmem:[%s11166_s7 + $0x18] sm:$0xff] }
 0x3a1   : > { %7168 = vmatprep.subr.bf16.mxu0 %v7167_v7  ;;  %7202 = vmatpush3.bf16.msra.mxu1 %v7201_v34 }
 0x3a2   : > { %4559 = vmatmul.mubr.f32.gmra.mrb[94].mxu0 %v4461_v42  ;;  %7204 = vmatprep.subr.bf16.mxu1 %v7203_v35 }
 0x3a3   : > { %4660 = vmatmul.mubr.f32.gmra.mrb[94].mxu1 %v4461_v42  ;;  %5897 = vmatprep.mubr.msk.f32.mxu0 %vm1425_vm4, %v10303_v49  ;;  %v5054_v42 = vld [vmem:[%s11166_s7 + $0xa0] sm:$0xff] }
 0x3a4   : > { %5903 = vmatprep.mubr.msk.f32.mxu1 %vm1425_vm4, %v10303_v49  ;;  %7170 = vmatpush1.bf16.msra.mxu0 %v7169_v29  ;;  %v5062_v29 = vld [vmem:[%s11166_s7 + $0xe0] sm:$0xff] }
 0x3a5   : > { %v10793_v5 = vpop.f32.mrb[80].mxu0  ;;  %v10795_v58 = vpop.f32.mrb[80].mxu1  ;;  %7172 = vmatprep.subr.bf16.mxu0 %v7171_v39  ;;  %v7223_v39 = vpack.c.bf16 %v5063_v47, %v5062_v29 }
 0x3a6   : > { %4564 = vmatmul.mubr.f32.gmra.mrb[96].mxu0 %v4463_v10  ;;  %v3668_v53 = vmax.f32 %v10793_v5, %v10795_v58  ;;  %v3513_v28 = vpop.f32.mrb[81].mxu0  ;;  %v3635_v21 = vpop.f32.mrb[81].mxu1 }
 0x3a7   : > { %4665 = vmatmul.mubr.f32.gmra.mrb[96].mxu1 %v4463_v10  ;;  %5898 = vmatprep.mubr.msk.f32.mxu0 %vm1425_vm4, %v10331_v0  ;;  %v5055_v10 = vld [vmem:[%s11166_s7 + $0xa8] sm:$0xff]  ;;  %v7205_v28 = vpack.c.bf16 %v5037_v56, %v5036_v46 }
 0x3a8   : > { %5904 = vmatprep.mubr.msk.f32.mxu1 %vm1425_vm4, %v10331_v0  ;;  %7174 = vmatpush1.bf16.msra.mxu0 %v7173_v59  ;;  %v7207_v21 = vpack.c.bf16 %v5055_v10, %v5054_v42 }
 0x3a9   : > { %v10803_v49 = vpop.f32.mrb[82].mxu0  ;;  %v10805_v27 = vpop.f32.mrb[82].mxu1  ;;  %7176 = vmatprep.subr.bf16.mxu0 %v7175_v13  ;;  %7206 = vmatpush3.bf16.msra.mxu1 %v7205_v28 }
 0x3aa   : > { %4569 = vmatmul.mubr.f32.gmra.mrb[98].mxu0 %v4465_v50  ;;  %v3669_v23 = vmax.f32 %v10803_v49, %v10805_v27  ;;  %v3518_v18 = vpop.f32.mrb[83].mxu0  ;;  %v3640_v61 = vpop.f32.mrb[83].mxu1  ;;  %7208 = vmatprep.subr.bf16.mxu1 %v7207_v21  ;;  %v4722_v49 = vld [vmem:[%s11164_s5] sm:$0xff]  ;;  %v4724_v27 = vld [vmem:[%s11164_s5 + $0x10] sm:$0xff] }
 0x3ab   : > { %4670 = vmatmul.mubr.f32.gmra.mrb[98].mxu1 %v4465_v50  ;;  %5899 = vmatprep.mubr.msk.f32.mxu0 %vm1425_vm4, %v4468_v54  ;;  %v5038_v50 = vld [vmem:[%s11166_s7 + $0x20] sm:$0xff]  ;;  %v5056_v18 = vld [vmem:[%s11166_s7 + $0xb0] sm:$0xff]  ;;  %v5057_v61 = vld [vmem:[%s11166_s7 + $0xb8] sm:$0xff]  ;;  %v7177_v21 = vpack.c.bf16 %v4724_v27, %v4722_v49 }
 0x3ac   : > { %5905 = vmatprep.mubr.msk.f32.mxu1 %vm1425_vm4, %v4468_v54  ;;  %v5039_v54 = vld [vmem:[%s11166_s7 + $0x28] sm:$0xff]  ;;  %v5046_v27 = vld [vmem:[%s11166_s7 + $0x60] sm:$0xff] }
 0x3ad   : > { %v10811_v44 = vpop.f32.mrb[84].mxu0  ;;  %v10813_v0 = vpop.f32.mrb[84].mxu1 }
 0x3ae   : > { %4574 = vmatmul.mubr.f32.gmra.mrb[100].mxu0 %v4467_v33  ;;  %v3670_v14 = vmax.f32 %v10811_v44, %v10813_v0  ;;  %v3523_v12 = vpop.f32.mrb[85].mxu0  ;;  %v3645_v26 = vpop.f32.mrb[85].mxu1  ;;  %v4727_v44 = vld [vmem:[%s11164_s5 + $0x28] sm:$0xff]  ;;  %v4729_v0 = vld [vmem:[%s11164_s5 + $0x38] sm:$0xff] }
 0x3af   : > { %4675 = vmatmul.mubr.f32.gmra.mrb[100].mxu1 %v4467_v33  ;;  %5900 = vmatprep.mubr.msk.f32.mxu0 %vm1425_vm4, %v4470_v17  ;;  %v7209_v33 = vpack.c.bf16 %v5039_v54, %v5038_v50  ;;  %v5040_v12 = vld [vmem:[%s11166_s7 + $0x30] sm:$0xff]  ;;  %v5041_v26 = vld [vmem:[%s11166_s7 + $0x38] sm:$0xff] }
 0x3b0   : > { %5906 = vmatprep.mubr.msk.f32.mxu1 %vm1425_vm4, %v4470_v17  ;;  %v7211_v17 = vpack.c.bf16 %v5057_v61, %v5056_v18  ;;  %v7179_v18 = vpack.c.bf16 %v4729_v0, %v4727_v44  ;;  %v4726_v61 = vld [vmem:[%s11164_s5 + $0x20] sm:$0xff] }
 0x3b1   : > { %v10819_v36 = vpop.f32.mrb[86].mxu0  ;;  %v10821_v48 = vpop.f32.mrb[86].mxu1  ;;  %7210 = vmatpush3.bf16.msra.mxu1 %v7209_v33  ;;  %v4728_v33 = vld [vmem:[%s11164_s5 + $0x30] sm:$0xff] }
 0x3b2   : > { %4579 = vmatmul.mubr.f32.gmra.mrb[102].mxu0 %v4469_v52  ;;  %v3671_v11 = vmax.f32 %v10819_v36, %v10821_v48  ;;  %v3528_v24 = vpop.f32.mrb[87].mxu0  ;;  %v3650_v41 = vpop.f32.mrb[87].mxu1  ;;  %7212 = vmatprep.subr.bf16.mxu1 %v7211_v17  ;;  %v4731_v36 = vld [vmem:[%s11164_s5 + $0x48] sm:$0xff]  ;;  %v4733_v48 = vld [vmem:[%s11164_s5 + $0x58] sm:$0xff] }
 0x3b3   : > { %4680 = vmatmul.mubr.f32.gmra.mrb[102].mxu1 %v4469_v52  ;;  %4818 = vmatprep.mubr.f32.mxu0 %v7536_v45  ;;  %v5058_v52 = vld [vmem:[%s11166_s7 + $0xc0] sm:$0xff]  ;;  %v5059_v24 = vld [vmem:[%s11166_s7 + $0xc8] sm:$0xff]  ;;  %v7213_v41 = vpack.c.bf16 %v5041_v26, %v5040_v12 }
 0x3b5   : > { %v10825_v22 = vpop.f32.mrb[88].mxu0  ;;  %v10827_v9 = vpop.f32.mrb[88].mxu1  ;;  %7214 = vmatpush3.bf16.msra.mxu1 %v7213_v41  ;;  %v7181_v41 = vpack.c.bf16 %v4728_v33, %v4726_v61  ;;  %v11456_v61 = vld [vmem:[#allocation18_spill] sm:$0xff] }
 0x3b6   : > { %v3672_v38 = vmax.f32 %v10825_v22, %v10827_v9  ;;  %v3533_v30 = vpop.f32.mrb[89].mxu0  ;;  %v3655_v1 = vpop.f32.mrb[89].mxu1  ;;  %v4732_v22 = vld [vmem:[%s11164_s5 + $0x50] sm:$0xff] }
 0x3b7   : > { %v7215_v30 = vpack.c.bf16 %v5059_v24, %v5058_v52  ;;  %v5042_v1 = vld [vmem:[%s11166_s7 + $0x40] sm:$0xff] }
 0x3b9   : > { %v10831_v6 = vpop.f32.mrb[90].mxu0  ;;  %v10833_v16 = vpop.f32.mrb[90].mxu1  ;;  %7216 = vmatprep.subr.bf16.mxu1 %v7215_v30 }
 0x3ba   : > { %v3673_v62 = vmax.f32 %v10831_v6, %v10833_v16  ;;  %v3538_v40 = vpop.f32.mrb[91].mxu0  ;;  %v3660_v43 = vpop.f32.mrb[91].mxu1  ;;  %v5926_v6 = vld [vmem:[%s11164_s5 + $0xd0] sm:$0xff]  ;;  %v5929_v16 = vld [vmem:[%s11164_s5 + $0xe8] sm:$0xff] }
 0x3bb   : > { %v5043_v40 = vld [vmem:[%s11166_s7 + $0x48] sm:$0xff]  ;;  %v5060_v43 = vld [vmem:[%s11166_s7 + $0xd0] sm:$0xff] }
 0x3bc   : > { %v7217_v37 = vpack.c.bf16 %v5043_v40, %v5042_v1  ;;  %v7219_v7 = vpack.c.bf16 %v5061_v19, %v5060_v43  ;;  %v7183_v40 = vpack.c.bf16 %v4733_v48, %v4731_v36  ;;  %v4730_v43 = vld [vmem:[%s11164_s5 + $0x40] sm:$0xff]  ;;  %v5927_v19 = vld [vmem:[%s11164_s5 + $0xd8] sm:$0xff] }
 0x3bd   : > { %v7185_v29 = vpack.c.bf16 %v4732_v22, %v4730_v43  ;;  %v5154_v22 = vld [vmem:[%s11168_s9 + $0x20] sm:$0xff] }
 0x3be   : > { %7218 = vmatpush3.bf16.msra.mxu1 %v7217_v37 }
 0x3bf   : > { %7220 = vmatprep.subr.bf16.mxu1 %v7219_v7 }
 0x3c2   : > { %7222 = vmatpush3.bf16.msra.mxu1 %v7221_v25 }
 0x3c3   : > { %7224 = vmatprep.subr.bf16.mxu1 %v7223_v39 }
 0x471   : > { %v4555_v31 = vpop.f32.mrb[92].mxu0 }
 0x472   : > { %v10949_v55 = vmax.f32 %v3668_v53, %v4555_v31  ;;  %v10951_v59 = vpop.f32.mrb[92].mxu1  ;;  %v4557_v2 = vpop.f32.mrb[93].mxu0  ;;  %v5924_v31 = vld [vmem:[%s11164_s5 + $0xc0] sm:$0xff] }
 0x473   : > { %v4658_v60 = vpop.f32.mrb[93].mxu1 }
 0x474   : > { %v4697_v13 = vmax.f32 %v10949_v55, %v10951_v59  ;;  %v7189_v55 = vpack.c.bf16 %v5926_v6, %v5924_v31  ;;  %v5161_v31 = vld [vmem:[%s11168_s9 + $0x58] sm:$0xff] }
 0x475   : > { %v4560_v15 = vpop.f32.mrb[94].mxu0 }
 0x476   : > { %v10958_v51 = vmax.f32 %v3669_v23, %v4560_v15  ;;  %v10960_v20 = vpop.f32.mrb[94].mxu1  ;;  %v4562_v3 = vpop.f32.mrb[95].mxu0  ;;  %v10976_v23 = vld [vmem:[%s11163_s4] ss:$0 sm:$0xff]  ;;  %v5930_v15 = vld [vmem:[%s11164_s5 + $0xf0] sm:$0xff] }
 0x477   : > { %v4663_v8 = vpop.f32.mrb[95].mxu1  ;;  %v4710_v47 = vadd.f32 %v10976_v23, %v4697_v13  ;;  %v5928_v13 = vld [vmem:[%s11164_s5 + $0xe0] sm:$0xff]  ;;  %v5933_v3 = vld [vmem:[%s11164_s5 + $0x108] sm:$0xff] }
 0x478   : > { %v4698_v5 = vmax.f32 %v10958_v51, %v10960_v20  ;;  %v5935_v51 = vld [vmem:[%s11164_s5 + $0x118] sm:$0xff]  ;;  %v7193_v20 = vpack.c.bf16 %v5930_v15, %v5928_v13  ;;  %v5938_v15 = vld [vmem:[%s11167_s8] ss:$0 sm:$0xff] }
 0x479   : > { %v4565_v58 = vpop.f32.mrb[96].mxu0  ;;  %v4716_v59 = vmax.f32 %v4710_v47, 0.0  ;;  %v5159_v47 = vld [vmem:[%s11168_s9 + $0x48] sm:$0xff] }
 0x47a   : > { %v4693_v53 = vmax.f32 %v3670_v14, %v4565_v58  ;;  %v4666_v32 = vpop.f32.mrb[96].mxu1  ;;  %v4567_v63 = vpop.f32.mrb[97].mxu0  ;;  %v4711_v2 = vadd.f32 %v10976_v23, %v4698_v5  ;;  %v7195_v5 = vpack.c.bf16 %v5935_v51, %v5933_v3  ;;  %v5932_v58 = vld [vmem:[%s11164_s5 + $0x100] sm:$0xff] }
 0x47b   : > { %v4668_v34 = vpop.f32.mrb[97].mxu1 }
 0x47c   : > { %v4699_v35 = vmax.f32 %v4693_v53, %v4666_v32  ;;  %v4717_v8 = vmax.f32 %v4711_v2, 0.0  ;;  %v5934_v53 = vld [vmem:[%s11164_s5 + $0x110] sm:$0xff]  ;;  %v5165_v2 = vld [vmem:[%s11168_s9 + $0x78] sm:$0xff] }
 0x47d   : > { %v4570_v46 = vpop.f32.mrb[98].mxu0  ;;  %v7197_v32 = vpack.c.bf16 %v5934_v53, %v5932_v58 }
 0x47e   : > { %v4712_v14 = vadd.f32 %v10976_v23, %v4699_v35  ;;  %v4694_v56 = vmax.f32 %v3671_v11, %v4570_v46  ;;  %v4671_v42 = vpop.f32.mrb[98].mxu1  ;;  %v4572_v10 = vpop.f32.mrb[99].mxu0  ;;  %v5047_v46 = vld [vmem:[%s11166_s7 + $0x68] sm:$0xff] }
 0x47f   : > { %v4673_v28 = vpop.f32.mrb[99].mxu1  ;;  %v7225_v44 = vpack.c.bf16 %v5047_v46, %v5046_v27  ;;  %v5150_v10 = vld [vmem:[%s11168_s9] sm:$0xff] }
 0x480   : > { %v4718_v50 = vmax.f32 %v4712_v14, 0.0  ;;  %v4700_v54 = vmax.f32 %v4694_v56, %v4671_v42  ;;  %v5048_v14 = vld [vmem:[%s11166_s7 + $0x70] sm:$0xff]  ;;  %v5049_v56 = vld [vmem:[%s11166_s7 + $0x78] sm:$0xff]  ;;  %v5151_v28 = vld [vmem:[%s11168_s9 + $0x8] sm:$0xff] }
 0x481   : > { %v4575_v17 = vpop.f32.mrb[100].mxu0  ;;  %7226 = vmatpush3.bf16.msra.mxu1 %v7225_v44  ;;  %v7229_v42 = vpack.c.bf16 %v5049_v56, %v5048_v14 }
 0x482   : > { %v4713_v11 = vadd.f32 %v10976_v23, %v4700_v54  ;;  %v4695_v12 = vmax.f32 %v3672_v38, %v4575_v17  ;;  %v4676_v26 = vpop.f32.mrb[100].mxu1  ;;  %v4577_v52 = vpop.f32.mrb[101].mxu0  ;;  %5920 = vmatmul.mubr.msk.f32.vlgmr.msra.gmra.mrb[104].mxu0 %vm4747_vm5, %v4718_v50  ;;  %v5925_v38 = vld [vmem:[%s11164_s5 + $0xc8] sm:$0xff]  ;;  %v5014_v50 = vld [vmem:[%s11165_s6] sm:$0x3] }
 0x483   : > { %v4678_v24 = vpop.f32.mrb[101].mxu1  ;;  %7178 = vmatpush1.bf16.msra.mxu0 %v7177_v21  ;;  %4824 = vmatprep.mubr.f32.mxu0 %v7536_v45  ;;  %v7187_v39 = vpack.c.bf16 %v5927_v19, %v5925_v38  ;;  %v7231_v21 = vpack.c.bf16 %v5151_v28, %v5150_v10  ;;  %v11455_v54 = vld [vmem:[#allocation17_spill] sm:$0xff]  ;;  %v5023_v33 = vrot.slane %v5014_v50, %v11456_v61 }
 0x484   : > { %v4719_v30 = vmax.f32 %v4713_v11, 0.0  ;;  %v4701_v1 = vmax.f32 %v4695_v12, %v4676_v26  ;;  %7180 = vmatprep.subr.bf16.mxu0 %v7179_v18  ;;  %v5019_v18 = vrot.slane %v5014_v50, %v11455_v54  ;;  %v5152_v12 = vld [vmem:[%s11168_s9 + $0x10] sm:$0xff]  ;;  %v5153_v26 = vld [vmem:[%s11168_s9 + $0x18] sm:$0xff] }
 0x485   : > { %v4580_v9 = vpop.f32.mrb[102].mxu0 }
 0x486   : > { %v4696_v37 = vmax.f32 %v3673_v62, %v4580_v9  ;;  %v4681_v7 = vpop.f32.mrb[102].mxu1  ;;  %v4582_v57 = vpop.f32.mrb[103].mxu0  ;;  %5921 = vmatmul.mubr.msk.f32.gmra.mrb[106].mxu0 %vm4747_vm5, %v4719_v30  ;;  %v5931_v62 = vld [vmem:[%s11164_s5 + $0xf8] sm:$0xff]  ;;  %v4714_v63 = vadd.f32 %v10976_v23, %v4701_v1  ;;  %v5155_v9 = vld [vmem:[%s11168_s9 + $0x28] sm:$0xff] }
 0x487   : > { %v4683_v4 = vpop.f32.mrb[103].mxu1  ;;  %7182 = vmatpush1.bf16.msra.mxu0 %v7181_v41  ;;  %4901 = vmatprep.mubr.f32.mxu0 %v7536_v45  ;;  %v7191_v60 = vpack.c.bf16 %v5931_v62, %v5929_v16  ;;  %v5157_v57 = vld [vmem:[%s11168_s9 + $0x38] sm:$0xff]  ;;  %v5162_v16 = vld [vmem:[%s11168_s9 + $0x60] sm:$0xff]  ;;  %v5163_v62 = vld [vmem:[%s11168_s9 + $0x68] sm:$0xff] }
 0x488   : > { %v4702_v25 = vmax.f32 %v4696_v37, %v4681_v7  ;;  %7184 = vmatprep.subr.bf16.mxu0 %v7183_v40  ;;  %v4720_v34 = vmax.f32 %v4714_v63, 0.0  ;;  %v7235_v40 = vpack.c.bf16 %v5153_v26, %v5152_v12  ;;  %v7239_v37 = vpack.c.bf16 %v5155_v9, %v5154_v22  ;;  %v5156_v7 = vld [vmem:[%s11168_s9 + $0x30] sm:$0xff] }
 0x489   : > { %v7243_v4 = vpack.c.bf16 %v5157_v57, %v5156_v7 }
 0x48a   : > { %v4715_v35 = vadd.f32 %v10976_v23, %v4702_v25  ;;  %v5064_v23 = vld [vmem:[%s11166_s7 + $0xf0] sm:$0xff] }
 0x48b   : > { %7186 = vmatpush1.bf16.msra.mxu0 %v7185_v29  ;;  %v5158_v29 = vld [vmem:[%s11168_s9 + $0x40] sm:$0xff] }
 0x48c   : > { %7188 = vmatprep.subr.bf16.mxu0 %v7187_v39  ;;  %v4721_v49 = vmax.f32 %v4715_v35, 0.0  ;;  %v7247_v25 = vpack.c.bf16 %v5159_v47, %v5158_v29  ;;  %v5160_v39 = vld [vmem:[%s11168_s9 + $0x50] sm:$0xff] }
 0x48d   : > { %v7251_v6 = vpack.c.bf16 %v5161_v31, %v5160_v39 }
 0x48e   : > { %5922 = vmatmul.mubr.msk.f32.vlgmr.msra.gmra.mrb[104].mxu0 %vm4747_vm5, %v4716_v59  ;;  %v5164_v59 = vld [vmem:[%s11168_s9 + $0x70] sm:$0xff] }
 0x48f   : > { %7190 = vmatpush1.bf16.msra.mxu0 %v7189_v55  ;;  %4907 = vmatprep.mubr.f32.mxu0 %v7536_v45  ;;  %v7255_v55 = vpack.c.bf16 %v5163_v62, %v5162_v16 }
 0x490   : > { %7192 = vmatprep.subr.bf16.mxu0 %v7191_v60  ;;  %v7259_v60 = vpack.c.bf16 %v5165_v2, %v5164_v59 }
 0x492   : > { %5923 = vmatmul.mubr.msk.f32.gmra.mrb[106].mxu0 %vm4747_vm5, %v4717_v8 }
 0x493   : > { %7194 = vmatpush1.bf16.msra.mxu0 %v7193_v20  ;;  %4997 = vmatprep.mubr.f32.mxu0 %v7536_v45 }
 0x494   : > { %7196 = vmatprep.subr.bf16.mxu0 %v7195_v5 }
 0x497   : > { %7198 = vmatpush1.bf16.msra.mxu0 %v7197_v32 }
 0x49a   : > { %5936 = vmatmul.mubr.msk.f32.vlgmr.msra.gmra.mrb[104].mxu0 %vm4747_vm5, %v4720_v34  ;;  %v5939_v34 = vld [vmem:[%s11169_s10] ss:$0 sm:$0xff] }
 0x49b   : > { %5003 = vmatprep.mubr.f32.mxu0 %v7536_v45  ;;  %v5065_v45 = vld [vmem:[%s11166_s7 + $0xf8] sm:$0xff] }
 0x49c   : > { %v7227_v0 = vpack.c.bf16 %v5065_v45, %v5064_v23 }
 0x49e   : > { %5937 = vmatmul.mubr.msk.f32.gmra.mrb[106].mxu0 %vm4747_vm5, %v4721_v49  ;;  %7228 = vmatprep.subr.bf16.mxu1 %v7227_v0 }
 0x49f   : > { %7230 = vmatpush3.bf16.msra.mxu1 %v7229_v42 }
 0x4a0   : > { %7232 = vmatprep.subr.bf16.mxu1 %v7231_v21 }
 0x56d   : > { %v4999_v17 = vpop.f32.mrb[104].mxu0 }
 0x56e   : > { %v5026_v36 = vadd.f32 %v5019_v18, %v4999_v17  ;;  %v5001_v48 = vpop.f32.mrb[105].mxu0 }
 0x56f   : > { %v5027_v11 = vadd.f32 %v5023_v33, %v5001_v48 }
 0x570   : > { %v5030_v41 = vmax.f32 %v5026_v36, 0.0 }
 0x571   : > { %v5031_v52 = vmax.f32 %v5027_v11, 0.0  ;;  %v5005_v24 = vpop.f32.mrb[106].mxu0 }
 0x572   : > { %v5028_v30 = vadd.f32 %v5019_v18, %v5005_v24  ;;  %v5007_v1 = vpop.f32.mrb[107].mxu0 }
 0x573   : > { %v5029_v43 = vadd.f32 %v5023_v33, %v5007_v1  ;;  %5137 = vmatprep.mubr.f32.mxu1 %v5031_v52 }
 0x574   : > { %5138 = vmatmul.mubr.f32.vlgmr.msra.gmra.mrb[104].mxu1 %v5030_v41  ;;  %v5032_v19 = vmax.f32 %v5028_v30, 0.0 }
 0x575   : > { %v5033_v38 = vmax.f32 %v5029_v43, 0.0  ;;  %7234 = vmatpush3.bf16.msra.mxu1 %v7231_v21 }
 0x576   : > { %7236 = vmatprep.subr.bf16.mxu1 %v7235_v40 }
 0x577   : > { %5142 = vmatprep.mubr.f32.mxu1 %v5033_v38 }
 0x578   : > { %5143 = vmatmul.mubr.f32.gmra.mrb[106].mxu1 %v5032_v19 }
 0x579   : > { %7238 = vmatpush3.bf16.msra.mxu1 %v7235_v40 }
 0x57a   : > { %7240 = vmatprep.subr.bf16.mxu1 %v7239_v37 }
 0x57d   : > { %7242 = vmatpush3.bf16.msra.mxu1 %v7239_v37 }
 0x57e   : > { %7244 = vmatprep.subr.bf16.mxu1 %v7243_v4 }
 0x581   : > { %7246 = vmatpush3.bf16.msra.mxu1 %v7243_v4 }
 0x582   : > { %7248 = vmatprep.subr.bf16.mxu1 %v7247_v25 }
 0x585   : > { %7250 = vmatpush3.bf16.msra.mxu1 %v7247_v25 }
 0x586   : > { %7252 = vmatprep.subr.bf16.mxu1 %v7251_v6 }
 0x589   : > { %7254 = vmatpush3.bf16.msra.mxu1 %v7251_v6 }
 0x58a   : > { %7256 = vmatprep.subr.bf16.mxu1 %v7255_v55 }
 0x58d   : > { %7258 = vmatpush3.bf16.msra.mxu1 %v7255_v55 }
 0x58e   : > { %7260 = vmatprep.subr.bf16.mxu1 %v7259_v60 }
 0x591   : > { %7262 = vmatpush3.bf16.msra.mxu1 %v7259_v60 }
 0x647   : > { %v5976_v13 = vpop.f32.mrb[104].mxu1 }
 0x648   : > { %v5977_v3 = vpop.f32.mrb[105].mxu1 }
 0x649   : > { %v5978_v51 = vadd.f32 %v5977_v3, %v5976_v13 }
 0x64b   : > { %v5140_v20 = vadd.f32 %v5978_v51, %v5938_v15  ;;  %v5979_v8 = vpop.f32.mrb[106].mxu1 }
 0x64c   : > { %v5980_v5 = vpop.f32.mrb[107].mxu1 }
 0x64d   : > { %v5148_v58 = vmax.f32 %v5140_v20, 0.0  ;;  %v5981_v53 = vadd.f32 %v5980_v5, %v5979_v8 }
 0x64f   : > { %v5145_v32 = vadd.f32 %v5981_v53, %v5938_v15  ;;  %6032 = vmatprep.mubr.f32.mxu1 %v5148_v58 }
 0x651   : > { %v5149_v63 = vmax.f32 %v5145_v32, 0.0 }
 0x653   : > { %6033 = vmatmul.mubr.f32.vlgmr.msra.gmra.mrb[108].mxu1 %v5149_v63 }
 0x726   : > { %v6034_v35 = vpop.f32.mrb[108].mxu1 }
 0x727   : > { %v5239_v49 = vpop.f32.mrb[109].mxu1  ;;  %v5245_v46 = vadd.f32 %v6034_v35, %v5939_v34 }
 0x728   : > { %v5240_v27 = vadd.f32 %v5939_v34, %v5239_v49 }
 0x729   : > { %5250 = vst.msk [vmem:[%s566_s14 + $0x8] sm:$0xff] %vm5248_vm6, %v5245_v46 }
 0x72a   : > { %5249 = vst.msk [vmem:[%s566_s14] sm:$0xff] %vm5248_vm6, %v5240_v27 }
 0x72b PF: > { %p18_p9 = scmp.ge.s32.totalorder %s7614_s21, 4   ;;  %s11457_s17 = smov %s7528_s18 }
 0x72c   : > { %s11458_s18 = smov %s7623_s24  ;;  %s11459_s19 = smov %s7614_s21 }
 0x72d   :  { %20 = sbr.rel (!%p18_p9) target bundleno = 2 (0x2), region = 142 }

</bundles_post_ra>
